<compile_context>
chip_gen: v7x
topology: tpu7x:2x2x1
jax: 0.10.0
libtpu: 0.0.40
codegen_flags: <defaults>
</compile_context>

<pallas_src>
import functools

import jax
import jax.numpy as jnp
from jax.experimental import pallas as pl
from jax.experimental.pallas import tpu as pltpu


def _round_up(x, m):
    return (x + m - 1) // m * m


def _largest_divisor(dim, candidates):
    for c in candidates:
        if dim % c == 0:
            return c
    return None


# ----------------------------------------------------------------------------
# Kernel 1: generic K-tiled linear (bf16 inputs, f32 accumulator scratch).
# Used for: fused LSTM input-gate GEMM, LSTM projection, fused QKV projection,
# attention output projection, and the final MLP.
# ----------------------------------------------------------------------------
def _linear_kernel(x_ref, w_ref, b_ref, o_ref, acc_ref):
    k = pl.program_id(2)

    @pl.when(k == 0)
    def _():
        acc_ref[...] = jnp.zeros_like(acc_ref)

    acc_ref[...] += jnp.dot(x_ref[...], w_ref[...],
                            preferred_element_type=jnp.float32)

    @pl.when(k == pl.num_programs(2) - 1)
    def _():
        o_ref[...] = (acc_ref[...] + b_ref[...]).astype(o_ref.dtype)


def linear(x, w, b, *, out_dtype=jnp.float32, tm_max=256):
    M, K = x.shape
    N = w.shape[1]

    # M tile: MXU-sized (<=256); pad M rather than shrinking to tiny tiles.
    tm = min(tm_max, _round_up(M, 8))
    Mp = _round_up(M, tm)

    # N tile: full block when small, otherwise a 128-multiple divisor; as a
    # bounded fallback pad N to a multiple of 128 (never a giant full block).
    if N <= 512:
        tn, Np = N, N
    else:
        tn = _largest_divisor(N, (512, 256, 128))
        if tn is None:
            tn, Np = 128, _round_up(N, 128)
        else:
            Np = N

    # K tile: full when small, else a bounded 128-multiple divisor (3072
    # covers the MLP's K = S*D at production), else pad K (zeros contribute 0).
    if K <= 2048:
        tk, Kp = K, K
    else:
        tk = _largest_divisor(K, (3072, 2048, 1536, 1024, 512, 384, 256, 128))
        if tk is None:
            tk, Kp = 512, _round_up(K, 512)
        else:
            Kp = K

    xp = x.astype(jnp.bfloat16)
    wp = w.astype(jnp.bfloat16)
    bp = b.reshape(1, -1).astype(jnp.float32)
    if Mp != M or Kp != K:
        xp = jnp.pad(xp, ((0, Mp - M), (0, Kp - K)))
    if Kp != K or Np != N:
        wp = jnp.pad(wp, ((0, Kp - K), (0, Np - N)))
    if Np != N:
        bp = jnp.pad(bp, ((0, 0), (0, Np - N)))

    out = pl.pallas_call(
        _linear_kernel,
        out_shape=jax.ShapeDtypeStruct((Mp, Np), out_dtype),
        grid=(Mp // tm, Np // tn, Kp // tk),
        in_specs=[
            pl.BlockSpec((tm, tk), lambda i, j, k: (i, k)),
            pl.BlockSpec((tk, tn), lambda i, j, k: (k, j)),
            pl.BlockSpec((1, tn), lambda i, j, k: (0, j)),
        ],
        out_specs=pl.BlockSpec((tm, tn), lambda i, j, k: (i, j)),
        scratch_shapes=[pltpu.VMEM((tm, tn), jnp.float32)],
        compiler_params=pltpu.CompilerParams(
            dimension_semantics=("parallel", "parallel", "arbitrary")),
    )(xp, wp, bp)

    if Mp != M or Np != N:
        out = out[:M, :N]
    return out


# ----------------------------------------------------------------------------
# Kernel 2: fused bidirectional LSTM recurrence.
#   Input gates (x @ W_ih + b, both directions) are precomputed by one big
#   GEMM and streamed time-major in bf16 as (S, B, 4H) per direction; each
#   grid step consumes a chunk of T time steps for BOTH directions (the
#   backward chunk is streamed / traversed in reverse).  One fused
#   (B,H) x (H,4H) MXU dot per direction per step.
# ----------------------------------------------------------------------------
def _bilstm_kernel(gxf_ref, gxb_ref, whhf_ref, whhb_ref,
                   hf_ref, hb_ref, hf_sc, cf_sc, hb_sc, cb_sc):
    t = pl.program_id(0)

    @pl.when(t == 0)
    def _():
        hf_sc[...] = jnp.zeros_like(hf_sc)
        cf_sc[...] = jnp.zeros_like(cf_sc)
        hb_sc[...] = jnp.zeros_like(hb_sc)
        cb_sc[...] = jnp.zeros_like(cb_sc)

    T = gxf_ref.shape[0]
    H = hf_sc.shape[-1]
    whf = whhf_ref[...]          # (H, 4H) bf16, loaded once per grid step
    whb = whhb_ref[...]

    def cell(gx, whh, h, c):
        # gx: (B, 4H) bf16 (bias already folded in).  Single fused MXU dot.
        z = gx.astype(jnp.float32) + jnp.dot(
            h.astype(jnp.bfloat16), whh, preferred_element_type=jnp.float32)
        ig = jax.nn.sigmoid(z[:, 0 * H:1 * H])
        fg = jax.nn.sigmoid(z[:, 1 * H:2 * H])
        gg = jnp.tanh(z[:, 2 * H:3 * H])
        og = jax.nn.sigmoid(z[:, 3 * H:4 * H])
        c_new = fg * c + ig * gg
        return og * jnp.tanh(c_new), c_new

    def body(step, carry):
        # forward direction: local index `step`
        hf, cf = cell(gxf_ref[step], whf, hf_sc[...], cf_sc[...])
        hf_sc[...] = hf
        cf_sc[...] = cf
        hf_ref[:, pl.ds(step, 1), :] = hf[:, None, :].astype(hf_ref.dtype)
        # backward direction: reversed local index within the reversed chunk
        j = T - 1 - step
        hb, cb = cell(gxb_ref[j], whb, hb_sc[...], cb_sc[...])
        hb_sc[...] = hb
        cb_sc[...] = cb
        hb_ref[:, pl.ds(j, 1), :] = hb[:, None, :].astype(hb_ref.dtype)
        return carry

    jax.lax.fori_loop(0, T, body, 0, unroll=True)


def bilstm(gates_f, gates_b, whh_f, whh_b, *, chunk=16):
    S, B, H4 = gates_f.shape
    H = H4 // 4
    T = min(chunk, _round_up(S, 8))          # keep the (B,T,H) out block 8-aligned
    Sp = _round_up(S, T)
    if Sp != S:
        # Zero gate pre-activations are a state no-op from a zero initial
        # state, so padding the time axis is safe for both scan directions.
        pad = ((0, Sp - S), (0, 0), (0, 0))
        gates_f = jnp.pad(gates_f, pad)
        gates_b = jnp.pad(gates_b, pad)
    nT = Sp // T

    h_fwd, h_bwd = pl.pallas_call(
        _bilstm_kernel,
        out_shape=(jax.ShapeDtypeStruct((B, Sp, H), jnp.bfloat16),
                   jax.ShapeDtypeStruct((B, Sp, H), jnp.bfloat16)),
        grid=(nT,),
        in_specs=[
            pl.BlockSpec((T, B, H4), lambda t: (t, 0, 0)),
            pl.BlockSpec((T, B, H4), lambda t: (nT - 1 - t, 0, 0)),
            pl.BlockSpec((H, H4), lambda t: (0, 0)),
            pl.BlockSpec((H, H4), lambda t: (0, 0)),
        ],
        out_specs=(pl.BlockSpec((B, T, H), lambda t: (0, t, 0)),
                   pl.BlockSpec((B, T, H), lambda t: (0, nT - 1 - t, 0))),
        scratch_shapes=[pltpu.VMEM((B, H), jnp.float32)] * 4,
        compiler_params=pltpu.CompilerParams(
            dimension_semantics=("arbitrary",)),
    )(gates_f.astype(jnp.bfloat16), gates_b.astype(jnp.bfloat16),
      whh_f.astype(jnp.bfloat16), whh_b.astype(jnp.bfloat16))

    if Sp != S:
        h_fwd = h_fwd[:, :S]
        h_bwd = h_bwd[:, :S]
    return h_fwd, h_bwd


# ----------------------------------------------------------------------------
# Kernel 3: RelGraphConv, "bdd" regularizer with num_bases == feat_dim
#   (per-relation weight degenerates to a diagonal scale vector):
#     out[dst] = sum_r Adj_r @ (h * w_rel[r]) + h @ W_loop + bias
#   Grid (B, R): relation axis is an arbitrary reduction into an f32 scratch;
#   no in-kernel (R,N,D) temporaries or reshapes.
# ----------------------------------------------------------------------------
def _relgcn_kernel(adj_ref, h_ref, wrel_ref, wloop_ref, b_ref, o_ref, acc_ref):
    r = pl.program_id(1)

    @pl.when(r == 0)
    def _():
        acc_ref[...] = jnp.zeros_like(acc_ref)

    h = h_ref[0]                                              # (N, D) bf16
    # Per-relation diagonal scale (VPU, overlaps the adjacency DMA), then one
    # (N,N) x (N,D) MXU dot per relation accumulated in f32.
    hs = (h.astype(jnp.float32) * wrel_ref[0]).astype(jnp.bfloat16)
    acc_ref[...] += jnp.dot(adj_ref[0, 0], hs,
                            preferred_element_type=jnp.float32)

    @pl.when(r == pl.num_programs(1) - 1)
    def _():
        loop = jnp.dot(h, wloop_ref[...], preferred_element_type=jnp.float32)
        o_ref[0] = (acc_ref[...] + loop + b_ref[...]).astype(o_ref.dtype)


def rel_graph_conv(adj, h, w_rel, w_loop, bias):
    B, R, N, _ = adj.shape
    D = h.shape[-1]
    return pl.pallas_call(
        _relgcn_kernel,
        out_shape=jax.ShapeDtypeStruct((B, N, D), jnp.bfloat16),
        grid=(B, R),
        in_specs=[
            pl.BlockSpec((1, 1, N, N), lambda b, r: (b, r, 0, 0)),
            pl.BlockSpec((1, N, D), lambda b, r: (b, 0, 0)),
            pl.BlockSpec((1, 1, D), lambda b, r: (r, 0, 0)),
            pl.BlockSpec((D, D), lambda b, r: (0, 0)),
            pl.BlockSpec((1, D), lambda b, r: (0, 0)),
        ],
        out_specs=pl.BlockSpec((1, N, D), lambda b, r: (b, 0, 0)),
        scratch_shapes=[pltpu.VMEM((N, D), jnp.float32)],
        compiler_params=pltpu.CompilerParams(
            dimension_semantics=("parallel", "arbitrary")),
    )(adj.astype(jnp.bfloat16), h.astype(jnp.bfloat16),
      w_rel.reshape(R, 1, D).astype(jnp.float32),
      w_loop.astype(jnp.bfloat16),
      bias.reshape(1, -1).astype(jnp.float32))


# ----------------------------------------------------------------------------
# Kernel 4: attention core (per-sample self-attention).
#   QKV / output projections are done by the big `linear` GEMM over the whole
#   batch.  K arrives pre-transposed (H, hd, N) so the score contraction is a
#   straight MXU dot; the context is written as a lane-dense (N, D) block
#   (heads merged along lanes, no wrapper-side head transpose needed).
#   Softmax uses exact normalization because the head-averaged probabilities
#   are returned to the caller.
# ----------------------------------------------------------------------------
def _attn_core_kernel(q_ref, kt_ref, v_ref, o_ref, attw_ref, *, scale):
    q = q_ref[0]                                              # (H, N, hd) bf16
    kt = kt_ref[0]                                            # (H, hd, N) bf16
    v = v_ref[0]                                              # (H, N, hd) bf16
    nh, _, hd = q.shape

    s = jnp.einsum('hqd,hdk->hqk', q, kt,
                   preferred_element_type=jnp.float32) * scale
    s = s - jnp.max(s, axis=-1, keepdims=True)
    p = jnp.exp(s)
    p = p / jnp.sum(p, axis=-1, keepdims=True)                # exact (returned)
    pv = p.astype(v.dtype)

    # Per-head context written into static lane slices of the lane-dense
    # (N, D) output block (D = nh * hd); HBM writeback is fully dense.
    for h in range(nh):
        ctx = jnp.dot(pv[h], v[h], preferred_element_type=jnp.float32)
        o_ref[0, :, h * hd:(h + 1) * hd] = ctx.astype(o_ref.dtype)

    attw_ref[0] = jnp.mean(p, axis=0)                         # head-averaged


def attention_block(x_bnd, wqkv, bqkv, wo, bo, *, num_heads):
    B, N, D = x_bnd.shape
    hd = D // num_heads
    scale = 1.0 / float(hd) ** 0.5

    # Fused QKV projection over the whole batch: one MXU-shaped GEMM.
    qkv = linear(x_bnd.reshape(B * N, D), wqkv, bqkv,
                 out_dtype=jnp.bfloat16).reshape(B, N, 3, num_heads, hd)
    q = qkv[:, :, 0].transpose(0, 2, 1, 3)        # (B, H, N, hd)
    kt = qkv[:, :, 1].transpose(0, 2, 3, 1)       # (B, H, hd, N)  pre-transposed K
    v = qkv[:, :, 2].transpose(0, 2, 1, 3)        # (B, H, N, hd)

    kernel = functools.partial(_attn_core_kernel, scale=scale)
    o, attw = pl.pallas_call(
        kernel,
        out_shape=(jax.ShapeDtypeStruct((B, N, D), jnp.bfloat16),
                   jax.ShapeDtypeStruct((B, N, N), jnp.float32)),
        grid=(B,),
        in_specs=[
            pl.BlockSpec((1, num_heads, N, hd), lambda b: (b, 0, 0, 0)),
            pl.BlockSpec((1, num_heads, hd, N), lambda b: (b, 0, 0, 0)),
            pl.BlockSpec((1, num_heads, N, hd), lambda b: (b, 0, 0, 0)),
        ],
        out_specs=(pl.BlockSpec((1, N, D), lambda b: (b, 0, 0)),
                   pl.BlockSpec((1, N, N), lambda b: (b, 0, 0))),
        compiler_params=pltpu.CompilerParams(
            dimension_semantics=("parallel",)),
    )(q, kt, v)

    attn_out = linear(o.reshape(B * N, D), wo, bo,
                      out_dtype=jnp.bfloat16).reshape(B, N, D)
    return attn_out, attw


# ----------------------------------------------------------------------------
# Full forward pass (glue in plain JAX, hot paths in the Pallas kernels above).
# ----------------------------------------------------------------------------
def gcn_relation_forward(params, input_ids, attention_mask, labels, mat, etypes,
                         *, num_heads, num_rels):
    del labels  # unused by the reference forward as well
    B, S = input_ids.shape
    H = params['whh_f'].shape[0]

    # --- BertBiLSTM ---------------------------------------------------------
    # TODO(synk): pretrained BioBERT encoder cannot be reproduced in-kernel;
    # substituted with a deterministic embedding lookup gated by the mask.
    fea_bert = (params['emb'][input_ids]
                * attention_mask[..., None].astype(jnp.bfloat16))    # (B,S,Dbert)

    # Hoisted LSTM input projection: one GEMM for BOTH directions, bias folded.
    gates = linear(fea_bert.reshape(B * S, -1), params['w_ih'], params['b_ih'],
                   out_dtype=jnp.bfloat16)                           # (B*S, 8H)
    gall = gates.reshape(B, S, 2, 4 * H).transpose(2, 1, 0, 3)       # (2,S,B,4H)

    h_fwd, h_bwd = bilstm(gall[0], gall[1], params['whh_f'], params['whh_b'])
    lstm_out = jnp.concatenate([h_fwd, h_bwd], axis=-1)              # (B,S,2H)

    fea = linear(lstm_out.reshape(B * S, 2 * H), params['w_lin'], params['b_lin'],
                 out_dtype=jnp.bfloat16)
    D = fea.shape[-1]
    fea = fea.reshape(B, S, D)

    # --- graph construction (dense, deterministic stand-in for dgl) ---------
    # adj[b, r, dst, src] = 1 if edge src->dst exists with etype r; built
    # directly in bf16 (no f32 one_hot einsum).
    present = jnp.swapaxes(mat, 1, 2) != 0                           # (B,dst,src)
    et = jnp.swapaxes(etypes, 1, 2)                                  # (B,dst,src)
    rel_ids = jnp.arange(num_rels, dtype=et.dtype)
    adj = jnp.logical_and(et[:, None] == rel_ids[None, :, None, None],
                          present[:, None]).astype(jnp.bfloat16)     # (B,R,dst,src)
    adj = adj.at[:, 0].add(jnp.eye(S, dtype=jnp.bfloat16))           # self loops, etype 0

    # --- RelGraphConv + dropout (eval: identity) -----------------------------
    gcn_out = rel_graph_conv(adj, fea, params['w_rel'],
                             params['w_loop'], params['b_rel'])      # (B,S,D)

    # --- per-sample MultiheadAttention ---------------------------------------
    attn_out, attn_w = attention_block(gcn_out, params['wqkv'], params['bqkv'],
                                       params['wo'], params['bo'],
                                       num_heads=num_heads)

    # --- flatten + MLP --------------------------------------------------------
    gcn_features = linear(attn_out.reshape(B, S * D),
                          params['w_mlp'], params['b_mlp'],
                          out_dtype=jnp.float32)                     # (B, D_out)
    attn_scores = attn_w.reshape(B * S, S)                           # (B*N, N)
    return gcn_features, attn_scores


# ----------------------------------------------------------------------------
# Deterministic parameter initialization (shapes follow the module __init__,
# scaled down: 256 -> D, 768 -> Dbert, 300 -> S).  Weights stored in bf16,
# biases / per-relation scales in f32.
# ----------------------------------------------------------------------------
def init_params(key, *, vocab, d_bert, h_lstm, d_model, num_rels, seq_len, d_out):
    ks = jax.random.split(key, 16)
    wf32 = lambda k, shape, s=0.1: (s * jax.random.normal(k, shape)).astype(jnp.float32)
    wb16 = lambda k, shape, s=0.1: (s * jax.random.normal(k, shape)).astype(jnp.bfloat16)
    H = h_lstm
    return {
        'emb':    wb16(ks[0], (vocab, d_bert)),
        'w_ih':   wb16(ks[1], (d_bert, 8 * H)),   # fused fwd|bwd input projection
        'b_ih':   wf32(ks[2], (8 * H,)),          # plays the role of b_ih + b_hh
        'whh_f':  wb16(ks[3], (H, 4 * H)),        # fused recurrent weight (one dot/step)
        'whh_b':  wb16(ks[4], (H, 4 * H)),
        'w_lin':  wb16(ks[5], (2 * H, d_model)),
        'b_lin':  wf32(ks[6], (d_model,)),
        'w_rel':  wf32(ks[7], (num_rels, d_model)),
        'w_loop': wb16(ks[8], (d_model, d_model)),
        'b_rel':  wf32(ks[9], (d_model,)),
        'wqkv':   wb16(ks[10], (d_model, 3 * d_model)),   # fused Q|K|V
        'bqkv':   wf32(ks[11], (3 * d_model,)),
        'wo':     wb16(ks[12], (d_model, d_model)),
        'bo':     wf32(ks[13], (d_model,)),
        'w_mlp':  wb16(ks[14], (seq_len * d_model, d_out)),
        'b_mlp':  wf32(ks[15], (d_out,)),
    }


if __name__ == "__main__":
    # Small, forward-consistent shapes.
    B, S = 2, 8            # batch, sequence length (= number of graph nodes)
    VOCAB = 50
    D_BERT = 16            # stand-in for BERT hidden (768)
    H_LSTM = 16            # stand-in for LSTM hidden (256); BiLSTM -> 2*H
    D = 32                 # stand-in for model feature dim (256)
    HEADS = 4              # stand-in for 8 heads (D % HEADS == 0)
    R = 5                  # num relation types
    D_OUT = 32             # stand-in for MLP output (256)

    key = jax.random.PRNGKey(0)
    kp, k1, k2, k3, k4 = jax.random.split(key, 5)

    params = init_params(kp, vocab=VOCAB, d_bert=D_BERT, h_lstm=H_LSTM,
                         d_model=D, num_rels=R, seq_len=S, d_out=D_OUT)

    input_ids = jax.random.randint(k1, (B, S), 0, VOCAB)
    attention_mask = jnp.ones((B, S), dtype=jnp.int32)
    mat = ((jax.random.uniform(k2, (B, S, S)) < 0.35).astype(jnp.float32)
           * jax.random.uniform(k3, (B, S, S)))              # sparse weighted adjacency
    etypes = jax.random.randint(k4, (B, S, S), 0, R)         # deterministic edge types
    labels = jnp.zeros((B,), dtype=jnp.int32)                # unused, matches signature

    fwd = jax.jit(functools.partial(gcn_relation_forward,
                                    num_heads=HEADS, num_rels=R))
    gcn_features, attn_scores = fwd(params, input_ids, attention_mask,
                                    labels, mat, etypes)
    jax.block_until_ready((gcn_features, attn_scores))

    assert gcn_features.shape == (B, D_OUT)
    assert attn_scores.shape == (B * S, S)
    print("KERNEL_OK")
</pallas_src>

<mosaic_0001>
module attributes {stable_mosaic.version = 11 : i64} {
  func.func @_relgcn_kernel(%arg0: i32, %arg1: i32, %arg2: memref<1x1x8x8xbf16, #tpu.memory_space<vmem>>, %arg3: memref<1x8x32xbf16, #tpu.memory_space<vmem>>, %arg4: memref<1x1x32xf32, #tpu.memory_space<vmem>>, %arg5: memref<32x32xbf16, #tpu.memory_space<vmem>>, %arg6: memref<1x32xf32, #tpu.memory_space<vmem>>, %arg7: memref<1x8x32xbf16, #tpu.memory_space<vmem>>, %arg8: memref<8x32xf32, #tpu.memory_space<vmem>>) attributes {dimension_semantics = [#tpu.dimension_semantics<parallel>, #tpu.dimension_semantics<arbitrary>], iteration_bounds = array<i64: 2, 5>, scalar_prefetch = 0 : i64, scratch_operands = 1 : i64, tpu.core_type = #tpu.core_type<tc>, window_params = [{transform_indices = @transform_0, window_bounds = array<i64: 1, 1, 8, 8>}, {transform_indices = @transform_1, window_bounds = array<i64: 1, 8, 32>}, {transform_indices = @transform_2, window_bounds = array<i64: 1, 1, 32>}, {pipeline_mode = #tpu.pipeline_mode<synchronous>, transform_indices = @transform_3, window_bounds = array<i64: 32, 32>}, {pipeline_mode = #tpu.pipeline_mode<synchronous>, transform_indices = @transform_4, window_bounds = array<i64: 1, 32>}, {transform_indices = @transform_5, window_bounds = array<i64: 1, 8, 32>}]} {
    %c0_i32 = arith.constant 0 : i32
    %0 = arith.cmpi eq, %arg1, %c0_i32 : i32
    %1 = arith.extui %0 : i1 to i32
    %c0_i32_0 = arith.constant 0 : i32
    %2 = arith.cmpi ne, %1, %c0_i32_0 : i32
    scf.if %2 {
      %cst_15 = arith.constant 0.000000e+00 : f32
      %20 = vector.broadcast %cst_15 : f32 to vector<8x32xf32>
      %c0_16 = arith.constant 0 : index
      %c0_17 = arith.constant 0 : index
      %21 = vector.load %arg8[%c0_16, %c0_17] : memref<8x32xf32, #tpu.memory_space<vmem>>, vector<8x32xf32>
      tpu.vector_store %arg8[%c0_16, %c0_17], %20 {strides = array<i32>} : memref<8x32xf32, #tpu.memory_space<vmem>>, vector<8x32xf32>,
    } else {
    }
    %c0 = arith.constant 0 : index
    %c0_1 = arith.constant 0 : index
    %c0_2 = arith.constant 0 : index
    %3 = vector.load %arg3[%c0, %c0_1, %c0_2] : memref<1x8x32xbf16, #tpu.memory_space<vmem>>, vector<1x8x32xbf16>
    %4 = vector.shape_cast %3 : vector<1x8x32xbf16> to vector<8x32xbf16>
    %5 = arith.extf %4 : vector<8x32xbf16> to vector<8x32xf32>
    %c0_3 = arith.constant 0 : index
    %c0_4 = arith.constant 0 : index
    %c0_5 = arith.constant 0 : index
    %6 = vector.load %arg4[%c0_3, %c0_4, %c0_5] : memref<1x1x32xf32, #tpu.memory_space<vmem>>, vector<1x1x32xf32>
    %7 = vector.shape_cast %6 : vector<1x1x32xf32> to vector<1x32xf32>
    %8 = vector.broadcast %7 : vector<1x32xf32> to vector<8x32xf32>
    %9 = arith.mulf %5, %8 : vector<8x32xf32>
    %10 = arith.truncf %9 : vector<8x32xf32> to vector<8x32xbf16>
    %c0_6 = arith.constant 0 : index
    %c0_7 = arith.constant 0 : index
    %11 = vector.load %arg8[%c0_6, %c0_7] : memref<8x32xf32, #tpu.memory_space<vmem>>, vector<8x32xf32>
    %c0_8 = arith.constant 0 : index
    %c0_9 = arith.constant 0 : index
    %c0_10 = arith.constant 0 : index
    %c0_11 = arith.constant 0 : index
    %12 = vector.load %arg2[%c0_8, %c0_9, %c0_10, %c0_11] : memref<1x1x8x8xbf16, #tpu.memory_space<vmem>>, vector<1x1x8x8xbf16>
    %13 = vector.shape_cast %12 : vector<1x1x8x8xbf16> to vector<8x8xbf16>
    %cst = arith.constant dense<0.000000e+00> : vector<8x32xf32>
    %14 = tpu.matmul %13, %10, %cst {dimension_numbers = #tpu.dot_dimension_numbers<[1], [0], [0], [1], [0, 0, 1, 1], [], []>} : vector<8x8xbf16>, vector<8x32xbf16>, vector<8x32xf32> -> vector<8x32xf32>
    %15 = arith.addf %11, %14 : vector<8x32xf32>
    %c0_12 = arith.constant 0 : index
    %c0_13 = arith.constant 0 : index
    %16 = vector.load %arg8[%c0_12, %c0_13] : memref<8x32xf32, #tpu.memory_space<vmem>>, vector<8x32xf32>
    tpu.vector_store %arg8[%c0_12, %c0_13], %15 {strides = array<i32>} : memref<8x32xf32, #tpu.memory_space<vmem>>, vector<8x32xf32>,
    %c4_i32 = arith.constant 4 : i32
    %17 = arith.cmpi eq, %arg1, %c4_i32 : i32
    %18 = arith.extui %17 : i1 to i32
    %c0_i32_14 = arith.constant 0 : i32
    %19 = arith.cmpi ne, %18, %c0_i32_14 : i32
    scf.if %19 {
      %c0_15 = arith.constant 0 : index
      %c0_16 = arith.constant 0 : index
      %20 = vector.load %arg5[%c0_15, %c0_16] : memref<32x32xbf16, #tpu.memory_space<vmem>>, vector<32x32xbf16>
      %cst_17 = arith.constant dense<0.000000e+00> : vector<8x32xf32>
      %21 = tpu.matmul %4, %20, %cst_17 {dimension_numbers = #tpu.dot_dimension_numbers<[1], [0], [0], [1], [0, 0, 1, 1], [], []>} : vector<8x32xbf16>, vector<32x32xbf16>, vector<8x32xf32> -> vector<8x32xf32>
      %c0_18 = arith.constant 0 : index
      %c0_19 = arith.constant 0 : index
      %22 = vector.load %arg8[%c0_18, %c0_19] : memref<8x32xf32, #tpu.memory_space<vmem>>, vector<8x32xf32>
      %23 = arith.addf %22, %21 : vector<8x32xf32>
      %c0_20 = arith.constant 0 : index
      %c0_21 = arith.constant 0 : index
      %24 = vector.load %arg6[%c0_20, %c0_21] : memref<1x32xf32, #tpu.memory_space<vmem>>, vector<1x32xf32>
      %25 = vector.broadcast %24 : vector<1x32xf32> to vector<8x32xf32>
      %26 = arith.addf %23, %25 : vector<8x32xf32>
      %27 = arith.truncf %26 : vector<8x32xf32> to vector<8x32xbf16>
      %c0_22 = arith.constant 0 : index
      %c0_23 = arith.constant 0 : index
      %c0_24 = arith.constant 0 : index
      %28 = vector.load %arg7[%c0_22, %c0_23, %c0_24] : memref<1x8x32xbf16, #tpu.memory_space<vmem>>, vector<1x8x32xbf16>
      %29 = vector.shape_cast %28 : vector<1x8x32xbf16> to vector<8x32xbf16>
      %30 = vector.shape_cast %27 : vector<8x32xbf16> to vector<1x8x32xbf16>
      tpu.vector_store %arg7[%c0_22, %c0_23, %c0_24], %30 {strides = array<i32>} : memref<1x8x32xbf16, #tpu.memory_space<vmem>>, vector<1x8x32xbf16>,
    } else {
    }
    return
  }
  func.func @transform_0(%arg0: i32, %arg1: i32) -> (i32, i32, i32, i32) {
    %c0_i32 = arith.constant 0 : i32
    %c0_i32_0 = arith.constant 0 : i32
    %c0_i32_1 = arith.constant 0 : i32
    return %arg0, %arg1, %c0_i32, %c0_i32_0 : i32, i32, i32, i32
  }
  func.func @transform_1(%arg0: i32, %arg1: i32) -> (i32, i32, i32) {
    %c0_i32 = arith.constant 0 : i32
    %c0_i32_0 = arith.constant 0 : i32
    %c0_i32_1 = arith.constant 0 : i32
    return %arg0, %c0_i32, %c0_i32_0 : i32, i32, i32
  }
  func.func @transform_2(%arg0: i32, %arg1: i32) -> (i32, i32, i32) {
    %c0_i32 = arith.constant 0 : i32
    %c0_i32_0 = arith.constant 0 : i32
    %c0_i32_1 = arith.constant 0 : i32
    return %arg1, %c0_i32, %c0_i32_0 : i32, i32, i32
  }
  func.func @transform_3(%arg0: i32, %arg1: i32) -> (i32, i32) {
    %c0_i32 = arith.constant 0 : i32
    %c0_i32_0 = arith.constant 0 : i32
    %c0_i32_1 = arith.constant 0 : i32
    return %c0_i32, %c0_i32_0 : i32, i32
  }
  func.func @transform_4(%arg0: i32, %arg1: i32) -> (i32, i32) {
    %c0_i32 = arith.constant 0 : i32
    %c0_i32_0 = arith.constant 0 : i32
    %c0_i32_1 = arith.constant 0 : i32
    return %c0_i32, %c0_i32_0 : i32, i32
  }
  func.func @transform_5(%arg0: i32, %arg1: i32) -> (i32, i32, i32) {
    %c0_i32 = arith.constant 0 : i32
    %c0_i32_0 = arith.constant 0 : i32
    %c0_i32_1 = arith.constant 0 : i32
    return %arg0, %c0_i32, %c0_i32_0 : i32, i32, i32
  }
}

module attributes {stable_mosaic.version = 11 : i64} {
  func.func @_linear_kernel(%arg0: i32, %arg1: i32, %arg2: i32, %arg3: memref<16x16xbf16, #tpu.memory_space<vmem>>, %arg4: memref<16x128xbf16, #tpu.memory_space<vmem>>, %arg5: memref<1x128xf32, #tpu.memory_space<vmem>>, %arg6: memref<16x128xbf16, #tpu.memory_space<vmem>>, %arg7: memref<16x128xf32, #tpu.memory_space<vmem>>) attributes {dimension_semantics = [#tpu.dimension_semantics<parallel>, #tpu.dimension_semantics<parallel>, #tpu.dimension_semantics<arbitrary>], iteration_bounds = array<i64: 1, 1, 1>, scalar_prefetch = 0 : i64, scratch_operands = 1 : i64, tpu.core_type = #tpu.core_type<tc>, window_params = [{transform_indices = @transform_0, window_bounds = array<i64: 16, 16>}, {transform_indices = @transform_1, window_bounds = array<i64: 16, 128>}, {transform_indices = @transform_2, window_bounds = array<i64: 1, 128>}, {transform_indices = @transform_3, window_bounds = array<i64: 16, 128>}]} {
    %c0_i32 = arith.constant 0 : i32
    %0 = arith.cmpi eq, %arg2, %c0_i32 : i32
    %1 = arith.extui %0 : i1 to i32
    %c0_i32_0 = arith.constant 0 : i32
    %2 = arith.cmpi ne, %1, %c0_i32_0 : i32
    scf.if %2 {
      %cst_10 = arith.constant 0.000000e+00 : f32
      %12 = vector.broadcast %cst_10 : f32 to vector<16x128xf32>
      %c0_11 = arith.constant 0 : index
      %c0_12 = arith.constant 0 : index
      %13 = vector.load %arg7[%c0_11, %c0_12] : memref<16x128xf32, #tpu.memory_space<vmem>>, vector<16x128xf32>
      tpu.vector_store %arg7[%c0_11, %c0_12], %12 {strides = array<i32>} : memref<16x128xf32, #tpu.memory_space<vmem>>, vector<16x128xf32>,
    } else {
    }
    %c0 = arith.constant 0 : index
    %c0_1 = arith.constant 0 : index
    %3 = vector.load %arg7[%c0, %c0_1] : memref<16x128xf32, #tpu.memory_space<vmem>>, vector<16x128xf32>
    %c0_2 = arith.constant 0 : index
    %c0_3 = arith.constant 0 : index
    %4 = vector.load %arg3[%c0_2, %c0_3] : memref<16x16xbf16, #tpu.memory_space<vmem>>, vector<16x16xbf16>
    %c0_4 = arith.constant 0 : index
    %c0_5 = arith.constant 0 : index
    %5 = vector.load %arg4[%c0_4, %c0_5] : memref<16x128xbf16, #tpu.memory_space<vmem>>, vector<16x128xbf16>
    %cst = arith.constant dense<0.000000e+00> : vector<16x128xf32>
    %6 = tpu.matmul %4, %5, %cst {dimension_numbers = #tpu.dot_dimension_numbers<[1], [0], [0], [1], [0, 0, 1, 1], [], []>} : vector<16x16xbf16>, vector<16x128xbf16>, vector<16x128xf32> -> vector<16x128xf32>
    %7 = arith.addf %3, %6 : vector<16x128xf32>
    %c0_6 = arith.constant 0 : index
    %c0_7 = arith.constant 0 : index
    %8 = vector.load %arg7[%c0_6, %c0_7] : memref<16x128xf32, #tpu.memory_space<vmem>>, vector<16x128xf32>
    tpu.vector_store %arg7[%c0_6, %c0_7], %7 {strides = array<i32>} : memref<16x128xf32, #tpu.memory_space<vmem>>, vector<16x128xf32>,
    %c0_i32_8 = arith.constant 0 : i32
    %9 = arith.cmpi eq, %arg2, %c0_i32_8 : i32
    %10 = arith.extui %9 : i1 to i32
    %c0_i32_9 = arith.constant 0 : i32
    %11 = arith.cmpi ne, %10, %c0_i32_9 : i32
    scf.if %11 {
      %c0_10 = arith.constant 0 : index
      %c0_11 = arith.constant 0 : index
      %12 = vector.load %arg7[%c0_10, %c0_11] : memref<16x128xf32, #tpu.memory_space<vmem>>, vector<16x128xf32>
      %c0_12 = arith.constant 0 : index
      %c0_13 = arith.constant 0 : index
      %13 = vector.load %arg5[%c0_12, %c0_13] : memref<1x128xf32, #tpu.memory_space<vmem>>, vector<1x128xf32>
      %14 = vector.broadcast %13 : vector<1x128xf32> to vector<16x128xf32>
      %15 = arith.addf %12, %14 : vector<16x128xf32>
      %16 = arith.truncf %15 : vector<16x128xf32> to vector<16x128xbf16>
      %c0_14 = arith.constant 0 : index
      %c0_15 = arith.constant 0 : index
      %17 = vector.load %arg6[%c0_14, %c0_15] : memref<16x128xbf16, #tpu.memory_space<vmem>>, vector<16x128xbf16>
      tpu.vector_store %arg6[%c0_14, %c0_15], %16 {strides = array<i32>} : memref<16x128xbf16, #tpu.memory_space<vmem>>, vector<16x128xbf16>,
    } else {
    }
    return
  }
  func.func @transform_0(%arg0: i32, %arg1: i32, %arg2: i32) -> (i32, i32) {
    %c0_i32 = arith.constant 0 : i32
    return %arg0, %arg2 : i32, i32
  }
  func.func @transform_1(%arg0: i32, %arg1: i32, %arg2: i32) -> (i32, i32) {
    %c0_i32 = arith.constant 0 : i32
    return %arg2, %arg1 : i32, i32
  }
  func.func @transform_2(%arg0: i32, %arg1: i32, %arg2: i32) -> (i32, i32) {
    %c0_i32 = arith.constant 0 : i32
    %c0_i32_0 = arith.constant 0 : i32
    return %c0_i32, %arg1 : i32, i32
  }
  func.func @transform_3(%arg0: i32, %arg1: i32, %arg2: i32) -> (i32, i32) {
    %c0_i32 = arith.constant 0 : i32
    return %arg0, %arg1 : i32, i32
  }
}

module attributes {stable_mosaic.version = 11 : i64} {
  func.func @_linear_kernel(%arg0: i32, %arg1: i32, %arg2: i32, %arg3: memref<16x32xbf16, #tpu.memory_space<vmem>>, %arg4: memref<32x32xbf16, #tpu.memory_space<vmem>>, %arg5: memref<1x32xf32, #tpu.memory_space<vmem>>, %arg6: memref<16x32xbf16, #tpu.memory_space<vmem>>, %arg7: memref<16x32xf32, #tpu.memory_space<vmem>>) attributes {dimension_semantics = [#tpu.dimension_semantics<parallel>, #tpu.dimension_semantics<parallel>, #tpu.dimension_semantics<arbitrary>], iteration_bounds = array<i64: 1, 1, 1>, scalar_prefetch = 0 : i64, scratch_operands = 1 : i64, tpu.core_type = #tpu.core_type<tc>, window_params = [{transform_indices = @transform_0, window_bounds = array<i64: 16, 32>}, {transform_indices = @transform_1, window_bounds = array<i64: 32, 32>}, {transform_indices = @transform_2, window_bounds = array<i64: 1, 32>}, {transform_indices = @transform_3, window_bounds = array<i64: 16, 32>}]} {
    %c0_i32 = arith.constant 0 : i32
    %0 = arith.cmpi eq, %arg2, %c0_i32 : i32
    %1 = arith.extui %0 : i1 to i32
    %c0_i32_0 = arith.constant 0 : i32
    %2 = arith.cmpi ne, %1, %c0_i32_0 : i32
    scf.if %2 {
      %cst_10 = arith.constant 0.000000e+00 : f32
      %12 = vector.broadcast %cst_10 : f32 to vector<16x32xf32>
      %c0_11 = arith.constant 0 : index
      %c0_12 = arith.constant 0 : index
      %13 = vector.load %arg7[%c0_11, %c0_12] : memref<16x32xf32, #tpu.memory_space<vmem>>, vector<16x32xf32>
      tpu.vector_store %arg7[%c0_11, %c0_12], %12 {strides = array<i32>} : memref<16x32xf32, #tpu.memory_space<vmem>>, vector<16x32xf32>,
    } else {
    }
    %c0 = arith.constant 0 : index
    %c0_1 = arith.constant 0 : index
    %3 = vector.load %arg7[%c0, %c0_1] : memref<16x32xf32, #tpu.memory_space<vmem>>, vector<16x32xf32>
    %c0_2 = arith.constant 0 : index
    %c0_3 = arith.constant 0 : index
    %4 = vector.load %arg3[%c0_2, %c0_3] : memref<16x32xbf16, #tpu.memory_space<vmem>>, vector<16x32xbf16>
    %c0_4 = arith.constant 0 : index
    %c0_5 = arith.constant 0 : index
    %5 = vector.load %arg4[%c0_4, %c0_5] : memref<32x32xbf16, #tpu.memory_space<vmem>>, vector<32x32xbf16>
    %cst = arith.constant dense<0.000000e+00> : vector<16x32xf32>
    %6 = tpu.matmul %4, %5, %cst {dimension_numbers = #tpu.dot_dimension_numbers<[1], [0], [0], [1], [0, 0, 1, 1], [], []>} : vector<16x32xbf16>, vector<32x32xbf16>, vector<16x32xf32> -> vector<16x32xf32>
    %7 = arith.addf %3, %6 : vector<16x32xf32>
    %c0_6 = arith.constant 0 : index
    %c0_7 = arith.constant 0 : index
    %8 = vector.load %arg7[%c0_6, %c0_7] : memref<16x32xf32, #tpu.memory_space<vmem>>, vector<16x32xf32>
    tpu.vector_store %arg7[%c0_6, %c0_7], %7 {strides = array<i32>} : memref<16x32xf32, #tpu.memory_space<vmem>>, vector<16x32xf32>,
    %c0_i32_8 = arith.constant 0 : i32
    %9 = arith.cmpi eq, %arg2, %c0_i32_8 : i32
    %10 = arith.extui %9 : i1 to i32
    %c0_i32_9 = arith.constant 0 : i32
    %11 = arith.cmpi ne, %10, %c0_i32_9 : i32
    scf.if %11 {
      %c0_10 = arith.constant 0 : index
      %c0_11 = arith.constant 0 : index
      %12 = vector.load %arg7[%c0_10, %c0_11] : memref<16x32xf32, #tpu.memory_space<vmem>>, vector<16x32xf32>
      %c0_12 = arith.constant 0 : index
      %c0_13 = arith.constant 0 : index
      %13 = vector.load %arg5[%c0_12, %c0_13] : memref<1x32xf32, #tpu.memory_space<vmem>>, vector<1x32xf32>
      %14 = vector.broadcast %13 : vector<1x32xf32> to vector<16x32xf32>
      %15 = arith.addf %12, %14 : vector<16x32xf32>
      %16 = arith.truncf %15 : vector<16x32xf32> to vector<16x32xbf16>
      %c0_14 = arith.constant 0 : index
      %c0_15 = arith.constant 0 : index
      %17 = vector.load %arg6[%c0_14, %c0_15] : memref<16x32xbf16, #tpu.memory_space<vmem>>, vector<16x32xbf16>
      tpu.vector_store %arg6[%c0_14, %c0_15], %16 {strides = array<i32>} : memref<16x32xbf16, #tpu.memory_space<vmem>>, vector<16x32xbf16>,
    } else {
    }
    return
  }
  func.func @transform_0(%arg0: i32, %arg1: i32, %arg2: i32) -> (i32, i32) {
    %c0_i32 = arith.constant 0 : i32
    return %arg0, %arg2 : i32, i32
  }
  func.func @transform_1(%arg0: i32, %arg1: i32, %arg2: i32) -> (i32, i32) {
    %c0_i32 = arith.constant 0 : i32
    return %arg2, %arg1 : i32, i32
  }
  func.func @transform_2(%arg0: i32, %arg1: i32, %arg2: i32) -> (i32, i32) {
    %c0_i32 = arith.constant 0 : i32
    %c0_i32_0 = arith.constant 0 : i32
    return %c0_i32, %arg1 : i32, i32
  }
  func.func @transform_3(%arg0: i32, %arg1: i32, %arg2: i32) -> (i32, i32) {
    %c0_i32 = arith.constant 0 : i32
    return %arg0, %arg1 : i32, i32
  }
}

module attributes {stable_mosaic.version = 11 : i64} {
  func.func @_bilstm_kernel(%arg0: i32, %arg1: memref<8x2x64xbf16, #tpu.memory_space<vmem>>, %arg2: memref<8x2x64xbf16, #tpu.memory_space<vmem>>, %arg3: memref<16x64xbf16, #tpu.memory_space<vmem>>, %arg4: memref<16x64xbf16, #tpu.memory_space<vmem>>, %arg5: memref<2x8x16xbf16, #tpu.memory_space<vmem>>, %arg6: memref<2x8x16xbf16, #tpu.memory_space<vmem>>, %arg7: memref<2x16xf32, #tpu.memory_space<vmem>>, %arg8: memref<2x16xf32, #tpu.memory_space<vmem>>, %arg9: memref<2x16xf32, #tpu.memory_space<vmem>>, %arg10: memref<2x16xf32, #tpu.memory_space<vmem>>) attributes {dimension_semantics = [#tpu.dimension_semantics<arbitrary>], iteration_bounds = array<i64: 1>, scalar_prefetch = 0 : i64, scratch_operands = 4 : i64, tpu.core_type = #tpu.core_type<tc>, window_params = [{transform_indices = @transform_0, window_bounds = array<i64: 8, 2, 64>}, {transform_indices = @transform_1, window_bounds = array<i64: 8, 2, 64>}, {pipeline_mode = #tpu.pipeline_mode<synchronous>, transform_indices = @transform_2, window_bounds = array<i64: 16, 64>}, {pipeline_mode = #tpu.pipeline_mode<synchronous>, transform_indices = @transform_3, window_bounds = array<i64: 16, 64>}, {transform_indices = @transform_4, window_bounds = array<i64: 2, 8, 16>}, {transform_indices = @transform_5, window_bounds = array<i64: 2, 8, 16>}]} {
    %c0_i32 = arith.constant 0 : i32
    %0 = arith.cmpi eq, %arg0, %c0_i32 : i32
    %1 = arith.extui %0 : i1 to i32
    %c0_i32_0 = arith.constant 0 : i32
    %2 = arith.cmpi ne, %1, %c0_i32_0 : i32
    scf.if %2 {
      %cst_268 = arith.constant 0.000000e+00 : f32
      %653 = vector.broadcast %cst_268 : f32 to vector<2x16xf32>
      %c0_269 = arith.constant 0 : index
      %c0_270 = arith.constant 0 : index
      %654 = vector.load %arg7[%c0_269, %c0_270] : memref<2x16xf32, #tpu.memory_space<vmem>>, vector<2x16xf32>
      tpu.vector_store %arg7[%c0_269, %c0_270], %653 {strides = array<i32>} : memref<2x16xf32, #tpu.memory_space<vmem>>, vector<2x16xf32>,
      %cst_271 = arith.constant 0.000000e+00 : f32
      %655 = vector.broadcast %cst_271 : f32 to vector<2x16xf32>
      %c0_272 = arith.constant 0 : index
      %c0_273 = arith.constant 0 : index
      %656 = vector.load %arg8[%c0_272, %c0_273] : memref<2x16xf32, #tpu.memory_space<vmem>>, vector<2x16xf32>
      tpu.vector_store %arg8[%c0_272, %c0_273], %655 {strides = array<i32>} : memref<2x16xf32, #tpu.memory_space<vmem>>, vector<2x16xf32>,
      %cst_274 = arith.constant 0.000000e+00 : f32
      %657 = vector.broadcast %cst_274 : f32 to vector<2x16xf32>
      %c0_275 = arith.constant 0 : index
      %c0_276 = arith.constant 0 : index
      %658 = vector.load %arg9[%c0_275, %c0_276] : memref<2x16xf32, #tpu.memory_space<vmem>>, vector<2x16xf32>
      tpu.vector_store %arg9[%c0_275, %c0_276], %657 {strides = array<i32>} : memref<2x16xf32, #tpu.memory_space<vmem>>, vector<2x16xf32>,
      %cst_277 = arith.constant 0.000000e+00 : f32
      %659 = vector.broadcast %cst_277 : f32 to vector<2x16xf32>
      %c0_278 = arith.constant 0 : index
      %c0_279 = arith.constant 0 : index
      %660 = vector.load %arg10[%c0_278, %c0_279] : memref<2x16xf32, #tpu.memory_space<vmem>>, vector<2x16xf32>
      tpu.vector_store %arg10[%c0_278, %c0_279], %659 {strides = array<i32>} : memref<2x16xf32, #tpu.memory_space<vmem>>, vector<2x16xf32>,
    } else {
    }
    %c0 = arith.constant 0 : index
    %c0_1 = arith.constant 0 : index
    %3 = vector.load %arg3[%c0, %c0_1] : memref<16x64xbf16, #tpu.memory_space<vmem>>, vector<16x64xbf16>
    %c0_2 = arith.constant 0 : index
    %c0_3 = arith.constant 0 : index
    %4 = vector.load %arg4[%c0_2, %c0_3] : memref<16x64xbf16, #tpu.memory_space<vmem>>, vector<16x64xbf16>
    %c0_i32_4 = arith.constant 0 : i32
    %5 = arith.index_cast %c0_i32_4 : i32 to index
    %c0_5 = arith.constant 0 : index
    %c0_6 = arith.constant 0 : index
    %6 = vector.load %arg1[%5, %c0_5, %c0_6] : memref<8x2x64xbf16, #tpu.memory_space<vmem>>, vector<1x2x64xbf16>
    %7 = vector.shape_cast %6 : vector<1x2x64xbf16> to vector<2x64xbf16>
    %c0_7 = arith.constant 0 : index
    %c0_8 = arith.constant 0 : index
    %8 = vector.load %arg7[%c0_7, %c0_8] : memref<2x16xf32, #tpu.memory_space<vmem>>, vector<2x16xf32>
    %c0_9 = arith.constant 0 : index
    %c0_10 = arith.constant 0 : index
    %9 = vector.load %arg8[%c0_9, %c0_10] : memref<2x16xf32, #tpu.memory_space<vmem>>, vector<2x16xf32>
    %10 = arith.extf %7 : vector<2x64xbf16> to vector<2x64xf32>
    %11 = arith.truncf %8 : vector<2x16xf32> to vector<2x16xbf16>
    %cst = arith.constant dense<0.000000e+00> : vector<2x64xf32>
    %12 = tpu.matmul %11, %3, %cst {dimension_numbers = #tpu.dot_dimension_numbers<[1], [0], [0], [1], [0, 0, 1, 1], [], []>} : vector<2x16xbf16>, vector<16x64xbf16>, vector<2x64xf32> -> vector<2x64xf32>
    %13 = arith.addf %10, %12 : vector<2x64xf32>
    %14 = vector.extract_strided_slice %13 {offsets = [0, 0], sizes = [2, 16], strides = [1, 1]} : vector<2x64xf32> to vector<2x16xf32>
    %15 = arith.negf %14 : vector<2x16xf32>
    %16 = math.exp %15 : vector<2x16xf32>
    %cst_11 = arith.constant 1.000000e+00 : f32
    %17 = vector.broadcast %cst_11 : f32 to vector<2x16xf32>
    %18 = arith.addf %17, %16 : vector<2x16xf32>
    %19 = arith.divf %17, %18 : vector<2x16xf32>
    %20 = vector.extract_strided_slice %13 {offsets = [0, 16], sizes = [2, 16], strides = [1, 1]} : vector<2x64xf32> to vector<2x16xf32>
    %21 = arith.negf %20 : vector<2x16xf32>
    %22 = math.exp %21 : vector<2x16xf32>
    %cst_12 = arith.constant 1.000000e+00 : f32
    %23 = vector.broadcast %cst_12 : f32 to vector<2x16xf32>
    %24 = arith.addf %23, %22 : vector<2x16xf32>
    %25 = arith.divf %23, %24 : vector<2x16xf32>
    %26 = vector.extract_strided_slice %13 {offsets = [0, 32], sizes = [2, 16], strides = [1, 1]} : vector<2x64xf32> to vector<2x16xf32>
    %27 = math.tanh %26 : vector<2x16xf32>
    %28 = vector.extract_strided_slice %13 {offsets = [0, 48], sizes = [2, 16], strides = [1, 1]} : vector<2x64xf32> to vector<2x16xf32>
    %29 = arith.negf %28 : vector<2x16xf32>
    %30 = math.exp %29 : vector<2x16xf32>
    %cst_13 = arith.constant 1.000000e+00 : f32
    %31 = vector.broadcast %cst_13 : f32 to vector<2x16xf32>
    %32 = arith.addf %31, %30 : vector<2x16xf32>
    %33 = arith.divf %31, %32 : vector<2x16xf32>
    %34 = arith.mulf %25, %9 : vector<2x16xf32>
    %35 = arith.mulf %19, %27 : vector<2x16xf32>
    %36 = arith.addf %34, %35 : vector<2x16xf32>
    %37 = math.tanh %36 : vector<2x16xf32>
    %38 = arith.mulf %33, %37 : vector<2x16xf32>
    %c0_14 = arith.constant 0 : index
    %c0_15 = arith.constant 0 : index
    %39 = vector.load %arg7[%c0_14, %c0_15] : memref<2x16xf32, #tpu.memory_space<vmem>>, vector<2x16xf32>
    tpu.vector_store %arg7[%c0_14, %c0_15], %38 {strides = array<i32>} : memref<2x16xf32, #tpu.memory_space<vmem>>, vector<2x16xf32>,
    %c0_16 = arith.constant 0 : index
    %c0_17 = arith.constant 0 : index
    %40 = vector.load %arg8[%c0_16, %c0_17] : memref<2x16xf32, #tpu.memory_space<vmem>>, vector<2x16xf32>
    tpu.vector_store %arg8[%c0_16, %c0_17], %36 {strides = array<i32>} : memref<2x16xf32, #tpu.memory_space<vmem>>, vector<2x16xf32>,
    %41 = vector.shape_cast %38 : vector<2x16xf32> to vector<2x1x16xf32>
    %42 = arith.truncf %41 : vector<2x1x16xf32> to vector<2x1x16xbf16>
    %c0_18 = arith.constant 0 : index
    %43 = arith.index_cast %c0_i32_4 : i32 to index
    %c0_19 = arith.constant 0 : index
    %44 = vector.load %arg5[%c0_18, %43, %c0_19] : memref<2x8x16xbf16, #tpu.memory_space<vmem>>, vector<2x1x16xbf16>
    tpu.vector_store %arg5[%c0_18, %43, %c0_19], %42 {strides = array<i32>} : memref<2x8x16xbf16, #tpu.memory_space<vmem>>, vector<2x1x16xbf16>,
    %c7_i32 = arith.constant 7 : i32
    %45 = arith.subi %c7_i32, %c0_i32_4 : i32
    %46 = arith.index_cast %45 : i32 to index
    %c0_20 = arith.constant 0 : index
    %c0_21 = arith.constant 0 : index
    %47 = vector.load %arg2[%46, %c0_20, %c0_21] : memref<8x2x64xbf16, #tpu.memory_space<vmem>>, vector<1x2x64xbf16>
    %48 = vector.shape_cast %47 : vector<1x2x64xbf16> to vector<2x64xbf16>
    %c0_22 = arith.constant 0 : index
    %c0_23 = arith.constant 0 : index
    %49 = vector.load %arg9[%c0_22, %c0_23] : memref<2x16xf32, #tpu.memory_space<vmem>>, vector<2x16xf32>
    %c0_24 = arith.constant 0 : index
    %c0_25 = arith.constant 0 : index
    %50 = vector.load %arg10[%c0_24, %c0_25] : memref<2x16xf32, #tpu.memory_space<vmem>>, vector<2x16xf32>
    %51 = arith.extf %48 : vector<2x64xbf16> to vector<2x64xf32>
    %52 = arith.truncf %49 : vector<2x16xf32> to vector<2x16xbf16>
    %cst_26 = arith.constant dense<0.000000e+00> : vector<2x64xf32>
    %53 = tpu.matmul %52, %4, %cst_26 {dimension_numbers = #tpu.dot_dimension_numbers<[1], [0], [0], [1], [0, 0, 1, 1], [], []>} : vector<2x16xbf16>, vector<16x64xbf16>, vector<2x64xf32> -> vector<2x64xf32>
    %54 = arith.addf %51, %53 : vector<2x64xf32>
    %55 = vector.extract_strided_slice %54 {offsets = [0, 0], sizes = [2, 16], strides = [1, 1]} : vector<2x64xf32> to vector<2x16xf32>
    %56 = arith.negf %55 : vector<2x16xf32>
    %57 = math.exp %56 : vector<2x16xf32>
    %cst_27 = arith.constant 1.000000e+00 : f32
    %58 = vector.broadcast %cst_27 : f32 to vector<2x16xf32>
    %59 = arith.addf %58, %57 : vector<2x16xf32>
    %60 = arith.divf %58, %59 : vector<2x16xf32>
    %61 = vector.extract_strided_slice %54 {offsets = [0, 16], sizes = [2, 16], strides = [1, 1]} : vector<2x64xf32> to vector<2x16xf32>
    %62 = arith.negf %61 : vector<2x16xf32>
    %63 = math.exp %62 : vector<2x16xf32>
    %cst_28 = arith.constant 1.000000e+00 : f32
    %64 = vector.broadcast %cst_28 : f32 to vector<2x16xf32>
    %65 = arith.addf %64, %63 : vector<2x16xf32>
    %66 = arith.divf %64, %65 : vector<2x16xf32>
    %67 = vector.extract_strided_slice %54 {offsets = [0, 32], sizes = [2, 16], strides = [1, 1]} : vector<2x64xf32> to vector<2x16xf32>
    %68 = math.tanh %67 : vector<2x16xf32>
    %69 = vector.extract_strided_slice %54 {offsets = [0, 48], sizes = [2, 16], strides = [1, 1]} : vector<2x64xf32> to vector<2x16xf32>
    %70 = arith.negf %69 : vector<2x16xf32>
    %71 = math.exp %70 : vector<2x16xf32>
    %cst_29 = arith.constant 1.000000e+00 : f32
    %72 = vector.broadcast %cst_29 : f32 to vector<2x16xf32>
    %73 = arith.addf %72, %71 : vector<2x16xf32>
    %74 = arith.divf %72, %73 : vector<2x16xf32>
    %75 = arith.mulf %66, %50 : vector<2x16xf32>
    %76 = arith.mulf %60, %68 : vector<2x16xf32>
    %77 = arith.addf %75, %76 : vector<2x16xf32>
    %78 = math.tanh %77 : vector<2x16xf32>
    %79 = arith.mulf %74, %78 : vector<2x16xf32>
    %c0_30 = arith.constant 0 : index
    %c0_31 = arith.constant 0 : index
    %80 = vector.load %arg9[%c0_30, %c0_31] : memref<2x16xf32, #tpu.memory_space<vmem>>, vector<2x16xf32>
    tpu.vector_store %arg9[%c0_30, %c0_31], %79 {strides = array<i32>} : memref<2x16xf32, #tpu.memory_space<vmem>>, vector<2x16xf32>,
    %c0_32 = arith.constant 0 : index
    %c0_33 = arith.constant 0 : index
    %81 = vector.load %arg10[%c0_32, %c0_33] : memref<2x16xf32, #tpu.memory_space<vmem>>, vector<2x16xf32>
    tpu.vector_store %arg10[%c0_32, %c0_33], %77 {strides = array<i32>} : memref<2x16xf32, #tpu.memory_space<vmem>>, vector<2x16xf32>,
    %82 = vector.shape_cast %79 : vector<2x16xf32> to vector<2x1x16xf32>
    %83 = arith.truncf %82 : vector<2x1x16xf32> to vector<2x1x16xbf16>
    %c0_34 = arith.constant 0 : index
    %84 = arith.index_cast %45 : i32 to index
    %c0_35 = arith.constant 0 : index
    %85 = vector.load %arg6[%c0_34, %84, %c0_35] : memref<2x8x16xbf16, #tpu.memory_space<vmem>>, vector<2x1x16xbf16>
    tpu.vector_store %arg6[%c0_34, %84, %c0_35], %83 {strides = array<i32>} : memref<2x8x16xbf16, #tpu.memory_space<vmem>>, vector<2x1x16xbf16>,
    %c1_i32 = arith.constant 1 : i32
    %86 = arith.index_cast %c1_i32 : i32 to index
    %c0_36 = arith.constant 0 : index
    %c0_37 = arith.constant 0 : index
    %87 = vector.load %arg1[%86, %c0_36, %c0_37] : memref<8x2x64xbf16, #tpu.memory_space<vmem>>, vector<1x2x64xbf16>
    %88 = vector.shape_cast %87 : vector<1x2x64xbf16> to vector<2x64xbf16>
    %c0_38 = arith.constant 0 : index
    %c0_39 = arith.constant 0 : index
    %89 = vector.load %arg7[%c0_38, %c0_39] : memref<2x16xf32, #tpu.memory_space<vmem>>, vector<2x16xf32>
    %c0_40 = arith.constant 0 : index
    %c0_41 = arith.constant 0 : index
    %90 = vector.load %arg8[%c0_40, %c0_41] : memref<2x16xf32, #tpu.memory_space<vmem>>, vector<2x16xf32>
    %91 = arith.extf %88 : vector<2x64xbf16> to vector<2x64xf32>
    %92 = arith.truncf %89 : vector<2x16xf32> to vector<2x16xbf16>
    %cst_42 = arith.constant dense<0.000000e+00> : vector<2x64xf32>
    %93 = tpu.matmul %92, %3, %cst_42 {dimension_numbers = #tpu.dot_dimension_numbers<[1], [0], [0], [1], [0, 0, 1, 1], [], []>} : vector<2x16xbf16>, vector<16x64xbf16>, vector<2x64xf32> -> vector<2x64xf32>
    %94 = arith.addf %91, %93 : vector<2x64xf32>
    %95 = vector.extract_strided_slice %94 {offsets = [0, 0], sizes = [2, 16], strides = [1, 1]} : vector<2x64xf32> to vector<2x16xf32>
    %96 = arith.negf %95 : vector<2x16xf32>
    %97 = math.exp %96 : vector<2x16xf32>
    %cst_43 = arith.constant 1.000000e+00 : f32
    %98 = vector.broadcast %cst_43 : f32 to vector<2x16xf32>
    %99 = arith.addf %98, %97 : vector<2x16xf32>
    %100 = arith.divf %98, %99 : vector<2x16xf32>
    %101 = vector.extract_strided_slice %94 {offsets = [0, 16], sizes = [2, 16], strides = [1, 1]} : vector<2x64xf32> to vector<2x16xf32>
    %102 = arith.negf %101 : vector<2x16xf32>
    %103 = math.exp %102 : vector<2x16xf32>
    %cst_44 = arith.constant 1.000000e+00 : f32
    %104 = vector.broadcast %cst_44 : f32 to vector<2x16xf32>
    %105 = arith.addf %104, %103 : vector<2x16xf32>
    %106 = arith.divf %104, %105 : vector<2x16xf32>
    %107 = vector.extract_strided_slice %94 {offsets = [0, 32], sizes = [2, 16], strides = [1, 1]} : vector<2x64xf32> to vector<2x16xf32>
    %108 = math.tanh %107 : vector<2x16xf32>
    %109 = vector.extract_strided_slice %94 {offsets = [0, 48], sizes = [2, 16], strides = [1, 1]} : vector<2x64xf32> to vector<2x16xf32>
    %110 = arith.negf %109 : vector<2x16xf32>
    %111 = math.exp %110 : vector<2x16xf32>
    %cst_45 = arith.constant 1.000000e+00 : f32
    %112 = vector.broadcast %cst_45 : f32 to vector<2x16xf32>
    %113 = arith.addf %112, %111 : vector<2x16xf32>
    %114 = arith.divf %112, %113 : vector<2x16xf32>
    %115 = arith.mulf %106, %90 : vector<2x16xf32>
    %116 = arith.mulf %100, %108 : vector<2x16xf32>
    %117 = arith.addf %115, %116 : vector<2x16xf32>
    %118 = math.tanh %117 : vector<2x16xf32>
    %119 = arith.mulf %114, %118 : vector<2x16xf32>
    %c0_46 = arith.constant 0 : index
    %c0_47 = arith.constant 0 : index
    %120 = vector.load %arg7[%c0_46, %c0_47] : memref<2x16xf32, #tpu.memory_space<vmem>>, vector<2x16xf32>
    tpu.vector_store %arg7[%c0_46, %c0_47], %119 {strides = array<i32>} : memref<2x16xf32, #tpu.memory_space<vmem>>, vector<2x16xf32>,
    %c0_48 = arith.constant 0 : index
    %c0_49 = arith.constant 0 : index
    %121 = vector.load %arg8[%c0_48, %c0_49] : memref<2x16xf32, #tpu.memory_space<vmem>>, vector<2x16xf32>
    tpu.vector_store %arg8[%c0_48, %c0_49], %117 {strides = array<i32>} : memref<2x16xf32, #tpu.memory_space<vmem>>, vector<2x16xf32>,
    %122 = vector.shape_cast %119 : vector<2x16xf32> to vector<2x1x16xf32>
    %123 = arith.truncf %122 : vector<2x1x16xf32> to vector<2x1x16xbf16>
    %c0_50 = arith.constant 0 : index
    %124 = arith.index_cast %c1_i32 : i32 to index
    %c0_51 = arith.constant 0 : index
    %125 = vector.load %arg5[%c0_50, %124, %c0_51] : memref<2x8x16xbf16, #tpu.memory_space<vmem>>, vector<2x1x16xbf16>
    tpu.vector_store %arg5[%c0_50, %124, %c0_51], %123 {strides = array<i32>} : memref<2x8x16xbf16, #tpu.memory_space<vmem>>, vector<2x1x16xbf16>,
    %c7_i32_52 = arith.constant 7 : i32
    %126 = arith.subi %c7_i32_52, %c1_i32 : i32
    %127 = arith.index_cast %126 : i32 to index
    %c0_53 = arith.constant 0 : index
    %c0_54 = arith.constant 0 : index
    %128 = vector.load %arg2[%127, %c0_53, %c0_54] : memref<8x2x64xbf16, #tpu.memory_space<vmem>>, vector<1x2x64xbf16>
    %129 = vector.shape_cast %128 : vector<1x2x64xbf16> to vector<2x64xbf16>
    %c0_55 = arith.constant 0 : index
    %c0_56 = arith.constant 0 : index
    %130 = vector.load %arg9[%c0_55, %c0_56] : memref<2x16xf32, #tpu.memory_space<vmem>>, vector<2x16xf32>
    %c0_57 = arith.constant 0 : index
    %c0_58 = arith.constant 0 : index
    %131 = vector.load %arg10[%c0_57, %c0_58] : memref<2x16xf32, #tpu.memory_space<vmem>>, vector<2x16xf32>
    %132 = arith.extf %129 : vector<2x64xbf16> to vector<2x64xf32>
    %133 = arith.truncf %130 : vector<2x16xf32> to vector<2x16xbf16>
    %cst_59 = arith.constant dense<0.000000e+00> : vector<2x64xf32>
    %134 = tpu.matmul %133, %4, %cst_59 {dimension_numbers = #tpu.dot_dimension_numbers<[1], [0], [0], [1], [0, 0, 1, 1], [], []>} : vector<2x16xbf16>, vector<16x64xbf16>, vector<2x64xf32> -> vector<2x64xf32>
    %135 = arith.addf %132, %134 : vector<2x64xf32>
    %136 = vector.extract_strided_slice %135 {offsets = [0, 0], sizes = [2, 16], strides = [1, 1]} : vector<2x64xf32> to vector<2x16xf32>
    %137 = arith.negf %136 : vector<2x16xf32>
    %138 = math.exp %137 : vector<2x16xf32>
    %cst_60 = arith.constant 1.000000e+00 : f32
    %139 = vector.broadcast %cst_60 : f32 to vector<2x16xf32>
    %140 = arith.addf %139, %138 : vector<2x16xf32>
    %141 = arith.divf %139, %140 : vector<2x16xf32>
    %142 = vector.extract_strided_slice %135 {offsets = [0, 16], sizes = [2, 16], strides = [1, 1]} : vector<2x64xf32> to vector<2x16xf32>
    %143 = arith.negf %142 : vector<2x16xf32>
    %144 = math.exp %143 : vector<2x16xf32>
    %cst_61 = arith.constant 1.000000e+00 : f32
    %145 = vector.broadcast %cst_61 : f32 to vector<2x16xf32>
    %146 = arith.addf %145, %144 : vector<2x16xf32>
    %147 = arith.divf %145, %146 : vector<2x16xf32>
    %148 = vector.extract_strided_slice %135 {offsets = [0, 32], sizes = [2, 16], strides = [1, 1]} : vector<2x64xf32> to vector<2x16xf32>
    %149 = math.tanh %148 : vector<2x16xf32>
    %150 = vector.extract_strided_slice %135 {offsets = [0, 48], sizes = [2, 16], strides = [1, 1]} : vector<2x64xf32> to vector<2x16xf32>
    %151 = arith.negf %150 : vector<2x16xf32>
    %152 = math.exp %151 : vector<2x16xf32>
    %cst_62 = arith.constant 1.000000e+00 : f32
    %153 = vector.broadcast %cst_62 : f32 to vector<2x16xf32>
    %154 = arith.addf %153, %152 : vector<2x16xf32>
    %155 = arith.divf %153, %154 : vector<2x16xf32>
    %156 = arith.mulf %147, %131 : vector<2x16xf32>
    %157 = arith.mulf %141, %149 : vector<2x16xf32>
    %158 = arith.addf %156, %157 : vector<2x16xf32>
    %159 = math.tanh %158 : vector<2x16xf32>
    %160 = arith.mulf %155, %159 : vector<2x16xf32>
    %c0_63 = arith.constant 0 : index
    %c0_64 = arith.constant 0 : index
    %161 = vector.load %arg9[%c0_63, %c0_64] : memref<2x16xf32, #tpu.memory_space<vmem>>, vector<2x16xf32>
    tpu.vector_store %arg9[%c0_63, %c0_64], %160 {strides = array<i32>} : memref<2x16xf32, #tpu.memory_space<vmem>>, vector<2x16xf32>,
    %c0_65 = arith.constant 0 : index
    %c0_66 = arith.constant 0 : index
    %162 = vector.load %arg10[%c0_65, %c0_66] : memref<2x16xf32, #tpu.memory_space<vmem>>, vector<2x16xf32>
    tpu.vector_store %arg10[%c0_65, %c0_66], %158 {strides = array<i32>} : memref<2x16xf32, #tpu.memory_space<vmem>>, vector<2x16xf32>,
    %163 = vector.shape_cast %160 : vector<2x16xf32> to vector<2x1x16xf32>
    %164 = arith.truncf %163 : vector<2x1x16xf32> to vector<2x1x16xbf16>
    %c0_67 = arith.constant 0 : index
    %165 = arith.index_cast %126 : i32 to index
    %c0_68 = arith.constant 0 : index
    %166 = vector.load %arg6[%c0_67, %165, %c0_68] : memref<2x8x16xbf16, #tpu.memory_space<vmem>>, vector<2x1x16xbf16>
    tpu.vector_store %arg6[%c0_67, %165, %c0_68], %164 {strides = array<i32>} : memref<2x8x16xbf16, #tpu.memory_space<vmem>>, vector<2x1x16xbf16>,
    %c2_i32 = arith.constant 2 : i32
    %167 = arith.index_cast %c2_i32 : i32 to index
    %c0_69 = arith.constant 0 : index
    %c0_70 = arith.constant 0 : index
    %168 = vector.load %arg1[%167, %c0_69, %c0_70] : memref<8x2x64xbf16, #tpu.memory_space<vmem>>, vector<1x2x64xbf16>
    %169 = vector.shape_cast %168 : vector<1x2x64xbf16> to vector<2x64xbf16>
    %c0_71 = arith.constant 0 : index
    %c0_72 = arith.constant 0 : index
    %170 = vector.load %arg7[%c0_71, %c0_72] : memref<2x16xf32, #tpu.memory_space<vmem>>, vector<2x16xf32>
    %c0_73 = arith.constant 0 : index
    %c0_74 = arith.constant 0 : index
    %171 = vector.load %arg8[%c0_73, %c0_74] : memref<2x16xf32, #tpu.memory_space<vmem>>, vector<2x16xf32>
    %172 = arith.extf %169 : vector<2x64xbf16> to vector<2x64xf32>
    %173 = arith.truncf %170 : vector<2x16xf32> to vector<2x16xbf16>
    %cst_75 = arith.constant dense<0.000000e+00> : vector<2x64xf32>
    %174 = tpu.matmul %173, %3, %cst_75 {dimension_numbers = #tpu.dot_dimension_numbers<[1], [0], [0], [1], [0, 0, 1, 1], [], []>} : vector<2x16xbf16>, vector<16x64xbf16>, vector<2x64xf32> -> vector<2x64xf32>
    %175 = arith.addf %172, %174 : vector<2x64xf32>
    %176 = vector.extract_strided_slice %175 {offsets = [0, 0], sizes = [2, 16], strides = [1, 1]} : vector<2x64xf32> to vector<2x16xf32>
    %177 = arith.negf %176 : vector<2x16xf32>
    %178 = math.exp %177 : vector<2x16xf32>
    %cst_76 = arith.constant 1.000000e+00 : f32
    %179 = vector.broadcast %cst_76 : f32 to vector<2x16xf32>
    %180 = arith.addf %179, %178 : vector<2x16xf32>
    %181 = arith.divf %179, %180 : vector<2x16xf32>
    %182 = vector.extract_strided_slice %175 {offsets = [0, 16], sizes = [2, 16], strides = [1, 1]} : vector<2x64xf32> to vector<2x16xf32>
    %183 = arith.negf %182 : vector<2x16xf32>
    %184 = math.exp %183 : vector<2x16xf32>
    %cst_77 = arith.constant 1.000000e+00 : f32
    %185 = vector.broadcast %cst_77 : f32 to vector<2x16xf32>
    %186 = arith.addf %185, %184 : vector<2x16xf32>
    %187 = arith.divf %185, %186 : vector<2x16xf32>
    %188 = vector.extract_strided_slice %175 {offsets = [0, 32], sizes = [2, 16], strides = [1, 1]} : vector<2x64xf32> to vector<2x16xf32>
    %189 = math.tanh %188 : vector<2x16xf32>
    %190 = vector.extract_strided_slice %175 {offsets = [0, 48], sizes = [2, 16], strides = [1, 1]} : vector<2x64xf32> to vector<2x16xf32>
    %191 = arith.negf %190 : vector<2x16xf32>
    %192 = math.exp %191 : vector<2x16xf32>
    %cst_78 = arith.constant 1.000000e+00 : f32
    %193 = vector.broadcast %cst_78 : f32 to vector<2x16xf32>
    %194 = arith.addf %193, %192 : vector<2x16xf32>
    %195 = arith.divf %193, %194 : vector<2x16xf32>
    %196 = arith.mulf %187, %171 : vector<2x16xf32>
    %197 = arith.mulf %181, %189 : vector<2x16xf32>
    %198 = arith.addf %196, %197 : vector<2x16xf32>
    %199 = math.tanh %198 : vector<2x16xf32>
    %200 = arith.mulf %195, %199 : vector<2x16xf32>
    %c0_79 = arith.constant 0 : index
    %c0_80 = arith.constant 0 : index
    %201 = vector.load %arg7[%c0_79, %c0_80] : memref<2x16xf32, #tpu.memory_space<vmem>>, vector<2x16xf32>
    tpu.vector_store %arg7[%c0_79, %c0_80], %200 {strides = array<i32>} : memref<2x16xf32, #tpu.memory_space<vmem>>, vector<2x16xf32>,
    %c0_81 = arith.constant 0 : index
    %c0_82 = arith.constant 0 : index
    %202 = vector.load %arg8[%c0_81, %c0_82] : memref<2x16xf32, #tpu.memory_space<vmem>>, vector<2x16xf32>
    tpu.vector_store %arg8[%c0_81, %c0_82], %198 {strides = array<i32>} : memref<2x16xf32, #tpu.memory_space<vmem>>, vector<2x16xf32>,
    %203 = vector.shape_cast %200 : vector<2x16xf32> to vector<2x1x16xf32>
    %204 = arith.truncf %203 : vector<2x1x16xf32> to vector<2x1x16xbf16>
    %c0_83 = arith.constant 0 : index
    %205 = arith.index_cast %c2_i32 : i32 to index
    %c0_84 = arith.constant 0 : index
    %206 = vector.load %arg5[%c0_83, %205, %c0_84] : memref<2x8x16xbf16, #tpu.memory_space<vmem>>, vector<2x1x16xbf16>
    tpu.vector_store %arg5[%c0_83, %205, %c0_84], %204 {strides = array<i32>} : memref<2x8x16xbf16, #tpu.memory_space<vmem>>, vector<2x1x16xbf16>,
    %c7_i32_85 = arith.constant 7 : i32
    %207 = arith.subi %c7_i32_85, %c2_i32 : i32
    %208 = arith.index_cast %207 : i32 to index
    %c0_86 = arith.constant 0 : index
    %c0_87 = arith.constant 0 : index
    %209 = vector.load %arg2[%208, %c0_86, %c0_87] : memref<8x2x64xbf16, #tpu.memory_space<vmem>>, vector<1x2x64xbf16>
    %210 = vector.shape_cast %209 : vector<1x2x64xbf16> to vector<2x64xbf16>
    %c0_88 = arith.constant 0 : index
    %c0_89 = arith.constant 0 : index
    %211 = vector.load %arg9[%c0_88, %c0_89] : memref<2x16xf32, #tpu.memory_space<vmem>>, vector<2x16xf32>
    %c0_90 = arith.constant 0 : index
    %c0_91 = arith.constant 0 : index
    %212 = vector.load %arg10[%c0_90, %c0_91] : memref<2x16xf32, #tpu.memory_space<vmem>>, vector<2x16xf32>
    %213 = arith.extf %210 : vector<2x64xbf16> to vector<2x64xf32>
    %214 = arith.truncf %211 : vector<2x16xf32> to vector<2x16xbf16>
    %cst_92 = arith.constant dense<0.000000e+00> : vector<2x64xf32>
    %215 = tpu.matmul %214, %4, %cst_92 {dimension_numbers = #tpu.dot_dimension_numbers<[1], [0], [0], [1], [0, 0, 1, 1], [], []>} : vector<2x16xbf16>, vector<16x64xbf16>, vector<2x64xf32> -> vector<2x64xf32>
    %216 = arith.addf %213, %215 : vector<2x64xf32>
    %217 = vector.extract_strided_slice %216 {offsets = [0, 0], sizes = [2, 16], strides = [1, 1]} : vector<2x64xf32> to vector<2x16xf32>
    %218 = arith.negf %217 : vector<2x16xf32>
    %219 = math.exp %218 : vector<2x16xf32>
    %cst_93 = arith.constant 1.000000e+00 : f32
    %220 = vector.broadcast %cst_93 : f32 to vector<2x16xf32>
    %221 = arith.addf %220, %219 : vector<2x16xf32>
    %222 = arith.divf %220, %221 : vector<2x16xf32>
    %223 = vector.extract_strided_slice %216 {offsets = [0, 16], sizes = [2, 16], strides = [1, 1]} : vector<2x64xf32> to vector<2x16xf32>
    %224 = arith.negf %223 : vector<2x16xf32>
    %225 = math.exp %224 : vector<2x16xf32>
    %cst_94 = arith.constant 1.000000e+00 : f32
    %226 = vector.broadcast %cst_94 : f32 to vector<2x16xf32>
    %227 = arith.addf %226, %225 : vector<2x16xf32>
    %228 = arith.divf %226, %227 : vector<2x16xf32>
    %229 = vector.extract_strided_slice %216 {offsets = [0, 32], sizes = [2, 16], strides = [1, 1]} : vector<2x64xf32> to vector<2x16xf32>
    %230 = math.tanh %229 : vector<2x16xf32>
    %231 = vector.extract_strided_slice %216 {offsets = [0, 48], sizes = [2, 16], strides = [1, 1]} : vector<2x64xf32> to vector<2x16xf32>
    %232 = arith.negf %231 : vector<2x16xf32>
    %233 = math.exp %232 : vector<2x16xf32>
    %cst_95 = arith.constant 1.000000e+00 : f32
    %234 = vector.broadcast %cst_95 : f32 to vector<2x16xf32>
    %235 = arith.addf %234, %233 : vector<2x16xf32>
    %236 = arith.divf %234, %235 : vector<2x16xf32>
    %237 = arith.mulf %228, %212 : vector<2x16xf32>
    %238 = arith.mulf %222, %230 : vector<2x16xf32>
    %239 = arith.addf %237, %238 : vector<2x16xf32>
    %240 = math.tanh %239 : vector<2x16xf32>
    %241 = arith.mulf %236, %240 : vector<2x16xf32>
    %c0_96 = arith.constant 0 : index
    %c0_97 = arith.constant 0 : index
    %242 = vector.load %arg9[%c0_96, %c0_97] : memref<2x16xf32, #tpu.memory_space<vmem>>, vector<2x16xf32>
    tpu.vector_store %arg9[%c0_96, %c0_97], %241 {strides = array<i32>} : memref<2x16xf32, #tpu.memory_space<vmem>>, vector<2x16xf32>,
    %c0_98 = arith.constant 0 : index
    %c0_99 = arith.constant 0 : index
    %243 = vector.load %arg10[%c0_98, %c0_99] : memref<2x16xf32, #tpu.memory_space<vmem>>, vector<2x16xf32>
    tpu.vector_store %arg10[%c0_98, %c0_99], %239 {strides = array<i32>} : memref<2x16xf32, #tpu.memory_space<vmem>>, vector<2x16xf32>,
    %244 = vector.shape_cast %241 : vector<2x16xf32> to vector<2x1x16xf32>
    %245 = arith.truncf %244 : vector<2x1x16xf32> to vector<2x1x16xbf16>
    %c0_100 = arith.constant 0 : index
    %246 = arith.index_cast %207 : i32 to index
    %c0_101 = arith.constant 0 : index
    %247 = vector.load %arg6[%c0_100, %246, %c0_101] : memref<2x8x16xbf16, #tpu.memory_space<vmem>>, vector<2x1x16xbf16>
    tpu.vector_store %arg6[%c0_100, %246, %c0_101], %245 {strides = array<i32>} : memref<2x8x16xbf16, #tpu.memory_space<vmem>>, vector<2x1x16xbf16>,
    %c3_i32 = arith.constant 3 : i32
    %248 = arith.index_cast %c3_i32 : i32 to index
    %c0_102 = arith.constant 0 : index
    %c0_103 = arith.constant 0 : index
    %249 = vector.load %arg1[%248, %c0_102, %c0_103] : memref<8x2x64xbf16, #tpu.memory_space<vmem>>, vector<1x2x64xbf16>
    %250 = vector.shape_cast %249 : vector<1x2x64xbf16> to vector<2x64xbf16>
    %c0_104 = arith.constant 0 : index
    %c0_105 = arith.constant 0 : index
    %251 = vector.load %arg7[%c0_104, %c0_105] : memref<2x16xf32, #tpu.memory_space<vmem>>, vector<2x16xf32>
    %c0_106 = arith.constant 0 : index
    %c0_107 = arith.constant 0 : index
    %252 = vector.load %arg8[%c0_106, %c0_107] : memref<2x16xf32, #tpu.memory_space<vmem>>, vector<2x16xf32>
    %253 = arith.extf %250 : vector<2x64xbf16> to vector<2x64xf32>
    %254 = arith.truncf %251 : vector<2x16xf32> to vector<2x16xbf16>
    %cst_108 = arith.constant dense<0.000000e+00> : vector<2x64xf32>
    %255 = tpu.matmul %254, %3, %cst_108 {dimension_numbers = #tpu.dot_dimension_numbers<[1], [0], [0], [1], [0, 0, 1, 1], [], []>} : vector<2x16xbf16>, vector<16x64xbf16>, vector<2x64xf32> -> vector<2x64xf32>
    %256 = arith.addf %253, %255 : vector<2x64xf32>
    %257 = vector.extract_strided_slice %256 {offsets = [0, 0], sizes = [2, 16], strides = [1, 1]} : vector<2x64xf32> to vector<2x16xf32>
    %258 = arith.negf %257 : vector<2x16xf32>
    %259 = math.exp %258 : vector<2x16xf32>
    %cst_109 = arith.constant 1.000000e+00 : f32
    %260 = vector.broadcast %cst_109 : f32 to vector<2x16xf32>
    %261 = arith.addf %260, %259 : vector<2x16xf32>
    %262 = arith.divf %260, %261 : vector<2x16xf32>
    %263 = vector.extract_strided_slice %256 {offsets = [0, 16], sizes = [2, 16], strides = [1, 1]} : vector<2x64xf32> to vector<2x16xf32>
    %264 = arith.negf %263 : vector<2x16xf32>
    %265 = math.exp %264 : vector<2x16xf32>
    %cst_110 = arith.constant 1.000000e+00 : f32
    %266 = vector.broadcast %cst_110 : f32 to vector<2x16xf32>
    %267 = arith.addf %266, %265 : vector<2x16xf32>
    %268 = arith.divf %266, %267 : vector<2x16xf32>
    %269 = vector.extract_strided_slice %256 {offsets = [0, 32], sizes = [2, 16], strides = [1, 1]} : vector<2x64xf32> to vector<2x16xf32>
    %270 = math.tanh %269 : vector<2x16xf32>
    %271 = vector.extract_strided_slice %256 {offsets = [0, 48], sizes = [2, 16], strides = [1, 1]} : vector<2x64xf32> to vector<2x16xf32>
    %272 = arith.negf %271 : vector<2x16xf32>
    %273 = math.exp %272 : vector<2x16xf32>
    %cst_111 = arith.constant 1.000000e+00 : f32
    %274 = vector.broadcast %cst_111 : f32 to vector<2x16xf32>
    %275 = arith.addf %274, %273 : vector<2x16xf32>
    %276 = arith.divf %274, %275 : vector<2x16xf32>
    %277 = arith.mulf %268, %252 : vector<2x16xf32>
    %278 = arith.mulf %262, %270 : vector<2x16xf32>
    %279 = arith.addf %277, %278 : vector<2x16xf32>
    %280 = math.tanh %279 : vector<2x16xf32>
    %281 = arith.mulf %276, %280 : vector<2x16xf32>
    %c0_112 = arith.constant 0 : index
    %c0_113 = arith.constant 0 : index
    %282 = vector.load %arg7[%c0_112, %c0_113] : memref<2x16xf32, #tpu.memory_space<vmem>>, vector<2x16xf32>
    tpu.vector_store %arg7[%c0_112, %c0_113], %281 {strides = array<i32>} : memref<2x16xf32, #tpu.memory_space<vmem>>, vector<2x16xf32>,
    %c0_114 = arith.constant 0 : index
    %c0_115 = arith.constant 0 : index
    %283 = vector.load %arg8[%c0_114, %c0_115] : memref<2x16xf32, #tpu.memory_space<vmem>>, vector<2x16xf32>
    tpu.vector_store %arg8[%c0_114, %c0_115], %279 {strides = array<i32>} : memref<2x16xf32, #tpu.memory_space<vmem>>, vector<2x16xf32>,
    %284 = vector.shape_cast %281 : vector<2x16xf32> to vector<2x1x16xf32>
    %285 = arith.truncf %284 : vector<2x1x16xf32> to vector<2x1x16xbf16>
    %c0_116 = arith.constant 0 : index
    %286 = arith.index_cast %c3_i32 : i32 to index
    %c0_117 = arith.constant 0 : index
    %287 = vector.load %arg5[%c0_116, %286, %c0_117] : memref<2x8x16xbf16, #tpu.memory_space<vmem>>, vector<2x1x16xbf16>
    tpu.vector_store %arg5[%c0_116, %286, %c0_117], %285 {strides = array<i32>} : memref<2x8x16xbf16, #tpu.memory_space<vmem>>, vector<2x1x16xbf16>,
    %c7_i32_118 = arith.constant 7 : i32
    %288 = arith.subi %c7_i32_118, %c3_i32 : i32
    %289 = arith.index_cast %288 : i32 to index
    %c0_119 = arith.constant 0 : index
    %c0_120 = arith.constant 0 : index
    %290 = vector.load %arg2[%289, %c0_119, %c0_120] : memref<8x2x64xbf16, #tpu.memory_space<vmem>>, vector<1x2x64xbf16>
    %291 = vector.shape_cast %290 : vector<1x2x64xbf16> to vector<2x64xbf16>
    %c0_121 = arith.constant 0 : index
    %c0_122 = arith.constant 0 : index
    %292 = vector.load %arg9[%c0_121, %c0_122] : memref<2x16xf32, #tpu.memory_space<vmem>>, vector<2x16xf32>
    %c0_123 = arith.constant 0 : index
    %c0_124 = arith.constant 0 : index
    %293 = vector.load %arg10[%c0_123, %c0_124] : memref<2x16xf32, #tpu.memory_space<vmem>>, vector<2x16xf32>
    %294 = arith.extf %291 : vector<2x64xbf16> to vector<2x64xf32>
    %295 = arith.truncf %292 : vector<2x16xf32> to vector<2x16xbf16>
    %cst_125 = arith.constant dense<0.000000e+00> : vector<2x64xf32>
    %296 = tpu.matmul %295, %4, %cst_125 {dimension_numbers = #tpu.dot_dimension_numbers<[1], [0], [0], [1], [0, 0, 1, 1], [], []>} : vector<2x16xbf16>, vector<16x64xbf16>, vector<2x64xf32> -> vector<2x64xf32>
    %297 = arith.addf %294, %296 : vector<2x64xf32>
    %298 = vector.extract_strided_slice %297 {offsets = [0, 0], sizes = [2, 16], strides = [1, 1]} : vector<2x64xf32> to vector<2x16xf32>
    %299 = arith.negf %298 : vector<2x16xf32>
    %300 = math.exp %299 : vector<2x16xf32>
    %cst_126 = arith.constant 1.000000e+00 : f32
    %301 = vector.broadcast %cst_126 : f32 to vector<2x16xf32>
    %302 = arith.addf %301, %300 : vector<2x16xf32>
    %303 = arith.divf %301, %302 : vector<2x16xf32>
    %304 = vector.extract_strided_slice %297 {offsets = [0, 16], sizes = [2, 16], strides = [1, 1]} : vector<2x64xf32> to vector<2x16xf32>
    %305 = arith.negf %304 : vector<2x16xf32>
    %306 = math.exp %305 : vector<2x16xf32>
    %cst_127 = arith.constant 1.000000e+00 : f32
    %307 = vector.broadcast %cst_127 : f32 to vector<2x16xf32>
    %308 = arith.addf %307, %306 : vector<2x16xf32>
    %309 = arith.divf %307, %308 : vector<2x16xf32>
    %310 = vector.extract_strided_slice %297 {offsets = [0, 32], sizes = [2, 16], strides = [1, 1]} : vector<2x64xf32> to vector<2x16xf32>
    %311 = math.tanh %310 : vector<2x16xf32>
    %312 = vector.extract_strided_slice %297 {offsets = [0, 48], sizes = [2, 16], strides = [1, 1]} : vector<2x64xf32> to vector<2x16xf32>
    %313 = arith.negf %312 : vector<2x16xf32>
    %314 = math.exp %313 : vector<2x16xf32>
    %cst_128 = arith.constant 1.000000e+00 : f32
    %315 = vector.broadcast %cst_128 : f32 to vector<2x16xf32>
    %316 = arith.addf %315, %314 : vector<2x16xf32>
    %317 = arith.divf %315, %316 : vector<2x16xf32>
    %318 = arith.mulf %309, %293 : vector<2x16xf32>
    %319 = arith.mulf %303, %311 : vector<2x16xf32>
    %320 = arith.addf %318, %319 : vector<2x16xf32>
    %321 = math.tanh %320 : vector<2x16xf32>
    %322 = arith.mulf %317, %321 : vector<2x16xf32>
    %c0_129 = arith.constant 0 : index
    %c0_130 = arith.constant 0 : index
    %323 = vector.load %arg9[%c0_129, %c0_130] : memref<2x16xf32, #tpu.memory_space<vmem>>, vector<2x16xf32>
    tpu.vector_store %arg9[%c0_129, %c0_130], %322 {strides = array<i32>} : memref<2x16xf32, #tpu.memory_space<vmem>>, vector<2x16xf32>,
    %c0_131 = arith.constant 0 : index
    %c0_132 = arith.constant 0 : index
    %324 = vector.load %arg10[%c0_131, %c0_132] : memref<2x16xf32, #tpu.memory_space<vmem>>, vector<2x16xf32>
    tpu.vector_store %arg10[%c0_131, %c0_132], %320 {strides = array<i32>} : memref<2x16xf32, #tpu.memory_space<vmem>>, vector<2x16xf32>,
    %325 = vector.shape_cast %322 : vector<2x16xf32> to vector<2x1x16xf32>
    %326 = arith.truncf %325 : vector<2x1x16xf32> to vector<2x1x16xbf16>
    %c0_133 = arith.constant 0 : index
    %327 = arith.index_cast %288 : i32 to index
    %c0_134 = arith.constant 0 : index
    %328 = vector.load %arg6[%c0_133, %327, %c0_134] : memref<2x8x16xbf16, #tpu.memory_space<vmem>>, vector<2x1x16xbf16>
    tpu.vector_store %arg6[%c0_133, %327, %c0_134], %326 {strides = array<i32>} : memref<2x8x16xbf16, #tpu.memory_space<vmem>>, vector<2x1x16xbf16>,
    %c4_i32 = arith.constant 4 : i32
    %329 = arith.index_cast %c4_i32 : i32 to index
    %c0_135 = arith.constant 0 : index
    %c0_136 = arith.constant 0 : index
    %330 = vector.load %arg1[%329, %c0_135, %c0_136] : memref<8x2x64xbf16, #tpu.memory_space<vmem>>, vector<1x2x64xbf16>
    %331 = vector.shape_cast %330 : vector<1x2x64xbf16> to vector<2x64xbf16>
    %c0_137 = arith.constant 0 : index
    %c0_138 = arith.constant 0 : index
    %332 = vector.load %arg7[%c0_137, %c0_138] : memref<2x16xf32, #tpu.memory_space<vmem>>, vector<2x16xf32>
    %c0_139 = arith.constant 0 : index
    %c0_140 = arith.constant 0 : index
    %333 = vector.load %arg8[%c0_139, %c0_140] : memref<2x16xf32, #tpu.memory_space<vmem>>, vector<2x16xf32>
    %334 = arith.extf %331 : vector<2x64xbf16> to vector<2x64xf32>
    %335 = arith.truncf %332 : vector<2x16xf32> to vector<2x16xbf16>
    %cst_141 = arith.constant dense<0.000000e+00> : vector<2x64xf32>
    %336 = tpu.matmul %335, %3, %cst_141 {dimension_numbers = #tpu.dot_dimension_numbers<[1], [0], [0], [1], [0, 0, 1, 1], [], []>} : vector<2x16xbf16>, vector<16x64xbf16>, vector<2x64xf32> -> vector<2x64xf32>
    %337 = arith.addf %334, %336 : vector<2x64xf32>
    %338 = vector.extract_strided_slice %337 {offsets = [0, 0], sizes = [2, 16], strides = [1, 1]} : vector<2x64xf32> to vector<2x16xf32>
    %339 = arith.negf %338 : vector<2x16xf32>
    %340 = math.exp %339 : vector<2x16xf32>
    %cst_142 = arith.constant 1.000000e+00 : f32
    %341 = vector.broadcast %cst_142 : f32 to vector<2x16xf32>
    %342 = arith.addf %341, %340 : vector<2x16xf32>
    %343 = arith.divf %341, %342 : vector<2x16xf32>
    %344 = vector.extract_strided_slice %337 {offsets = [0, 16], sizes = [2, 16], strides = [1, 1]} : vector<2x64xf32> to vector<2x16xf32>
    %345 = arith.negf %344 : vector<2x16xf32>
    %346 = math.exp %345 : vector<2x16xf32>
    %cst_143 = arith.constant 1.000000e+00 : f32
    %347 = vector.broadcast %cst_143 : f32 to vector<2x16xf32>
    %348 = arith.addf %347, %346 : vector<2x16xf32>
    %349 = arith.divf %347, %348 : vector<2x16xf32>
    %350 = vector.extract_strided_slice %337 {offsets = [0, 32], sizes = [2, 16], strides = [1, 1]} : vector<2x64xf32> to vector<2x16xf32>
    %351 = math.tanh %350 : vector<2x16xf32>
    %352 = vector.extract_strided_slice %337 {offsets = [0, 48], sizes = [2, 16], strides = [1, 1]} : vector<2x64xf32> to vector<2x16xf32>
    %353 = arith.negf %352 : vector<2x16xf32>
    %354 = math.exp %353 : vector<2x16xf32>
    %cst_144 = arith.constant 1.000000e+00 : f32
    %355 = vector.broadcast %cst_144 : f32 to vector<2x16xf32>
    %356 = arith.addf %355, %354 : vector<2x16xf32>
    %357 = arith.divf %355, %356 : vector<2x16xf32>
    %358 = arith.mulf %349, %333 : vector<2x16xf32>
    %359 = arith.mulf %343, %351 : vector<2x16xf32>
    %360 = arith.addf %358, %359 : vector<2x16xf32>
    %361 = math.tanh %360 : vector<2x16xf32>
    %362 = arith.mulf %357, %361 : vector<2x16xf32>
    %c0_145 = arith.constant 0 : index
    %c0_146 = arith.constant 0 : index
    %363 = vector.load %arg7[%c0_145, %c0_146] : memref<2x16xf32, #tpu.memory_space<vmem>>, vector<2x16xf32>
    tpu.vector_store %arg7[%c0_145, %c0_146], %362 {strides = array<i32>} : memref<2x16xf32, #tpu.memory_space<vmem>>, vector<2x16xf32>,
    %c0_147 = arith.constant 0 : index
    %c0_148 = arith.constant 0 : index
    %364 = vector.load %arg8[%c0_147, %c0_148] : memref<2x16xf32, #tpu.memory_space<vmem>>, vector<2x16xf32>
    tpu.vector_store %arg8[%c0_147, %c0_148], %360 {strides = array<i32>} : memref<2x16xf32, #tpu.memory_space<vmem>>, vector<2x16xf32>,
    %365 = vector.shape_cast %362 : vector<2x16xf32> to vector<2x1x16xf32>
    %366 = arith.truncf %365 : vector<2x1x16xf32> to vector<2x1x16xbf16>
    %c0_149 = arith.constant 0 : index
    %367 = arith.index_cast %c4_i32 : i32 to index
    %c0_150 = arith.constant 0 : index
    %368 = vector.load %arg5[%c0_149, %367, %c0_150] : memref<2x8x16xbf16, #tpu.memory_space<vmem>>, vector<2x1x16xbf16>
    tpu.vector_store %arg5[%c0_149, %367, %c0_150], %366 {strides = array<i32>} : memref<2x8x16xbf16, #tpu.memory_space<vmem>>, vector<2x1x16xbf16>,
    %c7_i32_151 = arith.constant 7 : i32
    %369 = arith.subi %c7_i32_151, %c4_i32 : i32
    %370 = arith.index_cast %369 : i32 to index
    %c0_152 = arith.constant 0 : index
    %c0_153 = arith.constant 0 : index
    %371 = vector.load %arg2[%370, %c0_152, %c0_153] : memref<8x2x64xbf16, #tpu.memory_space<vmem>>, vector<1x2x64xbf16>
    %372 = vector.shape_cast %371 : vector<1x2x64xbf16> to vector<2x64xbf16>
    %c0_154 = arith.constant 0 : index
    %c0_155 = arith.constant 0 : index
    %373 = vector.load %arg9[%c0_154, %c0_155] : memref<2x16xf32, #tpu.memory_space<vmem>>, vector<2x16xf32>
    %c0_156 = arith.constant 0 : index
    %c0_157 = arith.constant 0 : index
    %374 = vector.load %arg10[%c0_156, %c0_157] : memref<2x16xf32, #tpu.memory_space<vmem>>, vector<2x16xf32>
    %375 = arith.extf %372 : vector<2x64xbf16> to vector<2x64xf32>
    %376 = arith.truncf %373 : vector<2x16xf32> to vector<2x16xbf16>
    %cst_158 = arith.constant dense<0.000000e+00> : vector<2x64xf32>
    %377 = tpu.matmul %376, %4, %cst_158 {dimension_numbers = #tpu.dot_dimension_numbers<[1], [0], [0], [1], [0, 0, 1, 1], [], []>} : vector<2x16xbf16>, vector<16x64xbf16>, vector<2x64xf32> -> vector<2x64xf32>
    %378 = arith.addf %375, %377 : vector<2x64xf32>
    %379 = vector.extract_strided_slice %378 {offsets = [0, 0], sizes = [2, 16], strides = [1, 1]} : vector<2x64xf32> to vector<2x16xf32>
    %380 = arith.negf %379 : vector<2x16xf32>
    %381 = math.exp %380 : vector<2x16xf32>
    %cst_159 = arith.constant 1.000000e+00 : f32
    %382 = vector.broadcast %cst_159 : f32 to vector<2x16xf32>
    %383 = arith.addf %382, %381 : vector<2x16xf32>
    %384 = arith.divf %382, %383 : vector<2x16xf32>
    %385 = vector.extract_strided_slice %378 {offsets = [0, 16], sizes = [2, 16], strides = [1, 1]} : vector<2x64xf32> to vector<2x16xf32>
    %386 = arith.negf %385 : vector<2x16xf32>
    %387 = math.exp %386 : vector<2x16xf32>
    %cst_160 = arith.constant 1.000000e+00 : f32
    %388 = vector.broadcast %cst_160 : f32 to vector<2x16xf32>
    %389 = arith.addf %388, %387 : vector<2x16xf32>
    %390 = arith.divf %388, %389 : vector<2x16xf32>
    %391 = vector.extract_strided_slice %378 {offsets = [0, 32], sizes = [2, 16], strides = [1, 1]} : vector<2x64xf32> to vector<2x16xf32>
    %392 = math.tanh %391 : vector<2x16xf32>
    %393 = vector.extract_strided_slice %378 {offsets = [0, 48], sizes = [2, 16], strides = [1, 1]} : vector<2x64xf32> to vector<2x16xf32>
    %394 = arith.negf %393 : vector<2x16xf32>
    %395 = math.exp %394 : vector<2x16xf32>
    %cst_161 = arith.constant 1.000000e+00 : f32
    %396 = vector.broadcast %cst_161 : f32 to vector<2x16xf32>
    %397 = arith.addf %396, %395 : vector<2x16xf32>
    %398 = arith.divf %396, %397 : vector<2x16xf32>
    %399 = arith.mulf %390, %374 : vector<2x16xf32>
    %400 = arith.mulf %384, %392 : vector<2x16xf32>
    %401 = arith.addf %399, %400 : vector<2x16xf32>
    %402 = math.tanh %401 : vector<2x16xf32>
    %403 = arith.mulf %398, %402 : vector<2x16xf32>
    %c0_162 = arith.constant 0 : index
    %c0_163 = arith.constant 0 : index
    %404 = vector.load %arg9[%c0_162, %c0_163] : memref<2x16xf32, #tpu.memory_space<vmem>>, vector<2x16xf32>
    tpu.vector_store %arg9[%c0_162, %c0_163], %403 {strides = array<i32>} : memref<2x16xf32, #tpu.memory_space<vmem>>, vector<2x16xf32>,
    %c0_164 = arith.constant 0 : index
    %c0_165 = arith.constant 0 : index
    %405 = vector.load %arg10[%c0_164, %c0_165] : memref<2x16xf32, #tpu.memory_space<vmem>>, vector<2x16xf32>
    tpu.vector_store %arg10[%c0_164, %c0_165], %401 {strides = array<i32>} : memref<2x16xf32, #tpu.memory_space<vmem>>, vector<2x16xf32>,
    %406 = vector.shape_cast %403 : vector<2x16xf32> to vector<2x1x16xf32>
    %407 = arith.truncf %406 : vector<2x1x16xf32> to vector<2x1x16xbf16>
    %c0_166 = arith.constant 0 : index
    %408 = arith.index_cast %369 : i32 to index
    %c0_167 = arith.constant 0 : index
    %409 = vector.load %arg6[%c0_166, %408, %c0_167] : memref<2x8x16xbf16, #tpu.memory_space<vmem>>, vector<2x1x16xbf16>
    tpu.vector_store %arg6[%c0_166, %408, %c0_167], %407 {strides = array<i32>} : memref<2x8x16xbf16, #tpu.memory_space<vmem>>, vector<2x1x16xbf16>,
    %c5_i32 = arith.constant 5 : i32
    %410 = arith.index_cast %c5_i32 : i32 to index
    %c0_168 = arith.constant 0 : index
    %c0_169 = arith.constant 0 : index
    %411 = vector.load %arg1[%410, %c0_168, %c0_169] : memref<8x2x64xbf16, #tpu.memory_space<vmem>>, vector<1x2x64xbf16>
    %412 = vector.shape_cast %411 : vector<1x2x64xbf16> to vector<2x64xbf16>
    %c0_170 = arith.constant 0 : index
    %c0_171 = arith.constant 0 : index
    %413 = vector.load %arg7[%c0_170, %c0_171] : memref<2x16xf32, #tpu.memory_space<vmem>>, vector<2x16xf32>
    %c0_172 = arith.constant 0 : index
    %c0_173 = arith.constant 0 : index
    %414 = vector.load %arg8[%c0_172, %c0_173] : memref<2x16xf32, #tpu.memory_space<vmem>>, vector<2x16xf32>
    %415 = arith.extf %412 : vector<2x64xbf16> to vector<2x64xf32>
    %416 = arith.truncf %413 : vector<2x16xf32> to vector<2x16xbf16>
    %cst_174 = arith.constant dense<0.000000e+00> : vector<2x64xf32>
    %417 = tpu.matmul %416, %3, %cst_174 {dimension_numbers = #tpu.dot_dimension_numbers<[1], [0], [0], [1], [0, 0, 1, 1], [], []>} : vector<2x16xbf16>, vector<16x64xbf16>, vector<2x64xf32> -> vector<2x64xf32>
    %418 = arith.addf %415, %417 : vector<2x64xf32>
    %419 = vector.extract_strided_slice %418 {offsets = [0, 0], sizes = [2, 16], strides = [1, 1]} : vector<2x64xf32> to vector<2x16xf32>
    %420 = arith.negf %419 : vector<2x16xf32>
    %421 = math.exp %420 : vector<2x16xf32>
    %cst_175 = arith.constant 1.000000e+00 : f32
    %422 = vector.broadcast %cst_175 : f32 to vector<2x16xf32>
    %423 = arith.addf %422, %421 : vector<2x16xf32>
    %424 = arith.divf %422, %423 : vector<2x16xf32>
    %425 = vector.extract_strided_slice %418 {offsets = [0, 16], sizes = [2, 16], strides = [1, 1]} : vector<2x64xf32> to vector<2x16xf32>
    %426 = arith.negf %425 : vector<2x16xf32>
    %427 = math.exp %426 : vector<2x16xf32>
    %cst_176 = arith.constant 1.000000e+00 : f32
    %428 = vector.broadcast %cst_176 : f32 to vector<2x16xf32>
    %429 = arith.addf %428, %427 : vector<2x16xf32>
    %430 = arith.divf %428, %429 : vector<2x16xf32>
    %431 = vector.extract_strided_slice %418 {offsets = [0, 32], sizes = [2, 16], strides = [1, 1]} : vector<2x64xf32> to vector<2x16xf32>
    %432 = math.tanh %431 : vector<2x16xf32>
    %433 = vector.extract_strided_slice %418 {offsets = [0, 48], sizes = [2, 16], strides = [1, 1]} : vector<2x64xf32> to vector<2x16xf32>
    %434 = arith.negf %433 : vector<2x16xf32>
    %435 = math.exp %434 : vector<2x16xf32>
    %cst_177 = arith.constant 1.000000e+00 : f32
    %436 = vector.broadcast %cst_177 : f32 to vector<2x16xf32>
    %437 = arith.addf %436, %435 : vector<2x16xf32>
    %438 = arith.divf %436, %437 : vector<2x16xf32>
    %439 = arith.mulf %430, %414 : vector<2x16xf32>
    %440 = arith.mulf %424, %432 : vector<2x16xf32>
    %441 = arith.addf %439, %440 : vector<2x16xf32>
    %442 = math.tanh %441 : vector<2x16xf32>
    %443 = arith.mulf %438, %442 : vector<2x16xf32>
    %c0_178 = arith.constant 0 : index
    %c0_179 = arith.constant 0 : index
    %444 = vector.load %arg7[%c0_178, %c0_179] : memref<2x16xf32, #tpu.memory_space<vmem>>, vector<2x16xf32>
    tpu.vector_store %arg7[%c0_178, %c0_179], %443 {strides = array<i32>} : memref<2x16xf32, #tpu.memory_space<vmem>>, vector<2x16xf32>,
    %c0_180 = arith.constant 0 : index
    %c0_181 = arith.constant 0 : index
    %445 = vector.load %arg8[%c0_180, %c0_181] : memref<2x16xf32, #tpu.memory_space<vmem>>, vector<2x16xf32>
    tpu.vector_store %arg8[%c0_180, %c0_181], %441 {strides = array<i32>} : memref<2x16xf32, #tpu.memory_space<vmem>>, vector<2x16xf32>,
    %446 = vector.shape_cast %443 : vector<2x16xf32> to vector<2x1x16xf32>
    %447 = arith.truncf %446 : vector<2x1x16xf32> to vector<2x1x16xbf16>
    %c0_182 = arith.constant 0 : index
    %448 = arith.index_cast %c5_i32 : i32 to index
    %c0_183 = arith.constant 0 : index
    %449 = vector.load %arg5[%c0_182, %448, %c0_183] : memref<2x8x16xbf16, #tpu.memory_space<vmem>>, vector<2x1x16xbf16>
    tpu.vector_store %arg5[%c0_182, %448, %c0_183], %447 {strides = array<i32>} : memref<2x8x16xbf16, #tpu.memory_space<vmem>>, vector<2x1x16xbf16>,
    %c7_i32_184 = arith.constant 7 : i32
    %450 = arith.subi %c7_i32_184, %c5_i32 : i32
    %451 = arith.index_cast %450 : i32 to index
    %c0_185 = arith.constant 0 : index
    %c0_186 = arith.constant 0 : index
    %452 = vector.load %arg2[%451, %c0_185, %c0_186] : memref<8x2x64xbf16, #tpu.memory_space<vmem>>, vector<1x2x64xbf16>
    %453 = vector.shape_cast %452 : vector<1x2x64xbf16> to vector<2x64xbf16>
    %c0_187 = arith.constant 0 : index
    %c0_188 = arith.constant 0 : index
    %454 = vector.load %arg9[%c0_187, %c0_188] : memref<2x16xf32, #tpu.memory_space<vmem>>, vector<2x16xf32>
    %c0_189 = arith.constant 0 : index
    %c0_190 = arith.constant 0 : index
    %455 = vector.load %arg10[%c0_189, %c0_190] : memref<2x16xf32, #tpu.memory_space<vmem>>, vector<2x16xf32>
    %456 = arith.extf %453 : vector<2x64xbf16> to vector<2x64xf32>
    %457 = arith.truncf %454 : vector<2x16xf32> to vector<2x16xbf16>
    %cst_191 = arith.constant dense<0.000000e+00> : vector<2x64xf32>
    %458 = tpu.matmul %457, %4, %cst_191 {dimension_numbers = #tpu.dot_dimension_numbers<[1], [0], [0], [1], [0, 0, 1, 1], [], []>} : vector<2x16xbf16>, vector<16x64xbf16>, vector<2x64xf32> -> vector<2x64xf32>
    %459 = arith.addf %456, %458 : vector<2x64xf32>
    %460 = vector.extract_strided_slice %459 {offsets = [0, 0], sizes = [2, 16], strides = [1, 1]} : vector<2x64xf32> to vector<2x16xf32>
    %461 = arith.negf %460 : vector<2x16xf32>
    %462 = math.exp %461 : vector<2x16xf32>
    %cst_192 = arith.constant 1.000000e+00 : f32
    %463 = vector.broadcast %cst_192 : f32 to vector<2x16xf32>
    %464 = arith.addf %463, %462 : vector<2x16xf32>
    %465 = arith.divf %463, %464 : vector<2x16xf32>
    %466 = vector.extract_strided_slice %459 {offsets = [0, 16], sizes = [2, 16], strides = [1, 1]} : vector<2x64xf32> to vector<2x16xf32>
    %467 = arith.negf %466 : vector<2x16xf32>
    %468 = math.exp %467 : vector<2x16xf32>
    %cst_193 = arith.constant 1.000000e+00 : f32
    %469 = vector.broadcast %cst_193 : f32 to vector<2x16xf32>
    %470 = arith.addf %469, %468 : vector<2x16xf32>
    %471 = arith.divf %469, %470 : vector<2x16xf32>
    %472 = vector.extract_strided_slice %459 {offsets = [0, 32], sizes = [2, 16], strides = [1, 1]} : vector<2x64xf32> to vector<2x16xf32>
    %473 = math.tanh %472 : vector<2x16xf32>
    %474 = vector.extract_strided_slice %459 {offsets = [0, 48], sizes = [2, 16], strides = [1, 1]} : vector<2x64xf32> to vector<2x16xf32>
    %475 = arith.negf %474 : vector<2x16xf32>
    %476 = math.exp %475 : vector<2x16xf32>
    %cst_194 = arith.constant 1.000000e+00 : f32
    %477 = vector.broadcast %cst_194 : f32 to vector<2x16xf32>
    %478 = arith.addf %477, %476 : vector<2x16xf32>
    %479 = arith.divf %477, %478 : vector<2x16xf32>
    %480 = arith.mulf %471, %455 : vector<2x16xf32>
    %481 = arith.mulf %465, %473 : vector<2x16xf32>
    %482 = arith.addf %480, %481 : vector<2x16xf32>
    %483 = math.tanh %482 : vector<2x16xf32>
    %484 = arith.mulf %479, %483 : vector<2x16xf32>
    %c0_195 = arith.constant 0 : index
    %c0_196 = arith.constant 0 : index
    %485 = vector.load %arg9[%c0_195, %c0_196] : memref<2x16xf32, #tpu.memory_space<vmem>>, vector<2x16xf32>
    tpu.vector_store %arg9[%c0_195, %c0_196], %484 {strides = array<i32>} : memref<2x16xf32, #tpu.memory_space<vmem>>, vector<2x16xf32>,
    %c0_197 = arith.constant 0 : index
    %c0_198 = arith.constant 0 : index
    %486 = vector.load %arg10[%c0_197, %c0_198] : memref<2x16xf32, #tpu.memory_space<vmem>>, vector<2x16xf32>
    tpu.vector_store %arg10[%c0_197, %c0_198], %482 {strides = array<i32>} : memref<2x16xf32, #tpu.memory_space<vmem>>, vector<2x16xf32>,
    %487 = vector.shape_cast %484 : vector<2x16xf32> to vector<2x1x16xf32>
    %488 = arith.truncf %487 : vector<2x1x16xf32> to vector<2x1x16xbf16>
    %c0_199 = arith.constant 0 : index
    %489 = arith.index_cast %450 : i32 to index
    %c0_200 = arith.constant 0 : index
    %490 = vector.load %arg6[%c0_199, %489, %c0_200] : memref<2x8x16xbf16, #tpu.memory_space<vmem>>, vector<2x1x16xbf16>
    tpu.vector_store %arg6[%c0_199, %489, %c0_200], %488 {strides = array<i32>} : memref<2x8x16xbf16, #tpu.memory_space<vmem>>, vector<2x1x16xbf16>,
    %c6_i32 = arith.constant 6 : i32
    %491 = arith.index_cast %c6_i32 : i32 to index
    %c0_201 = arith.constant 0 : index
    %c0_202 = arith.constant 0 : index
    %492 = vector.load %arg1[%491, %c0_201, %c0_202] : memref<8x2x64xbf16, #tpu.memory_space<vmem>>, vector<1x2x64xbf16>
    %493 = vector.shape_cast %492 : vector<1x2x64xbf16> to vector<2x64xbf16>
    %c0_203 = arith.constant 0 : index
    %c0_204 = arith.constant 0 : index
    %494 = vector.load %arg7[%c0_203, %c0_204] : memref<2x16xf32, #tpu.memory_space<vmem>>, vector<2x16xf32>
    %c0_205 = arith.constant 0 : index
    %c0_206 = arith.constant 0 : index
    %495 = vector.load %arg8[%c0_205, %c0_206] : memref<2x16xf32, #tpu.memory_space<vmem>>, vector<2x16xf32>
    %496 = arith.extf %493 : vector<2x64xbf16> to vector<2x64xf32>
    %497 = arith.truncf %494 : vector<2x16xf32> to vector<2x16xbf16>
    %cst_207 = arith.constant dense<0.000000e+00> : vector<2x64xf32>
    %498 = tpu.matmul %497, %3, %cst_207 {dimension_numbers = #tpu.dot_dimension_numbers<[1], [0], [0], [1], [0, 0, 1, 1], [], []>} : vector<2x16xbf16>, vector<16x64xbf16>, vector<2x64xf32> -> vector<2x64xf32>
    %499 = arith.addf %496, %498 : vector<2x64xf32>
    %500 = vector.extract_strided_slice %499 {offsets = [0, 0], sizes = [2, 16], strides = [1, 1]} : vector<2x64xf32> to vector<2x16xf32>
    %501 = arith.negf %500 : vector<2x16xf32>
    %502 = math.exp %501 : vector<2x16xf32>
    %cst_208 = arith.constant 1.000000e+00 : f32
    %503 = vector.broadcast %cst_208 : f32 to vector<2x16xf32>
    %504 = arith.addf %503, %502 : vector<2x16xf32>
    %505 = arith.divf %503, %504 : vector<2x16xf32>
    %506 = vector.extract_strided_slice %499 {offsets = [0, 16], sizes = [2, 16], strides = [1, 1]} : vector<2x64xf32> to vector<2x16xf32>
    %507 = arith.negf %506 : vector<2x16xf32>
    %508 = math.exp %507 : vector<2x16xf32>
    %cst_209 = arith.constant 1.000000e+00 : f32
    %509 = vector.broadcast %cst_209 : f32 to vector<2x16xf32>
    %510 = arith.addf %509, %508 : vector<2x16xf32>
    %511 = arith.divf %509, %510 : vector<2x16xf32>
    %512 = vector.extract_strided_slice %499 {offsets = [0, 32], sizes = [2, 16], strides = [1, 1]} : vector<2x64xf32> to vector<2x16xf32>
    %513 = math.tanh %512 : vector<2x16xf32>
    %514 = vector.extract_strided_slice %499 {offsets = [0, 48], sizes = [2, 16], strides = [1, 1]} : vector<2x64xf32> to vector<2x16xf32>
    %515 = arith.negf %514 : vector<2x16xf32>
    %516 = math.exp %515 : vector<2x16xf32>
    %cst_210 = arith.constant 1.000000e+00 : f32
    %517 = vector.broadcast %cst_210 : f32 to vector<2x16xf32>
    %518 = arith.addf %517, %516 : vector<2x16xf32>
    %519 = arith.divf %517, %518 : vector<2x16xf32>
    %520 = arith.mulf %511, %495 : vector<2x16xf32>
    %521 = arith.mulf %505, %513 : vector<2x16xf32>
    %522 = arith.addf %520, %521 : vector<2x16xf32>
    %523 = math.tanh %522 : vector<2x16xf32>
    %524 = arith.mulf %519, %523 : vector<2x16xf32>
    %c0_211 = arith.constant 0 : index
    %c0_212 = arith.constant 0 : index
    %525 = vector.load %arg7[%c0_211, %c0_212] : memref<2x16xf32, #tpu.memory_space<vmem>>, vector<2x16xf32>
    tpu.vector_store %arg7[%c0_211, %c0_212], %524 {strides = array<i32>} : memref<2x16xf32, #tpu.memory_space<vmem>>, vector<2x16xf32>,
    %c0_213 = arith.constant 0 : index
    %c0_214 = arith.constant 0 : index
    %526 = vector.load %arg8[%c0_213, %c0_214] : memref<2x16xf32, #tpu.memory_space<vmem>>, vector<2x16xf32>
    tpu.vector_store %arg8[%c0_213, %c0_214], %522 {strides = array<i32>} : memref<2x16xf32, #tpu.memory_space<vmem>>, vector<2x16xf32>,
    %527 = vector.shape_cast %524 : vector<2x16xf32> to vector<2x1x16xf32>
    %528 = arith.truncf %527 : vector<2x1x16xf32> to vector<2x1x16xbf16>
    %c0_215 = arith.constant 0 : index
    %529 = arith.index_cast %c6_i32 : i32 to index
    %c0_216 = arith.constant 0 : index
    %530 = vector.load %arg5[%c0_215, %529, %c0_216] : memref<2x8x16xbf16, #tpu.memory_space<vmem>>, vector<2x1x16xbf16>
    tpu.vector_store %arg5[%c0_215, %529, %c0_216], %528 {strides = array<i32>} : memref<2x8x16xbf16, #tpu.memory_space<vmem>>, vector<2x1x16xbf16>,
    %c7_i32_217 = arith.constant 7 : i32
    %531 = arith.subi %c7_i32_217, %c6_i32 : i32
    %532 = arith.index_cast %531 : i32 to index
    %c0_218 = arith.constant 0 : index
    %c0_219 = arith.constant 0 : index
    %533 = vector.load %arg2[%532, %c0_218, %c0_219] : memref<8x2x64xbf16, #tpu.memory_space<vmem>>, vector<1x2x64xbf16>
    %534 = vector.shape_cast %533 : vector<1x2x64xbf16> to vector<2x64xbf16>
    %c0_220 = arith.constant 0 : index
    %c0_221 = arith.constant 0 : index
    %535 = vector.load %arg9[%c0_220, %c0_221] : memref<2x16xf32, #tpu.memory_space<vmem>>, vector<2x16xf32>
    %c0_222 = arith.constant 0 : index
    %c0_223 = arith.constant 0 : index
    %536 = vector.load %arg10[%c0_222, %c0_223] : memref<2x16xf32, #tpu.memory_space<vmem>>, vector<2x16xf32>
    %537 = arith.extf %534 : vector<2x64xbf16> to vector<2x64xf32>
    %538 = arith.truncf %535 : vector<2x16xf32> to vector<2x16xbf16>
    %cst_224 = arith.constant dense<0.000000e+00> : vector<2x64xf32>
    %539 = tpu.matmul %538, %4, %cst_224 {dimension_numbers = #tpu.dot_dimension_numbers<[1], [0], [0], [1], [0, 0, 1, 1], [], []>} : vector<2x16xbf16>, vector<16x64xbf16>, vector<2x64xf32> -> vector<2x64xf32>
    %540 = arith.addf %537, %539 : vector<2x64xf32>
    %541 = vector.extract_strided_slice %540 {offsets = [0, 0], sizes = [2, 16], strides = [1, 1]} : vector<2x64xf32> to vector<2x16xf32>
    %542 = arith.negf %541 : vector<2x16xf32>
    %543 = math.exp %542 : vector<2x16xf32>
    %cst_225 = arith.constant 1.000000e+00 : f32
    %544 = vector.broadcast %cst_225 : f32 to vector<2x16xf32>
    %545 = arith.addf %544, %543 : vector<2x16xf32>
    %546 = arith.divf %544, %545 : vector<2x16xf32>
    %547 = vector.extract_strided_slice %540 {offsets = [0, 16], sizes = [2, 16], strides = [1, 1]} : vector<2x64xf32> to vector<2x16xf32>
    %548 = arith.negf %547 : vector<2x16xf32>
    %549 = math.exp %548 : vector<2x16xf32>
    %cst_226 = arith.constant 1.000000e+00 : f32
    %550 = vector.broadcast %cst_226 : f32 to vector<2x16xf32>
    %551 = arith.addf %550, %549 : vector<2x16xf32>
    %552 = arith.divf %550, %551 : vector<2x16xf32>
    %553 = vector.extract_strided_slice %540 {offsets = [0, 32], sizes = [2, 16], strides = [1, 1]} : vector<2x64xf32> to vector<2x16xf32>
    %554 = math.tanh %553 : vector<2x16xf32>
    %555 = vector.extract_strided_slice %540 {offsets = [0, 48], sizes = [2, 16], strides = [1, 1]} : vector<2x64xf32> to vector<2x16xf32>
    %556 = arith.negf %555 : vector<2x16xf32>
    %557 = math.exp %556 : vector<2x16xf32>
    %cst_227 = arith.constant 1.000000e+00 : f32
    %558 = vector.broadcast %cst_227 : f32 to vector<2x16xf32>
    %559 = arith.addf %558, %557 : vector<2x16xf32>
    %560 = arith.divf %558, %559 : vector<2x16xf32>
    %561 = arith.mulf %552, %536 : vector<2x16xf32>
    %562 = arith.mulf %546, %554 : vector<2x16xf32>
    %563 = arith.addf %561, %562 : vector<2x16xf32>
    %564 = math.tanh %563 : vector<2x16xf32>
    %565 = arith.mulf %560, %564 : vector<2x16xf32>
    %c0_228 = arith.constant 0 : index
    %c0_229 = arith.constant 0 : index
    %566 = vector.load %arg9[%c0_228, %c0_229] : memref<2x16xf32, #tpu.memory_space<vmem>>, vector<2x16xf32>
    tpu.vector_store %arg9[%c0_228, %c0_229], %565 {strides = array<i32>} : memref<2x16xf32, #tpu.memory_space<vmem>>, vector<2x16xf32>,
    %c0_230 = arith.constant 0 : index
    %c0_231 = arith.constant 0 : index
    %567 = vector.load %arg10[%c0_230, %c0_231] : memref<2x16xf32, #tpu.memory_space<vmem>>, vector<2x16xf32>
    tpu.vector_store %arg10[%c0_230, %c0_231], %563 {strides = array<i32>} : memref<2x16xf32, #tpu.memory_space<vmem>>, vector<2x16xf32>,
    %568 = vector.shape_cast %565 : vector<2x16xf32> to vector<2x1x16xf32>
    %569 = arith.truncf %568 : vector<2x1x16xf32> to vector<2x1x16xbf16>
    %c0_232 = arith.constant 0 : index
    %570 = arith.index_cast %531 : i32 to index
    %c0_233 = arith.constant 0 : index
    %571 = vector.load %arg6[%c0_232, %570, %c0_233] : memref<2x8x16xbf16, #tpu.memory_space<vmem>>, vector<2x1x16xbf16>
    tpu.vector_store %arg6[%c0_232, %570, %c0_233], %569 {strides = array<i32>} : memref<2x8x16xbf16, #tpu.memory_space<vmem>>, vector<2x1x16xbf16>,
    %c7_i32_234 = arith.constant 7 : i32
    %572 = arith.index_cast %c7_i32_234 : i32 to index
    %c0_235 = arith.constant 0 : index
    %c0_236 = arith.constant 0 : index
    %573 = vector.load %arg1[%572, %c0_235, %c0_236] : memref<8x2x64xbf16, #tpu.memory_space<vmem>>, vector<1x2x64xbf16>
    %574 = vector.shape_cast %573 : vector<1x2x64xbf16> to vector<2x64xbf16>
    %c0_237 = arith.constant 0 : index
    %c0_238 = arith.constant 0 : index
    %575 = vector.load %arg7[%c0_237, %c0_238] : memref<2x16xf32, #tpu.memory_space<vmem>>, vector<2x16xf32>
    %c0_239 = arith.constant 0 : index
    %c0_240 = arith.constant 0 : index
    %576 = vector.load %arg8[%c0_239, %c0_240] : memref<2x16xf32, #tpu.memory_space<vmem>>, vector<2x16xf32>
    %577 = arith.extf %574 : vector<2x64xbf16> to vector<2x64xf32>
    %578 = arith.truncf %575 : vector<2x16xf32> to vector<2x16xbf16>
    %cst_241 = arith.constant dense<0.000000e+00> : vector<2x64xf32>
    %579 = tpu.matmul %578, %3, %cst_241 {dimension_numbers = #tpu.dot_dimension_numbers<[1], [0], [0], [1], [0, 0, 1, 1], [], []>} : vector<2x16xbf16>, vector<16x64xbf16>, vector<2x64xf32> -> vector<2x64xf32>
    %580 = arith.addf %577, %579 : vector<2x64xf32>
    %581 = vector.extract_strided_slice %580 {offsets = [0, 0], sizes = [2, 16], strides = [1, 1]} : vector<2x64xf32> to vector<2x16xf32>
    %582 = arith.negf %581 : vector<2x16xf32>
    %583 = math.exp %582 : vector<2x16xf32>
    %cst_242 = arith.constant 1.000000e+00 : f32
    %584 = vector.broadcast %cst_242 : f32 to vector<2x16xf32>
    %585 = arith.addf %584, %583 : vector<2x16xf32>
    %586 = arith.divf %584, %585 : vector<2x16xf32>
    %587 = vector.extract_strided_slice %580 {offsets = [0, 16], sizes = [2, 16], strides = [1, 1]} : vector<2x64xf32> to vector<2x16xf32>
    %588 = arith.negf %587 : vector<2x16xf32>
    %589 = math.exp %588 : vector<2x16xf32>
    %cst_243 = arith.constant 1.000000e+00 : f32
    %590 = vector.broadcast %cst_243 : f32 to vector<2x16xf32>
    %591 = arith.addf %590, %589 : vector<2x16xf32>
    %592 = arith.divf %590, %591 : vector<2x16xf32>
    %593 = vector.extract_strided_slice %580 {offsets = [0, 32], sizes = [2, 16], strides = [1, 1]} : vector<2x64xf32> to vector<2x16xf32>
    %594 = math.tanh %593 : vector<2x16xf32>
    %595 = vector.extract_strided_slice %580 {offsets = [0, 48], sizes = [2, 16], strides = [1, 1]} : vector<2x64xf32> to vector<2x16xf32>
    %596 = arith.negf %595 : vector<2x16xf32>
    %597 = math.exp %596 : vector<2x16xf32>
    %cst_244 = arith.constant 1.000000e+00 : f32
    %598 = vector.broadcast %cst_244 : f32 to vector<2x16xf32>
    %599 = arith.addf %598, %597 : vector<2x16xf32>
    %600 = arith.divf %598, %599 : vector<2x16xf32>
    %601 = arith.mulf %592, %576 : vector<2x16xf32>
    %602 = arith.mulf %586, %594 : vector<2x16xf32>
    %603 = arith.addf %601, %602 : vector<2x16xf32>
    %604 = math.tanh %603 : vector<2x16xf32>
    %605 = arith.mulf %600, %604 : vector<2x16xf32>
    %c0_245 = arith.constant 0 : index
    %c0_246 = arith.constant 0 : index
    %606 = vector.load %arg7[%c0_245, %c0_246] : memref<2x16xf32, #tpu.memory_space<vmem>>, vector<2x16xf32>
    tpu.vector_store %arg7[%c0_245, %c0_246], %605 {strides = array<i32>} : memref<2x16xf32, #tpu.memory_space<vmem>>, vector<2x16xf32>,
    %c0_247 = arith.constant 0 : index
    %c0_248 = arith.constant 0 : index
    %607 = vector.load %arg8[%c0_247, %c0_248] : memref<2x16xf32, #tpu.memory_space<vmem>>, vector<2x16xf32>
    tpu.vector_store %arg8[%c0_247, %c0_248], %603 {strides = array<i32>} : memref<2x16xf32, #tpu.memory_space<vmem>>, vector<2x16xf32>,
    %608 = vector.shape_cast %605 : vector<2x16xf32> to vector<2x1x16xf32>
    %609 = arith.truncf %608 : vector<2x1x16xf32> to vector<2x1x16xbf16>
    %c0_249 = arith.constant 0 : index
    %610 = arith.index_cast %c7_i32_234 : i32 to index
    %c0_250 = arith.constant 0 : index
    %611 = vector.load %arg5[%c0_249, %610, %c0_250] : memref<2x8x16xbf16, #tpu.memory_space<vmem>>, vector<2x1x16xbf16>
    tpu.vector_store %arg5[%c0_249, %610, %c0_250], %609 {strides = array<i32>} : memref<2x8x16xbf16, #tpu.memory_space<vmem>>, vector<2x1x16xbf16>,
    %c7_i32_251 = arith.constant 7 : i32
    %612 = arith.subi %c7_i32_251, %c7_i32_234 : i32
    %613 = arith.index_cast %612 : i32 to index
    %c0_252 = arith.constant 0 : index
    %c0_253 = arith.constant 0 : index
    %614 = vector.load %arg2[%613, %c0_252, %c0_253] : memref<8x2x64xbf16, #tpu.memory_space<vmem>>, vector<1x2x64xbf16>
    %615 = vector.shape_cast %614 : vector<1x2x64xbf16> to vector<2x64xbf16>
    %c0_254 = arith.constant 0 : index
    %c0_255 = arith.constant 0 : index
    %616 = vector.load %arg9[%c0_254, %c0_255] : memref<2x16xf32, #tpu.memory_space<vmem>>, vector<2x16xf32>
    %c0_256 = arith.constant 0 : index
    %c0_257 = arith.constant 0 : index
    %617 = vector.load %arg10[%c0_256, %c0_257] : memref<2x16xf32, #tpu.memory_space<vmem>>, vector<2x16xf32>
    %618 = arith.extf %615 : vector<2x64xbf16> to vector<2x64xf32>
    %619 = arith.truncf %616 : vector<2x16xf32> to vector<2x16xbf16>
    %cst_258 = arith.constant dense<0.000000e+00> : vector<2x64xf32>
    %620 = tpu.matmul %619, %4, %cst_258 {dimension_numbers = #tpu.dot_dimension_numbers<[1], [0], [0], [1], [0, 0, 1, 1], [], []>} : vector<2x16xbf16>, vector<16x64xbf16>, vector<2x64xf32> -> vector<2x64xf32>
    %621 = arith.addf %618, %620 : vector<2x64xf32>
    %622 = vector.extract_strided_slice %621 {offsets = [0, 0], sizes = [2, 16], strides = [1, 1]} : vector<2x64xf32> to vector<2x16xf32>
    %623 = arith.negf %622 : vector<2x16xf32>
    %624 = math.exp %623 : vector<2x16xf32>
    %cst_259 = arith.constant 1.000000e+00 : f32
    %625 = vector.broadcast %cst_259 : f32 to vector<2x16xf32>
    %626 = arith.addf %625, %624 : vector<2x16xf32>
    %627 = arith.divf %625, %626 : vector<2x16xf32>
    %628 = vector.extract_strided_slice %621 {offsets = [0, 16], sizes = [2, 16], strides = [1, 1]} : vector<2x64xf32> to vector<2x16xf32>
    %629 = arith.negf %628 : vector<2x16xf32>
    %630 = math.exp %629 : vector<2x16xf32>
    %cst_260 = arith.constant 1.000000e+00 : f32
    %631 = vector.broadcast %cst_260 : f32 to vector<2x16xf32>
    %632 = arith.addf %631, %630 : vector<2x16xf32>
    %633 = arith.divf %631, %632 : vector<2x16xf32>
    %634 = vector.extract_strided_slice %621 {offsets = [0, 32], sizes = [2, 16], strides = [1, 1]} : vector<2x64xf32> to vector<2x16xf32>
    %635 = math.tanh %634 : vector<2x16xf32>
    %636 = vector.extract_strided_slice %621 {offsets = [0, 48], sizes = [2, 16], strides = [1, 1]} : vector<2x64xf32> to vector<2x16xf32>
    %637 = arith.negf %636 : vector<2x16xf32>
    %638 = math.exp %637 : vector<2x16xf32>
    %cst_261 = arith.constant 1.000000e+00 : f32
    %639 = vector.broadcast %cst_261 : f32 to vector<2x16xf32>
    %640 = arith.addf %639, %638 : vector<2x16xf32>
    %641 = arith.divf %639, %640 : vector<2x16xf32>
    %642 = arith.mulf %633, %617 : vector<2x16xf32>
    %643 = arith.mulf %627, %635 : vector<2x16xf32>
    %644 = arith.addf %642, %643 : vector<2x16xf32>
    %645 = math.tanh %644 : vector<2x16xf32>
    %646 = arith.mulf %641, %645 : vector<2x16xf32>
    %c0_262 = arith.constant 0 : index
    %c0_263 = arith.constant 0 : index
    %647 = vector.load %arg9[%c0_262, %c0_263] : memref<2x16xf32, #tpu.memory_space<vmem>>, vector<2x16xf32>
    tpu.vector_store %arg9[%c0_262, %c0_263], %646 {strides = array<i32>} : memref<2x16xf32, #tpu.memory_space<vmem>>, vector<2x16xf32>,
    %c0_264 = arith.constant 0 : index
    %c0_265 = arith.constant 0 : index
    %648 = vector.load %arg10[%c0_264, %c0_265] : memref<2x16xf32, #tpu.memory_space<vmem>>, vector<2x16xf32>
    tpu.vector_store %arg10[%c0_264, %c0_265], %644 {strides = array<i32>} : memref<2x16xf32, #tpu.memory_space<vmem>>, vector<2x16xf32>,
    %649 = vector.shape_cast %646 : vector<2x16xf32> to vector<2x1x16xf32>
    %650 = arith.truncf %649 : vector<2x1x16xf32> to vector<2x1x16xbf16>
    %c0_266 = arith.constant 0 : index
    %651 = arith.index_cast %612 : i32 to index
    %c0_267 = arith.constant 0 : index
    %652 = vector.load %arg6[%c0_266, %651, %c0_267] : memref<2x8x16xbf16, #tpu.memory_space<vmem>>, vector<2x1x16xbf16>
    tpu.vector_store %arg6[%c0_266, %651, %c0_267], %650 {strides = array<i32>} : memref<2x8x16xbf16, #tpu.memory_space<vmem>>, vector<2x1x16xbf16>,
    %c8_i32 = arith.constant 8 : i32
    return
  }
  func.func @transform_0(%arg0: i32) -> (i32, i32, i32) {
    %c0_i32 = arith.constant 0 : i32
    %c0_i32_0 = arith.constant 0 : i32
    %c0_i32_1 = arith.constant 0 : i32
    return %arg0, %c0_i32, %c0_i32_0 : i32, i32, i32
  }
  func.func @transform_1(%arg0: i32) -> (i32, i32, i32) {
    %c0_i32 = arith.constant 0 : i32
    %0 = arith.subi %c0_i32, %arg0 : i32
    %c0_i32_0 = arith.constant 0 : i32
    %c0_i32_1 = arith.constant 0 : i32
    %c0_i32_2 = arith.constant 0 : i32
    return %0, %c0_i32_0, %c0_i32_1 : i32, i32, i32
  }
  func.func @transform_2(%arg0: i32) -> (i32, i32) {
    %c0_i32 = arith.constant 0 : i32
    %c0_i32_0 = arith.constant 0 : i32
    %c0_i32_1 = arith.constant 0 : i32
    return %c0_i32, %c0_i32_0 : i32, i32
  }
  func.func @transform_3(%arg0: i32) -> (i32, i32) {
    %c0_i32 = arith.constant 0 : i32
    %c0_i32_0 = arith.constant 0 : i32
    %c0_i32_1 = arith.constant 0 : i32
    return %c0_i32, %c0_i32_0 : i32, i32
  }
  func.func @transform_4(%arg0: i32) -> (i32, i32, i32) {
    %c0_i32 = arith.constant 0 : i32
    %c0_i32_0 = arith.constant 0 : i32
    %c0_i32_1 = arith.constant 0 : i32
    return %c0_i32, %arg0, %c0_i32_0 : i32, i32, i32
  }
  func.func @transform_5(%arg0: i32) -> (i32, i32, i32) {
    %c0_i32 = arith.constant 0 : i32
    %0 = arith.subi %c0_i32, %arg0 : i32
    %c0_i32_0 = arith.constant 0 : i32
    %c0_i32_1 = arith.constant 0 : i32
    %c0_i32_2 = arith.constant 0 : i32
    return %c0_i32_0, %0, %c0_i32_1 : i32, i32, i32
  }
}

module attributes {stable_mosaic.version = 11 : i64} {
  func.func @_linear_kernel(%arg0: i32, %arg1: i32, %arg2: i32, %arg3: memref<16x32xbf16, #tpu.memory_space<vmem>>, %arg4: memref<32x96xbf16, #tpu.memory_space<vmem>>, %arg5: memref<1x96xf32, #tpu.memory_space<vmem>>, %arg6: memref<16x96xbf16, #tpu.memory_space<vmem>>, %arg7: memref<16x96xf32, #tpu.memory_space<vmem>>) attributes {dimension_semantics = [#tpu.dimension_semantics<parallel>, #tpu.dimension_semantics<parallel>, #tpu.dimension_semantics<arbitrary>], iteration_bounds = array<i64: 1, 1, 1>, scalar_prefetch = 0 : i64, scratch_operands = 1 : i64, tpu.core_type = #tpu.core_type<tc>, window_params = [{transform_indices = @transform_0, window_bounds = array<i64: 16, 32>}, {transform_indices = @transform_1, window_bounds = array<i64: 32, 96>}, {transform_indices = @transform_2, window_bounds = array<i64: 1, 96>}, {transform_indices = @transform_3, window_bounds = array<i64: 16, 96>}]} {
    %c0_i32 = arith.constant 0 : i32
    %0 = arith.cmpi eq, %arg2, %c0_i32 : i32
    %1 = arith.extui %0 : i1 to i32
    %c0_i32_0 = arith.constant 0 : i32
    %2 = arith.cmpi ne, %1, %c0_i32_0 : i32
    scf.if %2 {
      %cst_10 = arith.constant 0.000000e+00 : f32
      %12 = vector.broadcast %cst_10 : f32 to vector<16x96xf32>
      %c0_11 = arith.constant 0 : index
      %c0_12 = arith.constant 0 : index
      %13 = vector.load %arg7[%c0_11, %c0_12] : memref<16x96xf32, #tpu.memory_space<vmem>>, vector<16x96xf32>
      tpu.vector_store %arg7[%c0_11, %c0_12], %12 {strides = array<i32>} : memref<16x96xf32, #tpu.memory_space<vmem>>, vector<16x96xf32>,
    } else {
    }
    %c0 = arith.constant 0 : index
    %c0_1 = arith.constant 0 : index
    %3 = vector.load %arg7[%c0, %c0_1] : memref<16x96xf32, #tpu.memory_space<vmem>>, vector<16x96xf32>
    %c0_2 = arith.constant 0 : index
    %c0_3 = arith.constant 0 : index
    %4 = vector.load %arg3[%c0_2, %c0_3] : memref<16x32xbf16, #tpu.memory_space<vmem>>, vector<16x32xbf16>
    %c0_4 = arith.constant 0 : index
    %c0_5 = arith.constant 0 : index
    %5 = vector.load %arg4[%c0_4, %c0_5] : memref<32x96xbf16, #tpu.memory_space<vmem>>, vector<32x96xbf16>
    %cst = arith.constant dense<0.000000e+00> : vector<16x96xf32>
    %6 = tpu.matmul %4, %5, %cst {dimension_numbers = #tpu.dot_dimension_numbers<[1], [0], [0], [1], [0, 0, 1, 1], [], []>} : vector<16x32xbf16>, vector<32x96xbf16>, vector<16x96xf32> -> vector<16x96xf32>
    %7 = arith.addf %3, %6 : vector<16x96xf32>
    %c0_6 = arith.constant 0 : index
    %c0_7 = arith.constant 0 : index
    %8 = vector.load %arg7[%c0_6, %c0_7] : memref<16x96xf32, #tpu.memory_space<vmem>>, vector<16x96xf32>
    tpu.vector_store %arg7[%c0_6, %c0_7], %7 {strides = array<i32>} : memref<16x96xf32, #tpu.memory_space<vmem>>, vector<16x96xf32>,
    %c0_i32_8 = arith.constant 0 : i32
    %9 = arith.cmpi eq, %arg2, %c0_i32_8 : i32
    %10 = arith.extui %9 : i1 to i32
    %c0_i32_9 = arith.constant 0 : i32
    %11 = arith.cmpi ne, %10, %c0_i32_9 : i32
    scf.if %11 {
      %c0_10 = arith.constant 0 : index
      %c0_11 = arith.constant 0 : index
      %12 = vector.load %arg7[%c0_10, %c0_11] : memref<16x96xf32, #tpu.memory_space<vmem>>, vector<16x96xf32>
      %c0_12 = arith.constant 0 : index
      %c0_13 = arith.constant 0 : index
      %13 = vector.load %arg5[%c0_12, %c0_13] : memref<1x96xf32, #tpu.memory_space<vmem>>, vector<1x96xf32>
      %14 = vector.broadcast %13 : vector<1x96xf32> to vector<16x96xf32>
      %15 = arith.addf %12, %14 : vector<16x96xf32>
      %16 = arith.truncf %15 : vector<16x96xf32> to vector<16x96xbf16>
      %c0_14 = arith.constant 0 : index
      %c0_15 = arith.constant 0 : index
      %17 = vector.load %arg6[%c0_14, %c0_15] : memref<16x96xbf16, #tpu.memory_space<vmem>>, vector<16x96xbf16>
      tpu.vector_store %arg6[%c0_14, %c0_15], %16 {strides = array<i32>} : memref<16x96xbf16, #tpu.memory_space<vmem>>, vector<16x96xbf16>,
    } else {
    }
    return
  }
  func.func @transform_0(%arg0: i32, %arg1: i32, %arg2: i32) -> (i32, i32) {
    %c0_i32 = arith.constant 0 : i32
    return %arg0, %arg2 : i32, i32
  }
  func.func @transform_1(%arg0: i32, %arg1: i32, %arg2: i32) -> (i32, i32) {
    %c0_i32 = arith.constant 0 : i32
    return %arg2, %arg1 : i32, i32
  }
  func.func @transform_2(%arg0: i32, %arg1: i32, %arg2: i32) -> (i32, i32) {
    %c0_i32 = arith.constant 0 : i32
    %c0_i32_0 = arith.constant 0 : i32
    return %c0_i32, %arg1 : i32, i32
  }
  func.func @transform_3(%arg0: i32, %arg1: i32, %arg2: i32) -> (i32, i32) {
    %c0_i32 = arith.constant 0 : i32
    return %arg0, %arg1 : i32, i32
  }
}

module attributes {stable_mosaic.version = 11 : i64} {
  func.func @_attn_core_kernel(%arg0: i32, %arg1: memref<1x4x8x8xbf16, #tpu.memory_space<vmem>>, %arg2: memref<1x4x8x8xbf16, #tpu.memory_space<vmem>>, %arg3: memref<1x4x8x8xbf16, #tpu.memory_space<vmem>>, %arg4: memref<1x8x32xbf16, #tpu.memory_space<vmem>>, %arg5: memref<1x8x8xf32, #tpu.memory_space<vmem>>) attributes {dimension_semantics = [#tpu.dimension_semantics<parallel>], iteration_bounds = array<i64: 2>, scalar_prefetch = 0 : i64, scratch_operands = 0 : i64, tpu.core_type = #tpu.core_type<tc>, window_params = [{transform_indices = @transform_0, window_bounds = array<i64: 1, 4, 8, 8>}, {transform_indices = @transform_1, window_bounds = array<i64: 1, 4, 8, 8>}, {transform_indices = @transform_2, window_bounds = array<i64: 1, 4, 8, 8>}, {transform_indices = @transform_3, window_bounds = array<i64: 1, 8, 32>}, {transform_indices = @transform_4, window_bounds = array<i64: 1, 8, 8>}]} {
    %c0 = arith.constant 0 : index
    %c0_0 = arith.constant 0 : index
    %c0_1 = arith.constant 0 : index
    %c0_2 = arith.constant 0 : index
    %0 = vector.load %arg1[%c0, %c0_0, %c0_1, %c0_2] : memref<1x4x8x8xbf16, #tpu.memory_space<vmem>>, vector<1x4x8x8xbf16>
    %1 = vector.shape_cast %0 : vector<1x4x8x8xbf16> to vector<4x8x8xbf16>
    %c0_3 = arith.constant 0 : index
    %c0_4 = arith.constant 0 : index
    %c0_5 = arith.constant 0 : index
    %c0_6 = arith.constant 0 : index
    %2 = vector.load %arg2[%c0_3, %c0_4, %c0_5, %c0_6] : memref<1x4x8x8xbf16, #tpu.memory_space<vmem>>, vector<1x4x8x8xbf16>
    %3 = vector.shape_cast %2 : vector<1x4x8x8xbf16> to vector<4x8x8xbf16>
    %c0_7 = arith.constant 0 : index
    %c0_8 = arith.constant 0 : index
    %c0_9 = arith.constant 0 : index
    %c0_10 = arith.constant 0 : index
    %4 = vector.load %arg3[%c0_7, %c0_8, %c0_9, %c0_10] : memref<1x4x8x8xbf16, #tpu.memory_space<vmem>>, vector<1x4x8x8xbf16>
    %5 = vector.shape_cast %4 : vector<1x4x8x8xbf16> to vector<4x8x8xbf16>
    "tpu.trace_start"() <{level = 10 : i32, message = "hqd,hdk->hqk"}> : () -> ()
    %cst = arith.constant dense<0.000000e+00> : vector<4x8x8xf32>
    %6 = tpu.matmul %1, %3, %cst {dimension_numbers = #tpu.dot_dimension_numbers<[2], [1], [1], [2], [0, 0, 0, 1, 1, 2], [0], [0]>} : vector<4x8x8xbf16>, vector<4x8x8xbf16>, vector<4x8x8xf32> -> vector<4x8x8xf32>
    "tpu.trace_stop"() : () -> ()
    %cst_11 = arith.constant 0.353553385 : f32
    %7 = vector.broadcast %cst_11 : f32 to vector<4x8x8xf32>
    %8 = arith.mulf %6, %7 : vector<4x8x8xf32>
    %cst_12 = arith.constant dense<0xFF800000> : vector<4x8xf32>
    %9 = vector.multi_reduction <maximumf>, %8, %cst_12 [2] : vector<4x8x8xf32> to vector<4x8xf32>
    %10 = vector.shape_cast %9 : vector<4x8xf32> to vector<4x8x1xf32>
    %11 = vector.broadcast %10 : vector<4x8x1xf32> to vector<4x8x8xf32>
    %12 = arith.subf %8, %11 : vector<4x8x8xf32>
    %13 = math.exp %12 : vector<4x8x8xf32>
    %cst_13 = arith.constant dense<0.000000e+00> : vector<4x8xf32>
    %14 = vector.multi_reduction <add>, %13, %cst_13 [2] : vector<4x8x8xf32> to vector<4x8xf32>
    %15 = vector.shape_cast %14 : vector<4x8xf32> to vector<4x8x1xf32>
    %16 = vector.broadcast %15 : vector<4x8x1xf32> to vector<4x8x8xf32>
    %17 = arith.divf %13, %16 : vector<4x8x8xf32>
    %18 = arith.truncf %17 : vector<4x8x8xf32> to vector<4x8x8xbf16>
    %19 = vector.extract_strided_slice %18 {offsets = [0, 0, 0], sizes = [1, 8, 8], strides = [1, 1, 1]} : vector<4x8x8xbf16> to vector<1x8x8xbf16>
    %20 = vector.shape_cast %19 : vector<1x8x8xbf16> to vector<8x8xbf16>
    %21 = vector.extract_strided_slice %5 {offsets = [0, 0, 0], sizes = [1, 8, 8], strides = [1, 1, 1]} : vector<4x8x8xbf16> to vector<1x8x8xbf16>
    %22 = vector.shape_cast %21 : vector<1x8x8xbf16> to vector<8x8xbf16>
    %cst_14 = arith.constant dense<0.000000e+00> : vector<8x8xf32>
    %23 = tpu.matmul %20, %22, %cst_14 {dimension_numbers = #tpu.dot_dimension_numbers<[1], [0], [0], [1], [0, 0, 1, 1], [], []>} : vector<8x8xbf16>, vector<8x8xbf16>, vector<8x8xf32> -> vector<8x8xf32>
    %24 = arith.truncf %23 : vector<8x8xf32> to vector<8x8xbf16>
    %c0_15 = arith.constant 0 : index
    %c0_16 = arith.constant 0 : index
    %c0_17 = arith.constant 0 : index
    %25 = vector.load %arg4[%c0_15, %c0_16, %c0_17] : memref<1x8x32xbf16, #tpu.memory_space<vmem>>, vector<1x8x8xbf16>
    %26 = vector.shape_cast %25 : vector<1x8x8xbf16> to vector<8x8xbf16>
    %27 = vector.shape_cast %24 : vector<8x8xbf16> to vector<1x8x8xbf16>
    tpu.vector_store %arg4[%c0_15, %c0_16, %c0_17], %27 {strides = array<i32>} : memref<1x8x32xbf16, #tpu.memory_space<vmem>>, vector<1x8x8xbf16>,
    %28 = vector.extract_strided_slice %18 {offsets = [1, 0, 0], sizes = [1, 8, 8], strides = [1, 1, 1]} : vector<4x8x8xbf16> to vector<1x8x8xbf16>
    %29 = vector.shape_cast %28 : vector<1x8x8xbf16> to vector<8x8xbf16>
    %30 = vector.extract_strided_slice %5 {offsets = [1, 0, 0], sizes = [1, 8, 8], strides = [1, 1, 1]} : vector<4x8x8xbf16> to vector<1x8x8xbf16>
    %31 = vector.shape_cast %30 : vector<1x8x8xbf16> to vector<8x8xbf16>
    %cst_18 = arith.constant dense<0.000000e+00> : vector<8x8xf32>
    %32 = tpu.matmul %29, %31, %cst_18 {dimension_numbers = #tpu.dot_dimension_numbers<[1], [0], [0], [1], [0, 0, 1, 1], [], []>} : vector<8x8xbf16>, vector<8x8xbf16>, vector<8x8xf32> -> vector<8x8xf32>
    %33 = arith.truncf %32 : vector<8x8xf32> to vector<8x8xbf16>
    %c0_19 = arith.constant 0 : index
    %c0_20 = arith.constant 0 : index
    %c8 = arith.constant 8 : index
    %34 = vector.load %arg4[%c0_19, %c0_20, %c8] : memref<1x8x32xbf16, #tpu.memory_space<vmem>>, vector<1x8x8xbf16>
    %35 = vector.shape_cast %34 : vector<1x8x8xbf16> to vector<8x8xbf16>
    %36 = vector.shape_cast %33 : vector<8x8xbf16> to vector<1x8x8xbf16>
    tpu.vector_store %arg4[%c0_19, %c0_20, %c8], %36 {strides = array<i32>} : memref<1x8x32xbf16, #tpu.memory_space<vmem>>, vector<1x8x8xbf16>,
    %37 = vector.extract_strided_slice %18 {offsets = [2, 0, 0], sizes = [1, 8, 8], strides = [1, 1, 1]} : vector<4x8x8xbf16> to vector<1x8x8xbf16>
    %38 = vector.shape_cast %37 : vector<1x8x8xbf16> to vector<8x8xbf16>
    %39 = vector.extract_strided_slice %5 {offsets = [2, 0, 0], sizes = [1, 8, 8], strides = [1, 1, 1]} : vector<4x8x8xbf16> to vector<1x8x8xbf16>
    %40 = vector.shape_cast %39 : vector<1x8x8xbf16> to vector<8x8xbf16>
    %cst_21 = arith.constant dense<0.000000e+00> : vector<8x8xf32>
    %41 = tpu.matmul %38, %40, %cst_21 {dimension_numbers = #tpu.dot_dimension_numbers<[1], [0], [0], [1], [0, 0, 1, 1], [], []>} : vector<8x8xbf16>, vector<8x8xbf16>, vector<8x8xf32> -> vector<8x8xf32>
    %42 = arith.truncf %41 : vector<8x8xf32> to vector<8x8xbf16>
    %c0_22 = arith.constant 0 : index
    %c0_23 = arith.constant 0 : index
    %c16 = arith.constant 16 : index
    %43 = vector.load %arg4[%c0_22, %c0_23, %c16] : memref<1x8x32xbf16, #tpu.memory_space<vmem>>, vector<1x8x8xbf16>
    %44 = vector.shape_cast %43 : vector<1x8x8xbf16> to vector<8x8xbf16>
    %45 = vector.shape_cast %42 : vector<8x8xbf16> to vector<1x8x8xbf16>
    tpu.vector_store %arg4[%c0_22, %c0_23, %c16], %45 {strides = array<i32>} : memref<1x8x32xbf16, #tpu.memory_space<vmem>>, vector<1x8x8xbf16>,
    %46 = vector.extract_strided_slice %18 {offsets = [3, 0, 0], sizes = [1, 8, 8], strides = [1, 1, 1]} : vector<4x8x8xbf16> to vector<1x8x8xbf16>
    %47 = vector.shape_cast %46 : vector<1x8x8xbf16> to vector<8x8xbf16>
    %48 = vector.extract_strided_slice %5 {offsets = [3, 0, 0], sizes = [1, 8, 8], strides = [1, 1, 1]} : vector<4x8x8xbf16> to vector<1x8x8xbf16>
    %49 = vector.shape_cast %48 : vector<1x8x8xbf16> to vector<8x8xbf16>
    %cst_24 = arith.constant dense<0.000000e+00> : vector<8x8xf32>
    %50 = tpu.matmul %47, %49, %cst_24 {dimension_numbers = #tpu.dot_dimension_numbers<[1], [0], [0], [1], [0, 0, 1, 1], [], []>} : vector<8x8xbf16>, vector<8x8xbf16>, vector<8x8xf32> -> vector<8x8xf32>
    %51 = arith.truncf %50 : vector<8x8xf32> to vector<8x8xbf16>
    %c0_25 = arith.constant 0 : index
    %c0_26 = arith.constant 0 : index
    %c24 = arith.constant 24 : index
    %52 = vector.load %arg4[%c0_25, %c0_26, %c24] : memref<1x8x32xbf16, #tpu.memory_space<vmem>>, vector<1x8x8xbf16>
    %53 = vector.shape_cast %52 : vector<1x8x8xbf16> to vector<8x8xbf16>
    %54 = vector.shape_cast %51 : vector<8x8xbf16> to vector<1x8x8xbf16>
    tpu.vector_store %arg4[%c0_25, %c0_26, %c24], %54 {strides = array<i32>} : memref<1x8x32xbf16, #tpu.memory_space<vmem>>, vector<1x8x8xbf16>,
    %cst_27 = arith.constant dense<0.000000e+00> : vector<8x8xf32>
    %55 = vector.multi_reduction <add>, %17, %cst_27 [0] : vector<4x8x8xf32> to vector<8x8xf32>
    %cst_28 = arith.constant 4.000000e+00 : f32
    %56 = vector.broadcast %cst_28 : f32 to vector<8x8xf32>
    %57 = arith.divf %55, %56 : vector<8x8xf32>
    %c0_29 = arith.constant 0 : index
    %c0_30 = arith.constant 0 : index
    %c0_31 = arith.constant 0 : index
    %58 = vector.load %arg5[%c0_29, %c0_30, %c0_31] : memref<1x8x8xf32, #tpu.memory_space<vmem>>, vector<1x8x8xf32>
    %59 = vector.shape_cast %58 : vector<1x8x8xf32> to vector<8x8xf32>
    %60 = vector.shape_cast %57 : vector<8x8xf32> to vector<1x8x8xf32>
    tpu.vector_store %arg5[%c0_29, %c0_30, %c0_31], %60 {strides = array<i32>} : memref<1x8x8xf32, #tpu.memory_space<vmem>>, vector<1x8x8xf32>,
    return
  }
  func.func @transform_0(%arg0: i32) -> (i32, i32, i32, i32) {
    %c0_i32 = arith.constant 0 : i32
    %c0_i32_0 = arith.constant 0 : i32
    %c0_i32_1 = arith.constant 0 : i32
    %c0_i32_2 = arith.constant 0 : i32
    return %arg0, %c0_i32, %c0_i32_0, %c0_i32_1 : i32, i32, i32, i32
  }
  func.func @transform_1(%arg0: i32) -> (i32, i32, i32, i32) {
    %c0_i32 = arith.constant 0 : i32
    %c0_i32_0 = arith.constant 0 : i32
    %c0_i32_1 = arith.constant 0 : i32
    %c0_i32_2 = arith.constant 0 : i32
    return %arg0, %c0_i32, %c0_i32_0, %c0_i32_1 : i32, i32, i32, i32
  }
  func.func @transform_2(%arg0: i32) -> (i32, i32, i32, i32) {
    %c0_i32 = arith.constant 0 : i32
    %c0_i32_0 = arith.constant 0 : i32
    %c0_i32_1 = arith.constant 0 : i32
    %c0_i32_2 = arith.constant 0 : i32
    return %arg0, %c0_i32, %c0_i32_0, %c0_i32_1 : i32, i32, i32, i32
  }
  func.func @transform_3(%arg0: i32) -> (i32, i32, i32) {
    %c0_i32 = arith.constant 0 : i32
    %c0_i32_0 = arith.constant 0 : i32
    %c0_i32_1 = arith.constant 0 : i32
    return %arg0, %c0_i32, %c0_i32_0 : i32, i32, i32
  }
  func.func @transform_4(%arg0: i32) -> (i32, i32, i32) {
    %c0_i32 = arith.constant 0 : i32
    %c0_i32_0 = arith.constant 0 : i32
    %c0_i32_1 = arith.constant 0 : i32
    return %arg0, %c0_i32, %c0_i32_0 : i32, i32, i32
  }
}

module attributes {stable_mosaic.version = 11 : i64} {
  func.func @_linear_kernel(%arg0: i32, %arg1: i32, %arg2: i32, %arg3: memref<8x256xbf16, #tpu.memory_space<vmem>>, %arg4: memref<256x32xbf16, #tpu.memory_space<vmem>>, %arg5: memref<1x32xf32, #tpu.memory_space<vmem>>, %arg6: memref<8x32xf32, #tpu.memory_space<vmem>>, %arg7: memref<8x32xf32, #tpu.memory_space<vmem>>) attributes {dimension_semantics = [#tpu.dimension_semantics<parallel>, #tpu.dimension_semantics<parallel>, #tpu.dimension_semantics<arbitrary>], iteration_bounds = array<i64: 1, 1, 1>, scalar_prefetch = 0 : i64, scratch_operands = 1 : i64, tpu.core_type = #tpu.core_type<tc>, window_params = [{transform_indices = @transform_0, window_bounds = array<i64: 8, 256>}, {transform_indices = @transform_1, window_bounds = array<i64: 256, 32>}, {transform_indices = @transform_2, window_bounds = array<i64: 1, 32>}, {transform_indices = @transform_3, window_bounds = array<i64: 8, 32>}]} {
    %c0_i32 = arith.constant 0 : i32
    %0 = arith.cmpi eq, %arg2, %c0_i32 : i32
    %1 = arith.extui %0 : i1 to i32
    %c0_i32_0 = arith.constant 0 : i32
    %2 = arith.cmpi ne, %1, %c0_i32_0 : i32
    scf.if %2 {
      %cst_10 = arith.constant 0.000000e+00 : f32
      %12 = vector.broadcast %cst_10 : f32 to vector<8x32xf32>
      %c0_11 = arith.constant 0 : index
      %c0_12 = arith.constant 0 : index
      %13 = vector.load %arg7[%c0_11, %c0_12] : memref<8x32xf32, #tpu.memory_space<vmem>>, vector<8x32xf32>
      tpu.vector_store %arg7[%c0_11, %c0_12], %12 {strides = array<i32>} : memref<8x32xf32, #tpu.memory_space<vmem>>, vector<8x32xf32>,
    } else {
    }
    %c0 = arith.constant 0 : index
    %c0_1 = arith.constant 0 : index
    %3 = vector.load %arg7[%c0, %c0_1] : memref<8x32xf32, #tpu.memory_space<vmem>>, vector<8x32xf32>
    %c0_2 = arith.constant 0 : index
    %c0_3 = arith.constant 0 : index
    %4 = vector.load %arg3[%c0_2, %c0_3] : memref<8x256xbf16, #tpu.memory_space<vmem>>, vector<8x256xbf16>
    %c0_4 = arith.constant 0 : index
    %c0_5 = arith.constant 0 : index
    %5 = vector.load %arg4[%c0_4, %c0_5] : memref<256x32xbf16, #tpu.memory_space<vmem>>, vector<256x32xbf16>
    %cst = arith.constant dense<0.000000e+00> : vector<8x32xf32>
    %6 = tpu.matmul %4, %5, %cst {dimension_numbers = #tpu.dot_dimension_numbers<[1], [0], [0], [1], [0, 0, 1, 1], [], []>} : vector<8x256xbf16>, vector<256x32xbf16>, vector<8x32xf32> -> vector<8x32xf32>
    %7 = arith.addf %3, %6 : vector<8x32xf32>
    %c0_6 = arith.constant 0 : index
    %c0_7 = arith.constant 0 : index
    %8 = vector.load %arg7[%c0_6, %c0_7] : memref<8x32xf32, #tpu.memory_space<vmem>>, vector<8x32xf32>
    tpu.vector_store %arg7[%c0_6, %c0_7], %7 {strides = array<i32>} : memref<8x32xf32, #tpu.memory_space<vmem>>, vector<8x32xf32>,
    %c0_i32_8 = arith.constant 0 : i32
    %9 = arith.cmpi eq, %arg2, %c0_i32_8 : i32
    %10 = arith.extui %9 : i1 to i32
    %c0_i32_9 = arith.constant 0 : i32
    %11 = arith.cmpi ne, %10, %c0_i32_9 : i32
    scf.if %11 {
      %c0_10 = arith.constant 0 : index
      %c0_11 = arith.constant 0 : index
      %12 = vector.load %arg7[%c0_10, %c0_11] : memref<8x32xf32, #tpu.memory_space<vmem>>, vector<8x32xf32>
      %c0_12 = arith.constant 0 : index
      %c0_13 = arith.constant 0 : index
      %13 = vector.load %arg5[%c0_12, %c0_13] : memref<1x32xf32, #tpu.memory_space<vmem>>, vector<1x32xf32>
      %14 = vector.broadcast %13 : vector<1x32xf32> to vector<8x32xf32>
      %15 = arith.addf %12, %14 : vector<8x32xf32>
      %c0_14 = arith.constant 0 : index
      %c0_15 = arith.constant 0 : index
      %16 = vector.load %arg6[%c0_14, %c0_15] : memref<8x32xf32, #tpu.memory_space<vmem>>, vector<8x32xf32>
      tpu.vector_store %arg6[%c0_14, %c0_15], %15 {strides = array<i32>} : memref<8x32xf32, #tpu.memory_space<vmem>>, vector<8x32xf32>,
    } else {
    }
    return
  }
  func.func @transform_0(%arg0: i32, %arg1: i32, %arg2: i32) -> (i32, i32) {
    %c0_i32 = arith.constant 0 : i32
    return %arg0, %arg2 : i32, i32
  }
  func.func @transform_1(%arg0: i32, %arg1: i32, %arg2: i32) -> (i32, i32) {
    %c0_i32 = arith.constant 0 : i32
    return %arg2, %arg1 : i32, i32
  }
  func.func @transform_2(%arg0: i32, %arg1: i32, %arg2: i32) -> (i32, i32) {
    %c0_i32 = arith.constant 0 : i32
    %c0_i32_0 = arith.constant 0 : i32
    return %c0_i32, %arg1 : i32, i32
  }
  func.func @transform_3(%arg0: i32, %arg1: i32, %arg2: i32) -> (i32, i32) {
    %c0_i32 = arith.constant 0 : i32
    return %arg0, %arg1 : i32, i32
  }
}

</mosaic_0001>

<bundles_post_ra>
// kernel: gcn_relation_forward.8
= control target key start
LH: loop header
LB: loop body
LE: loop exit
PB: predicated region body
PF: predicated region fallthrough
CT: control target
= control target key end

     0   :  { %v140_v0 = vmov 0.0   ;;  %vm141_vm0 = vmmov 0   ;;  %vm38_vm1 = vcmask 130048   ;;  %s174_s1 = inlined_call_operand.vmem [shape: bf16[16,128], index: 1, kind: input, shape index: {}]   ;;  %s175_s0 = inlined_call_operand.vmem [shape: bf16[16,16], index: 0, kind: input, shape index: {}]   ;;  %s176_s2 = inlined_call_operand.vmem [shape: f32[1,128], index: 2, kind: input, shape index: {}]   ;;  %s177_s3 = inlined_call_operand.vmem [shape: bf16[16,128], index: 3, kind: output, shape index: {}]  }
   0x1   :  { %130 = vmatprep.subr.bf16.mxu0 %v140_v0  ;;  %v138_v1 = vld [vmem:[%s174_s1] sm:$0xff]   ;;  %132 = vmatprep.mubr.msk.bf16.mxu0 %vm141_vm0, %v140_v0 }
   0x2   :  { %v139_v2 = vld [vmem:[%s175_s0] sm:$0xff]   ;;  %131 = vmatpush3.bf16.msra.mxu0 %v138_v1 }
   0x3   :  { %v118_v4 = vld [vmem:[%s176_s2] ss:$0 sm:$0xff] }
   0x5   :  { %133 = vmatmul.mubr.msk.bf16.vlgmr.msra.gmra.mrb[0].mxu0 %vm38_vm1, %v139_v2 }
  0xd8   :  { %v76_v3 = vpop.f32.mrb[0].mxu0 }
  0xd9   :  { %v134_v5 = vpop.f32.mrb[1].mxu0  ;;  %v99_v7 = vadd.f32 %v118_v4, %v76_v3 }
  0xda   :  { %v79_v6 = vpop.f32.mrb[2].mxu0 }
  0xdb   :  { %v100_v8 = vadd.f32 %v118_v4, %v79_v6  ;;  %v135_v9 = vpop.f32.mrb[3].mxu0 }
  0xdd   :  { %v126_v10 = vpack.c.bf16 %v100_v8, %v99_v7 }
  0xdf   :  { %127 = vst [vmem:[%s177_s3] sm:$0xff] %v126_v10  }

// kernel: gcn_relation_forward.11
= control target key start
LH: loop header
LB: loop body
LE: loop exit
PB: predicated region body
PF: predicated region fallthrough
CT: control target
= control target key end

     0   :  { %s675_s18 = smov 0   ;;  %s677_s19 = smov 0   ;;  %s752_s0 = inlined_call_operand.vmem [shape: bf16[2,5,8,8], index: 0, kind: input, shape index: {}]   ;;  %s753_s1 = inlined_call_operand.vmem [shape: bf16[2,8,32], index: 1, kind: input, shape index: {}]   ;;  %s754_s2 = inlined_call_operand.vmem [shape: f32[5,1,32], index: 2, kind: input, shape index: {}]   ;;  %s755_s3 = inlined_call_operand.vmem [shape: bf16[32,32], index: 3, kind: input, shape index: {}]   ;;  %s756_s4 = inlined_call_operand.vmem [shape: f32[1,32], index: 4, kind: input, shape index: {}]   ;;  %s757_s5 = inlined_call_operand.vmem [shape: bf16[2,8,32], index: 5, kind: output, shape index: {}]  }
   0x1   :  { %s679_s20 = smov 0   ;;  %s681_s21 = smov 0  }
   0x2   :  { %s683_s22 = smov 0  }
   0x3 LB: > { %s24_s23 = sadd.s32 1, %s630_s20  ;;  %s27_s24 = sadd.s32 1, %s634_s21  ;;  %s638_s22 = sphi %s683_s22, %s15_s22   ;;  %s634_s21 = sphi %s681_s21, %s761_s21   ;;  %s630_s20 = sphi %s679_s20, %s760_s20   ;;  %s626_s19 = sphi %s677_s19, %s759_s19   ;;  %s622_s18 = sphi %s675_s18, %s758_s18  }
   0x4   : > { %p25_p0 = scmp.ge.s32.totalorder %s24_s23, 5  ;;  %p519_p1 = scmp.ge.s32.totalorder %s638_s22, 1 }
   0x5   : > { %p221_p2 = scmp.lt.s32.totalorder %s638_s22, 11 }
   0x6   : > { %s763_s23 = smov (%p25_p0, %s24_s23), 0  ;;  %s765_s24 = smov (!%p25_p0, %s27_s24), %s634_s21 }
   0x7   : > { %p222_p3 = pnand %p519_p1, %p221_p2  ;;  %p29_p4 = scmp.ge.s32.totalorder %s765_s24, 2 }
   0x8   : > { %p258_p5 = scmp.lt.s32.totalorder (!%p222_p3), %s626_s19, 1  ;;  %p260_p6 = scmp.lt.s32.totalorder (!%p222_p3), %s622_s18, 4 }
   0x9   : > { %s767_s24 = smov (%p29_p4, %s765_s24), 0  ;;  %225 = sbr.rel (%p222_p3) target bundleno = 467 (0x1d3), region = 40 }
   0xa   : > { %p523_p7 = scmp.ne.s32.totalorder (!%p222_p3), %s622_s18, 0 }
  0x10   : > { %s769_s19 = smov (!%p258_p5, %s626_s19), 1  ;;  %281 = sbr.rel (%p523_p7) target bundleno = 23 (0x17), region = 44 }
  0x11   : > { %s261_s25 = scalar_select %p260_p6, %s622_s18, 4 }
  0x12   : > { %s552_s26 = smul.u32 5, %s769_s19  ;;  %s521_s27 = sshll.u32 %s769_s19, 2  ;;  %vm282_vm0 = vcmask (!%p523_p7), 261120   ;;  %v640_v0 = vmov (!%p523_p7), 0.0  }
  0x13   : > { %s269_s30 = scalar_lea.vmem %s753_s1, %s521_s27  ;;  %s272_s8 = scalar_lea.vmem %s754_s2, %s261_s25  ;;  %283 = vst.msk [vmem:[#allocation2] sm:$0xff] (!%p523_p7), %vm282_vm0, %v640_v0 }
  0x14   : > { %s263_s9 = sadd.s32 %s552_s26, %s261_s25  ;;  %s718_s12 = scalar_lea.vmem %s757_s5, %s521_s27 }
  0x15   : > { %s520_s13 = sshll.u32 %s263_s9, 2 }
  0x16   : > { %s265_s16 = scalar_lea.vmem %s752_s0, %s520_s13 }
  0x17 PF: > { %v284_v1 = vld [vmem:[%s269_s30] sm:$0xf]  ;;  %v641_v3 = vmov 0.0   ;;  %vm642_vm1 = vmmov 0   ;;  %vm301_vm2 = vcmask 1043456   ;;  %vm297_vm3 = vcmask 64512  }
  0x18   : > { %v524_v2 = vld [vmem:[%s272_s8] ss:$0 sm:$0xff]  ;;  %538 = vmatprep.subr.bf16.mxu0 %v641_v3  ;;  %v285_v4 = vunpack.c.l.bf16 %v284_v1  ;;  %540 = vmatprep.mubr.msk.bf16.mxu0 %vm642_vm1, %v641_v3  ;;  %vm346_vm4 = vcmask 261120   ;;  %p526_p8 = scmp.ne.s32.totalorder %s622_s18, 4 }
  0x19   : > { %v296_v8 = vld [vmem:[%s265_s16] sm:$0xf]  ;;  %v643_v16 = vmov (!%p526_p8), 0.0   ;;  %v599_v17 = vld [vmem:[%s755_s3 + $0x8] sm:$0xff] (!%p526_p8)   ;;  %vm644_vm5 = vmmov (!%p526_p8), 0   ;;  %vm422_vm6 = vcmask (!%p526_p8), 257024  }
  0x1a   : > { %v293_v5 = vmul.f32 %v524_v2, %v285_v4  ;;  %v295_v9 = vld [vmem:[#allocation2] sm:$0xff] }
  0x1b   : > { %v598_v15 = vld [vmem:[%s755_s3] sm:$0xff] (!%p526_p8)  }
  0x1c   : > { %v294_v6 = vpack.c.bf16 %v293_v5, %v293_v5  ;;  %v530_v20 = vld [vmem:[%s756_s4] ss:$0 sm:$0xff] (!%p526_p8) }
  0x1e   : > { %v303_v7 = vsel %vm301_vm2, %v294_v6, 0 }
  0x1f   : > { %539 = vmatpush3.bf16.msra.mxu0 %v303_v7 }
  0x20   : > { %544 = vmatprep.subr.bf16.mxu0 (!%p526_p8), %v643_v16 }
  0x22   : > { %541 = vmatmul.mubr.msk.bf16.vlgmr.msra.gmra.mrb[0].mxu0 %vm297_vm3, %v296_v8 }
  0x23   : > { %545 = vmatpush3.bf16.msra.mxu0 (!%p526_p8), %v598_v15  ;;  %548 = vmatprep.mubr.msk.bf16.mxu0 (!%p526_p8), %vm644_vm5, %v643_v16 }
  0x24   : > { %546 = vmatprep.subr.bf16.mxu0 (!%p526_p8), %v643_v16 }
  0x27   : > { %547 = vmatpush3.bf16.msra.mxu0 (!%p526_p8), %v599_v17 }
  0xf2   : > { %351 = sbr.rel (%p526_p8) target bundleno = 467 (0x1d3), region = 48 }
  0xf5   : > { %v339_v10 = vpop.f32.mrb[0].mxu0 }
  0xf6   : > { %v345_v11 = vadd.f32 %v339_v10, %v295_v9  ;;  %v542_v12 = vpop.f32.mrb[1].mxu0 }
  0xf7   : > { %v342_v13 = vpop.f32.mrb[2].mxu0 }
  0xf8   : > { %347 = vst.msk [vmem:[#allocation2] sm:$0xff] %vm346_vm4, %v345_v11  ;;  %v543_v14 = vpop.f32.mrb[3].mxu0  ;;  %549 = vmatmul.mubr.msk.bf16.vlgmr.msra.gmra.mrb[0].mxu0 (!%p526_p8), %vm346_vm4, %v284_v1 }
  0xff   : > { %v411_v18 = vld [vmem:[#allocation2] sm:$0xff] }
 0x1cb   : > { %v405_v19 = vpop.f32.mrb[0].mxu0 }
 0x1cc   : > { %v412_v21 = vadd.f32 %v411_v18, %v405_v19  ;;  %v550_v22 = vpop.f32.mrb[1].mxu0 }
 0x1cd   : > { %v408_v23 = vpop.f32.mrb[2].mxu0 }
 0x1ce   : > { %v420_v24 = vadd.f32 %v530_v20, %v412_v21  ;;  %v551_v25 = vpop.f32.mrb[3].mxu0 }
 0x1d0   : > { %v421_v26 = vpack.c.bf16 %v420_v24, %v420_v24 }
 0x1d2   : > { %423 = vst.msk [vmem:[%s718_s12] sm:$0xf] %vm422_vm6, %v421_v26 }
 0x1d3 PF: > { %s15_s22 = sadd.s32 1, %s638_s22   ;;  %s758_s18 = smov %s630_s20 }
 0x1d4   : > { %p12_p9 = scmp.ge.s32.totalorder %s15_s22, 12   ;;  %s759_s19 = smov %s634_s21 }
 0x1d5   : > { %s760_s20 = smov %s763_s23  ;;  %s761_s21 = smov %s767_s24 }
 0x1d6   :  { %14 = sbr.rel (!%p12_p9) target bundleno = 3 (0x3), region = 84 }

// kernel: gcn_relation_forward.10
= control target key start
LH: loop header
LB: loop body
LE: loop exit
PB: predicated region body
PF: predicated region fallthrough
CT: control target
= control target key end

     0   :  { %vm19_vm0 = vcmask 261120   ;;  %v150_v0 = vmov 0.0   ;;  %vm151_vm1 = vmmov 0   ;;  %vm118_vm2 = vcmask 257024   ;;  %s195_s1 = inlined_call_operand.vmem [shape: bf16[32,32], index: 1, kind: input, shape index: {}]   ;;  %s196_s0 = inlined_call_operand.vmem [shape: bf16[16,32], index: 0, kind: input, shape index: {}]   ;;  %s197_s2 = inlined_call_operand.vmem [shape: f32[1,32], index: 2, kind: input, shape index: {}]   ;;  %s198_s3 = inlined_call_operand.vmem [shape: bf16[16,32], index: 3, kind: output, shape index: {}]  }
   0x1   :  { %137 = vmatprep.subr.bf16.mxu0 %v150_v0  ;;  %v147_v1 = vld [vmem:[%s195_s1] sm:$0xff]   ;;  %141 = vmatprep.mubr.msk.bf16.mxu0 %vm151_vm1, %v150_v0  ;;  %20 = vst.msk [vmem:[#allocation2] sm:$0xff] %vm19_vm0, %v150_v0  ;;  %21 = vst.msk [vmem:[#allocation2 + $0x8] sm:$0xff] %vm19_vm0, %v150_v0  ;;  %v148_v2 = vld [vmem:[%s195_s1 + $0x8] sm:$0xff]  }
   0x2   :  { %138 = vmatpush3.bf16.msra.mxu0 %v147_v1  ;;  %v149_v3 = vld [vmem:[%s196_s0] sm:$0xff]  }
   0x3   :  { %139 = vmatprep.subr.bf16.mxu0 %v150_v0  ;;  %v129_v12 = vld [vmem:[%s197_s2] ss:$0 sm:$0xff] }
   0x6   :  { %140 = vmatpush3.bf16.msra.mxu0 %v148_v2 }
   0x8   :  { %v22_v4 = vld [vmem:[#allocation2] sm:$0xff]  ;;  %v23_v6 = vld [vmem:[#allocation2 + $0x8] sm:$0xff] }
   0x9   :  { %142 = vmatmul.mubr.msk.bf16.vlgmr.msra.gmra.mrb[0].mxu0 %vm19_vm0, %v149_v3 }
  0xdc   :  { %v85_v5 = vpop.f32.mrb[0].mxu0 }
  0xdd   :  { %v92_v7 = vadd.f32 %v85_v5, %v22_v4  ;;  %v143_v8 = vpop.f32.mrb[1].mxu0 }
  0xde   :  { %v88_v9 = vpop.f32.mrb[2].mxu0 }
  0xdf   :  { %94 = vst.msk [vmem:[#allocation2] sm:$0xff] %vm19_vm0, %v92_v7  ;;  %v93_v10 = vadd.f32 %v88_v9, %v23_v6  ;;  %v144_v11 = vpop.f32.mrb[3].mxu0 }
  0xe1   :  { %95 = vst.msk [vmem:[#allocation2 + $0x8] sm:$0xff] %vm19_vm0, %v93_v10 }
  0xe6   :  { %v99_v13 = vld [vmem:[#allocation2] sm:$0xff] }
  0xe7   :  { %v108_v14 = vadd.f32 %v129_v12, %v99_v13 }
  0xe8   :  { %v100_v15 = vld [vmem:[#allocation2 + $0x8] sm:$0xff] }
  0xe9   :  { %v132_v16 = vpack.c.bf16 %v108_v14, %v108_v14  ;;  %v109_v17 = vadd.f32 %v129_v12, %v100_v15 }
  0xeb   :  { %119 = vst.msk [vmem:[%s198_s3] sm:$0xf] %vm118_vm2, %v132_v16  ;;  %v133_v18 = vpack.c.bf16 %v109_v17, %v109_v17 }
  0xed   :  { %120 = vst.msk [vmem:[%s198_s3 + $0x4] sm:$0xf] %vm118_vm2, %v133_v18 }

// kernel: gcn_relation_forward.12
= control target key start
LH: loop header
LB: loop body
LE: loop exit
PB: predicated region body
PF: predicated region fallthrough
CT: control target
= control target key end

     0   :  { %vm19_vm0 = vcmask 785408   ;;  %v151_v0 = vmov 0.0   ;;  %vm152_vm1 = vmmov 0   ;;  %vm47_vm2 = vcmask 261120   ;;  %s195_s1 = inlined_call_operand.vmem [shape: bf16[32,96], index: 1, kind: input, shape index: {}]   ;;  %s196_s0 = inlined_call_operand.vmem [shape: bf16[16,32], index: 0, kind: input, shape index: {}]   ;;  %s197_s2 = inlined_call_operand.vmem [shape: f32[1,96], index: 2, kind: input, shape index: {}]   ;;  %s198_s3 = inlined_call_operand.vmem [shape: bf16[16,96], index: 3, kind: output, shape index: {}]  }
   0x1   :  { %138 = vmatprep.subr.bf16.mxu0 %v151_v0  ;;  %v148_v1 = vld [vmem:[%s195_s1] sm:$0xff]   ;;  %142 = vmatprep.mubr.msk.bf16.mxu0 %vm152_vm1, %v151_v0  ;;  %20 = vst.msk [vmem:[#allocation2] sm:$0xff] %vm19_vm0, %v151_v0  ;;  %21 = vst.msk [vmem:[#allocation2 + $0x8] sm:$0xff] %vm19_vm0, %v151_v0  ;;  %v149_v2 = vld [vmem:[%s195_s1 + $0x8] sm:$0xff]   ;;  %vm119_vm3 = vcmask 781312  }
   0x2   :  { %139 = vmatpush3.bf16.msra.mxu0 %v148_v1  ;;  %v150_v3 = vld [vmem:[%s196_s0] sm:$0xff]  }
   0x3   :  { %140 = vmatprep.subr.bf16.mxu0 %v151_v0  ;;  %v130_v12 = vld [vmem:[%s197_s2] ss:$0 sm:$0xff] }
   0x6   :  { %141 = vmatpush3.bf16.msra.mxu0 %v149_v2 }
   0x8   :  { %v22_v4 = vld [vmem:[#allocation2] sm:$0xff]  ;;  %v23_v6 = vld [vmem:[#allocation2 + $0x8] sm:$0xff] }
   0x9   :  { %143 = vmatmul.mubr.msk.bf16.vlgmr.msra.gmra.mrb[0].mxu0 %vm47_vm2, %v150_v3 }
  0xdc   :  { %v85_v5 = vpop.f32.mrb[0].mxu0 }
  0xdd   :  { %v92_v7 = vadd.f32 %v85_v5, %v22_v4  ;;  %v144_v8 = vpop.f32.mrb[1].mxu0 }
  0xde   :  { %v88_v9 = vpop.f32.mrb[2].mxu0 }
  0xdf   :  { %95 = vst.msk [vmem:[#allocation2] sm:$0xff] %vm19_vm0, %v92_v7  ;;  %v93_v10 = vadd.f32 %v88_v9, %v23_v6  ;;  %v145_v11 = vpop.f32.mrb[3].mxu0 }
  0xe1   :  { %96 = vst.msk [vmem:[#allocation2 + $0x8] sm:$0xff] %vm19_vm0, %v93_v10 }
  0xe6   :  { %v100_v13 = vld [vmem:[#allocation2] sm:$0xff] }
  0xe7   :  { %v109_v14 = vadd.f32 %v130_v12, %v100_v13 }
  0xe8   :  { %v101_v15 = vld [vmem:[#allocation2 + $0x8] sm:$0xff] }
  0xe9   :  { %v133_v16 = vpack.c.bf16 %v109_v14, %v109_v14  ;;  %v110_v17 = vadd.f32 %v130_v12, %v101_v15 }
  0xeb   :  { %120 = vst.msk [vmem:[%s198_s3] sm:$0xf] %vm119_vm3, %v133_v16  ;;  %v134_v18 = vpack.c.bf16 %v110_v17, %v110_v17 }
  0xed   :  { %121 = vst.msk [vmem:[%s198_s3 + $0x4] sm:$0xf] %vm119_vm3, %v134_v18 }

// kernel: gcn_relation_forward.15
= control target key start
LH: loop header
LB: loop body
LE: loop exit
PB: predicated region body
PF: predicated region fallthrough
CT: control target
= control target key end

     0   :  { %vm19_vm0 = vcmask 261120   ;;  %v278_v19 = vmov 0.0   ;;  %s359_s1 = inlined_call_operand.vmem [shape: bf16[256,32], index: 1, kind: input, shape index: {}]   ;;  %s360_s0 = inlined_call_operand.vmem [shape: bf16[8,256], index: 0, kind: input, shape index: {}]   ;;  %s361_s2 = inlined_call_operand.vmem [shape: f32[1,32], index: 2, kind: input, shape index: {}]   ;;  %s362_s3 = inlined_call_operand.vmem [shape: f32[8,32], index: 3, kind: output, shape index: {}]  }
   0x1   :  { %v260_v0 = vld [vmem:[%s359_s1 + $0x40] sm:$0xff]   ;;  %v262_v2 = vld [vmem:[%s359_s1 + $0x48] sm:$0xff]   ;;  %v264_v4 = vld [vmem:[%s359_s1 + $0x50] sm:$0xff]   ;;  %20 = vst.msk [vmem:[#allocation2] sm:$0xff] %vm19_vm0, %v278_v19 }
   0x2   :  { %v261_v1 = vld [vmem:[%s359_s1] sm:$0xff]   ;;  %237 = vmatprep.subr.bf16.mxu0 %v260_v0  ;;  %v263_v3 = vld [vmem:[%s359_s1 + $0x8] sm:$0xff]   ;;  %v265_v5 = vld [vmem:[%s359_s1 + $0x10] sm:$0xff]  }
   0x3   :  { %238 = vmatpush3.bf16.msra.mxu0 %v261_v1  ;;  %v266_v6 = vld [vmem:[%s359_s1 + $0x58] sm:$0xff]   ;;  %v268_v8 = vld [vmem:[%s359_s1 + $0x60] sm:$0xff]   ;;  %v270_v10 = vld [vmem:[%s359_s1 + $0x68] sm:$0xff]  }
   0x4   :  { %239 = vmatprep.subr.bf16.mxu0 %v262_v2  ;;  %v267_v7 = vld [vmem:[%s359_s1 + $0x18] sm:$0xff]   ;;  %v269_v9 = vld [vmem:[%s359_s1 + $0x20] sm:$0xff]   ;;  %v271_v13 = vld [vmem:[%s359_s1 + $0x28] sm:$0xff]  }
   0x5   :  { %v22_v11 = vld [vmem:[%s360_s0] sm:$0xff]  ;;  %v272_v14 = vld [vmem:[%s359_s1 + $0x70] sm:$0xff]   ;;  %v274_v16 = vld [vmem:[%s359_s1 + $0x78] sm:$0xff]  }
   0x6   :  { %v219_v12 = vcombine.high %v22_v11, %v22_v11  ;;  %v273_v15 = vld [vmem:[%s359_s1 + $0x30] sm:$0xff]   ;;  %v275_v17 = vld [vmem:[%s359_s1 + $0x38] sm:$0xff]   ;;  %v218_v18 = vcombine.low %v22_v11, %v22_v11  ;;  %v236_v27 = vld [vmem:[%s361_s2] ss:$0 sm:$0xff] }
   0x7   :  { %240 = vmatpush3.bf16.msra.mxu0 %v263_v3 }
   0x8   :  { %241 = vmatprep.subr.bf16.mxu0 %v264_v4  ;;  %190 = vmatprep.mubr.bf16.mxu0 %v219_v12  ;;  %v21_v21 = vld [vmem:[#allocation2] sm:$0xff] }
   0xb   :  { %242 = vmatpush3.bf16.msra.mxu0 %v265_v5 }
   0xc   :  { %243 = vmatprep.subr.bf16.mxu0 %v266_v6 }
   0xf   :  { %244 = vmatpush3.bf16.msra.mxu0 %v267_v7 }
  0x10   :  { %245 = vmatprep.subr.bf16.mxu0 %v268_v8 }
  0x13   :  { %246 = vmatpush3.bf16.msra.mxu0 %v269_v9 }
  0x14   :  { %247 = vmatprep.subr.bf16.mxu0 %v270_v10 }
  0x17   :  { %248 = vmatpush3.bf16.msra.mxu0 %v271_v13 }
  0x18   :  { %249 = vmatprep.subr.bf16.mxu0 %v272_v14 }
  0x1b   :  { %250 = vmatpush3.bf16.msra.mxu0 %v273_v15 }
  0x1c   :  { %251 = vmatprep.subr.bf16.mxu0 %v274_v16 }
  0x1f   :  { %252 = vmatpush3.bf16.msra.mxu0 %v275_v17 }
  0x22   :  { %191 = vmatmul.mubr.bf16.vlgmr.msra.gmra.mrb[0].mxu0 %v218_v18 }
  0xf5   :  { %v253_v20 = vpop.f32.mrb[0].mxu0 }
  0xf6   :  { %v254_v22 = vpop.f32.mrb[1].mxu0 }
  0xf7   :  { %v255_v23 = vadd.f32 %v254_v22, %v253_v20  ;;  %v256_v24 = vpop.f32.mrb[2].mxu0 }
  0xf8   :  { %v257_v25 = vpop.f32.mrb[3].mxu0 }
  0xf9   :  { %v198_v26 = vadd.f32 %v255_v23, %v21_v21 }
  0xfb   :  { %200 = vst.msk [vmem:[#allocation2] sm:$0xff] %vm19_vm0, %v198_v26 }
 0x102   :  { %v204_v28 = vld [vmem:[#allocation2] sm:$0xff] }
 0x103   :  { %v212_v29 = vadd.f32 %v236_v27, %v204_v28 }
 0x105   :  { %213 = vst.msk [vmem:[%s362_s3] sm:$0xff] %vm19_vm0, %v212_v29 }

// kernel: gcn_relation_forward.9
= control target key start
LH: loop header
LB: loop body
LE: loop exit
PB: predicated region body
PF: predicated region fallthrough
CT: control target
= control target key end

     0   :  { %vm54_vm0 = vcmask 123904   ;;  %v2858_v0 = vmov 0.0   ;;  %vm2859_vm1 = vmmov 0   ;;  %vm74_vm2 = vcmask 130048   ;;  %s2860_s22 = smov 16   ;;  %s2861_s27 = smov 96   ;;  %s3614_s2 = inlined_call_operand.vmem [shape: bf16[16,64], index: 2, kind: input, shape index: {}]   ;;  %s3615_s3 = inlined_call_operand.vmem [shape: bf16[16,64], index: 3, kind: input, shape index: {}]   ;;  %s3616_s0 = inlined_call_operand.vmem [shape: bf16[8,2,64], index: 0, kind: input, shape index: {}]   ;;  %s3617_s1 = inlined_call_operand.vmem [shape: bf16[8,2,64], index: 1, kind: input, shape index: {}]   ;;  %s3618_s4 = inlined_call_operand.vmem [shape: bf16[2,8,16], index: 4, kind: output, shape index: {0}]   ;;  %s3619_s5 = inlined_call_operand.vmem [shape: bf16[2,8,16], index: 5, kind: output, shape index: {1}]  }
   0x1   :  { %2581 = vmatprep.subr.bf16.mxu0 %v2858_v0  ;;  %v2901_v1 = vld [vmem:[%s3614_s2] sm:$0xff]   ;;  %2587 = vmatprep.subr.bf16.mxu1 %v2858_v0  ;;  %55 = vst.msk [vmem:[#allocation2] sm:$0x3] %vm54_vm0, %v2858_v0  ;;  %56 = vst.msk [vmem:[#allocation3] sm:$0x3] %vm54_vm0, %v2858_v0  ;;  %s2862_s28 = smov 32   ;;  %v158_v49 = vlaneseq }
   0x2   :  { %57 = vst.msk [vmem:[#allocation4] sm:$0x3] %vm54_vm0, %v2858_v0  ;;  %58 = vst.msk [vmem:[#allocation5] sm:$0x3] %vm54_vm0, %v2858_v0  ;;  %v2915_v2 = vld [vmem:[%s3615_s3] sm:$0xff]   ;;  %2583 = vmatprep.mubr.msk.bf16.mxu0 %vm2859_vm1, %v2858_v0  ;;  %2589 = vmatprep.mubr.msk.bf16.mxu1 %vm2859_vm1, %v2858_v0  ;;  %s2864_s29 = smov 80  }
   0x3   :  { %2582 = vmatpush3.bf16.msra.mxu0 %v2901_v1  ;;  %2588 = vmatpush3.bf16.msra.mxu1 %v2915_v2  ;;  %v63_v8 = vld [vmem:[%s3616_s0] sm:$0x1]  ;;  %v2427_v9 = vld [vmem:[%s3617_s1 + $0x7] sm:$0x1]  ;;  %v2863_v47 = vmov 1983009808  }
   0x4   :  { %2593 = vmatprep.subr.bf16.mxu0 %v2858_v0  ;;  %2599 = vmatprep.subr.bf16.mxu1 %v2858_v0  ;;  %v66_v10 = vunpack.c.l.bf16 %v63_v8  ;;  %v216_v11 = vunpack.c.l.bf16 %v2427_v9  ;;  %v156_v48 = vunpack.c.l.s4 %v2863_v47  ;;  %v2949_v51 = vshrl.u32 %v158_v49, 7  ;;  %s2865_s30 = smov 112   ;;  %v2434_v8 = vld [vmem:[%s3616_s0 + $0x1] sm:$0x1] }
   0x5   :  { %v372_v9 = vunpack.c.l.bf16 %v2434_v8  ;;  %vm203_vm3 = vcmask 122880   ;;  %vm204_vm4 = vsmask.f32 256  ;;  %vm359_vm6 = vcmask 125955  }
   0x6   :  { %v157_v50 = vunpack.c.0.s8 %v156_v48  ;;  %vm3313_vm5 = vmand %vm203_vm3, %vm204_vm4  ;;  %vm360_vm7 = vsmask.f32 7950  ;;  %vm793_vm8 = vcmask 123905   ;;  %vm794_vm9 = vsmask.f32 1280 }
   0x7   :  { %vm3334_vm10 = vmand %vm359_vm6, %vm360_vm7  ;;  %vm943_vm12 = vcmask 124930   ;;  %vm1236_vm13 = vsmask.f32 2304  ;;  %vm944_vm14 = vsmask.f32 7946 }
   0x8   :  { %v64_v3 = vld [vmem:[#allocation2] sm:$0x3]  ;;  %v2424_v7 = vld.sshfl [vmem:[#allocation3] sm:$0x3 pattern:$0x76325410]  ;;  %v2952_v53 = vsub.s32 %v157_v50, %v2949_v51  ;;  %vm3347_vm11 = vmand %vm793_vm8, %vm794_vm9 }
   0x9   :  { %v214_v4 = vld [vmem:[#allocation4] sm:$0x3]  ;;  %v67_v5 = vpack.c.bf16 %v64_v3, %v64_v3  ;;  %134 = vrot.lane.b32.xlu1 %v2424_v7, %s2860_s22  ;;  %v2431_v24 = vld.sshfl [vmem:[#allocation5] sm:$0x3 pattern:$0x76325410]  ;;  %vm3385_vm15 = vmand %vm943_vm12, %vm1236_vm13 }
   0xa   :  { %v217_v6 = vpack.c.bf16 %v214_v4, %v214_v4  ;;  %vm650_vm4 = vsmask.f32 3328 }
   0xb   :  { %2584 = vmatmul.mubr.msk.bf16.vlgmr.msra.gmra.mrb[0].mxu0 %vm74_vm2, %v67_v5 }
   0xc   :  { %2590 = vmatmul.mubr.msk.bf16.vlgmr.msra.gmra.mrb[0].mxu1 %vm74_vm2, %v217_v6  ;;  %2594 = vmatpush3.bf16.msra.mxu0 %v2901_v1 }
   0xd   :  { %2600 = vmatpush3.bf16.msra.mxu1 %v2915_v2  ;;  %2595 = vmatprep.mubr.msk.bf16.mxu0 %vm2859_vm1, %v2858_v0 }
   0xe   :  { %2601 = vmatprep.mubr.msk.bf16.mxu1 %vm2859_vm1, %v2858_v0  ;;  %2605 = vmatprep.subr.bf16.mxu0 %v2858_v0 }
   0xf   :  { %2611 = vmatprep.subr.bf16.mxu1 %v2858_v0 }
  0x7b   :  { %v135_v37 = vpop.permute.xlu1 %134 }
  0xde   :  { %v112_v12 = vpop.f32.mrb[0].mxu0 }
  0xdf   :  { %v261_v13 = vpop.f32.mrb[0].mxu1  ;;  %v118_v14 = vadd.f32 %v112_v12, %v66_v10  ;;  %v2585_v15 = vpop.f32.mrb[1].mxu0  ;;  %v2440_v10 = vld [vmem:[%s3617_s1 + $0x6] sm:$0x1] }
  0xe0   :  { %v267_v16 = vadd.f32 %v261_v13, %v216_v11  ;;  %v2591_v17 = vpop.f32.mrb[1].mxu1  ;;  %v115_v18 = vpop.f32.mrb[2].mxu0 }
  0xe1   :  { %v264_v19 = vpop.f32.mrb[2].mxu1  ;;  %2728 = vtanh.f32 %v118_v14  ;;  %v2586_v20 = vpop.f32.mrb[3].mxu0  ;;  %v2423_v25 = vmul.f32 -1.442695, %v118_v14  ;;  %v519_v14 = vunpack.c.l.bf16 %v2440_v10 }
  0xe2   :  { %v2592_v21 = vpop.f32.mrb[3].mxu1  ;;  %2730 = vtanh.f32 %v267_v16  ;;  %v2430_v26 = vmul.f32 -1.442695, %v267_v16 }
  0xe3   :  { %2732 = vpow2.f32 %v2423_v25 }
  0xe4   :  { %2734 = vpow2.f32 %v2430_v26 }
  0xeb   :  { %v2729_v22 = vpop.eup %2728 }
  0xec   :  { %139 = vrot.lane.b32.xlu0 %v2729_v22, %s2861_s27  ;;  %v2731_v23 = vpop.eup %2730 }
  0xed   :  { %v2733_v27 = vpop.eup %2732 }
  0xee   :  { %v122_v28 = vadd.f32 1.0, %v2733_v27  ;;  %v2735_v29 = vpop.eup %2734 }
  0xef   :  { %v271_v30 = vadd.f32 1.0, %v2735_v29 }
  0xf0   :  { %288 = vrot.lane.b32.xlu0 %v2731_v23, %s2861_s27  ;;  %2736 = vrcp.f32 %v122_v28 }
  0xf1   :  { %2738 = vrcp.f32 %v271_v30 }
  0xf4   :  { %283 = vrot.lane.b32.xlu0 %v2431_v24, %s2860_s22 }
  0xfa   :  { %v2737_v31 = vpop.eup %2736 }
  0xfb   :  { %v2739_v34 = vpop.eup %2738  ;;  %v137_v38 = vmul.f32 %v2737_v31, %v135_v37 }
 0x15e   :  { %v140_v32 = vpop.permute.xlu0 %139 }
 0x15f   :  { %v142_v33 = vmul.f32 %v2737_v31, %v140_v32 }
 0x161   :  { %144 = vrot.lane.b32.xlu1 %v142_v33, %s2860_s22 }
 0x162   :  { %v289_v35 = vpop.permute.xlu0 %288 }
 0x163   :  { %v291_v36 = vmul.f32 %v2739_v34, %v289_v35 }
 0x165   :  { %293 = vrot.lane.b32.xlu1 %v291_v36, %s2860_s22 }
 0x166   :  { %v284_v39 = vpop.permute.xlu0 %283 }
 0x167   :  { %v286_v42 = vmul.f32 %v2739_v34, %v284_v39 }
 0x1d3   :  { %v145_v40 = vpop.permute.xlu1 %144 }
 0x1d4   :  { %v147_v41 = vadd.f32 %v145_v40, %v137_v38 }
 0x1d6   :  { %2740 = vtanh.f32 %v147_v41  ;;  %v174_v58 = vrot.slane %v147_v41, %v2952_v53 }
 0x1d7   :  { %v294_v43 = vpop.permute.xlu1 %293 }
 0x1d8   :  { %v296_v44 = vadd.f32 %v294_v43, %v286_v42 }
 0x1da   :  { %2742 = vtanh.f32 %v296_v44  ;;  %v322_v60 = vrot.slane %v296_v44, %v2952_v53 }
 0x1e0   :  { %v2741_v45 = vpop.eup %2740 }
 0x1e1   :  { %150 = vrot.lane.b32.xlu0 %v2741_v45, %s2862_s28 }
 0x1e4   :  { %v2743_v46 = vpop.eup %2742 }
 0x1e5   :  { %299 = vrot.lane.b32.xlu1 %v2743_v46, %s2862_s28 }
 0x253   :  { %v151_v52 = vpop.permute.xlu0 %150 }
 0x254   :  { %v2954_v54 = vmul.f32 %v2737_v31, %v151_v52 }
 0x256   :  { %v161_v55 = vrot.slane %v2954_v54, %v2952_v53 }
 0x257   :  { %v300_v56 = vpop.permute.xlu1 %299 }
 0x258   :  { %v2958_v57 = vmul.f32 %v2739_v34, %v300_v56  ;;  %162 = vrot.lane.b32.xlu0 %v161_v55, %s2864_s29 }
 0x25a   :  { %v310_v59 = vrot.slane %v2958_v57, %v2952_v53 }
 0x25c   :  { %311 = vrot.lane.b32.xlu1 %v310_v59, %s2864_s29  ;;  %175 = vrot.lane.b32.xlu0 %v174_v58, %s2865_s30 }
 0x260   :  { %323 = vrot.lane.b32.xlu1 %v322_v60, %s2865_s30 }
 0x2ca   :  { %v163_v61 = vpop.permute.xlu0 %162 }
 0x2cb   :  { %166 = vst.msk [vmem:[#allocation2] sm:$0x3] %vm54_vm0, %v163_v61 }
 0x2ce   :  { %v312_v62 = vpop.permute.xlu1 %311  ;;  %v176_v63 = vpop.permute.xlu0 %175 }
 0x2cf   :  { %314 = vst.msk [vmem:[#allocation4] sm:$0x3] %vm54_vm0, %v312_v62  ;;  %178 = vst.msk [vmem:[#allocation3] sm:$0x3] %vm54_vm0, %v176_v63 }
 0x2d2   :  { %v324_v3 = vpop.permute.xlu1 %323  ;;  %v370_v4 = vld [vmem:[#allocation2] sm:$0x3] }
 0x2d3   :  { %326 = vst.msk [vmem:[#allocation5] sm:$0x3] %vm54_vm0, %v324_v3  ;;  %v373_v5 = vpack.c.bf16 %v370_v4, %v370_v4 }
 0x2d5   :  { %2596 = vmatmul.mubr.msk.bf16.vlgmr.msra.gmra.mrb[4].mxu0 %vm74_vm2, %v373_v5 }
 0x2d6   :  { %v517_v6 = vld [vmem:[#allocation4] sm:$0x3]  ;;  %2606 = vmatpush3.bf16.msra.mxu0 %v2901_v1  ;;  %2607 = vmatprep.mubr.msk.bf16.mxu0 %vm2859_vm1, %v2858_v0  ;;  %v2437_v24 = vld.sshfl [vmem:[#allocation3] sm:$0x3 pattern:$0x76325410] }
 0x2d7   :  { %v520_v7 = vpack.c.bf16 %v517_v6, %v517_v6  ;;  %2617 = vmatprep.subr.bf16.mxu0 %v2858_v0 }
 0x2d9   :  { %2602 = vmatmul.mubr.msk.bf16.vlgmr.msra.gmra.mrb[4].mxu1 %vm74_vm2, %v520_v7  ;;  %v2446_v7 = vld [vmem:[%s3616_s0 + $0x2] sm:$0x1] }
 0x2da   :  { %2612 = vmatpush3.bf16.msra.mxu1 %v2915_v2  ;;  %2613 = vmatprep.mubr.msk.bf16.mxu1 %vm2859_vm1, %v2858_v0  ;;  %v2443_v25 = vld.sshfl [vmem:[#allocation5] sm:$0x3 pattern:$0x76325410]  ;;  %v662_v8 = vunpack.c.l.bf16 %v2446_v7 }
 0x2db   :  { %2623 = vmatprep.subr.bf16.mxu1 %v2858_v0 }
 0x3a8   :  { %v411_v11 = vpop.f32.mrb[4].mxu0 }
 0x3a9   :  { %v417_v12 = vadd.f32 %v411_v11, %v372_v9  ;;  %v2597_v13 = vpop.f32.mrb[5].mxu0  ;;  %v2452_v9 = vld [vmem:[%s3617_s1 + $0x5] sm:$0x1] }
 0x3aa   :  { %v414_v15 = vpop.f32.mrb[6].mxu0  ;;  %v806_v13 = vunpack.c.l.bf16 %v2452_v9 }
 0x3ab   :  { %2744 = vtanh.f32 %v417_v12  ;;  %v2598_v16 = vpop.f32.mrb[7].mxu0  ;;  %v2436_v26 = vmul.f32 -1.442695, %v417_v12 }
 0x3ac   :  { %v558_v17 = vpop.f32.mrb[4].mxu1 }
 0x3ad   :  { %v564_v18 = vadd.f32 %v558_v17, %v519_v14  ;;  %v2603_v19 = vpop.f32.mrb[5].mxu1 }
 0x3ae   :  { %v561_v20 = vpop.f32.mrb[6].mxu1 }
 0x3af   :  { %2746 = vtanh.f32 %v564_v18  ;;  %v2604_v21 = vpop.f32.mrb[7].mxu1  ;;  %v2442_v27 = vmul.f32 -1.442695, %v564_v18 }
 0x3b0   :  { %2748 = vpow2.f32 %v2436_v26 }
 0x3b1   :  { %2750 = vpow2.f32 %v2442_v27 }
 0x3b5   :  { %v2745_v22 = vpop.eup %2744 }
 0x3b6   :  { %438 = vrot.lane.b32.xlu0 %v2745_v22, %s2861_s27 }
 0x3b9   :  { %v2747_v23 = vpop.eup %2746 }
 0x3ba   :  { %585 = vrot.lane.b32.xlu1 %v2747_v23, %s2861_s27  ;;  %433 = vrot.lane.b32.xlu0 %v2437_v24, %s2860_s22  ;;  %v2749_v28 = vpop.eup %2748 }
 0x3bb   :  { %v421_v29 = vadd.f32 1.0, %v2749_v28  ;;  %v2751_v30 = vpop.eup %2750 }
 0x3bc   :  { %v568_v31 = vadd.f32 1.0, %v2751_v30 }
 0x3bd   :  { %2752 = vrcp.f32 %v421_v29 }
 0x3be   :  { %580 = vrot.lane.b32.xlu0 %v2443_v25, %s2860_s22  ;;  %2754 = vrcp.f32 %v568_v31 }
 0x3c7   :  { %v2753_v32 = vpop.eup %2752 }
 0x3c8   :  { %v2755_v35 = vpop.eup %2754 }
 0x428   :  { %v439_v33 = vpop.permute.xlu0 %438 }
 0x429   :  { %v441_v34 = vmul.f32 %v2753_v32, %v439_v33 }
 0x42b   :  { %443 = vrot.lane.b32.xlu1 %v441_v34, %s2860_s22 }
 0x42c   :  { %v586_v36 = vpop.permute.xlu1 %585  ;;  %v434_v38 = vpop.permute.xlu0 %433 }
 0x42d   :  { %v588_v37 = vmul.f32 %v2755_v35, %v586_v36  ;;  %v436_v39 = vmul.f32 %v2753_v32, %v434_v38 }
 0x42f   :  { %590 = vrot.lane.b32.xlu1 %v588_v37, %s2860_s22 }
 0x430   :  { %v581_v40 = vpop.permute.xlu0 %580 }
 0x431   :  { %v583_v43 = vmul.f32 %v2755_v35, %v581_v40 }
 0x49d   :  { %v444_v41 = vpop.permute.xlu1 %443 }
 0x49e   :  { %v446_v42 = vadd.f32 %v444_v41, %v436_v39 }
 0x4a0   :  { %2756 = vtanh.f32 %v446_v42  ;;  %v472_v56 = vrot.slane %v446_v42, %v2952_v53 }
 0x4a1   :  { %v591_v44 = vpop.permute.xlu1 %590 }
 0x4a2   :  { %v593_v45 = vadd.f32 %v591_v44, %v583_v43 }
 0x4a4   :  { %2758 = vtanh.f32 %v593_v45  ;;  %v619_v59 = vrot.slane %v593_v45, %v2952_v53 }
 0x4aa   :  { %v2757_v46 = vpop.eup %2756 }
 0x4ab   :  { %449 = vrot.lane.b32.xlu0 %v2757_v46, %s2862_s28 }
 0x4ae   :  { %v2759_v47 = vpop.eup %2758 }
 0x4af   :  { %596 = vrot.lane.b32.xlu1 %v2759_v47, %s2862_s28 }
 0x51d   :  { %v450_v48 = vpop.permute.xlu0 %449 }
 0x51e   :  { %v2996_v49 = vmul.f32 %v2753_v32, %v450_v48 }
 0x520   :  { %v460_v50 = vrot.slane %v2996_v49, %v2952_v53 }
 0x521   :  { %v597_v52 = vpop.permute.xlu1 %596 }
 0x522   :  { %v3000_v55 = vmul.f32 %v2755_v35, %v597_v52  ;;  %461 = vrot.lane.b32.xlu0 %v460_v50, %s2864_s29 }
 0x524   :  { %v607_v58 = vrot.slane %v3000_v55, %v2952_v53 }
 0x526   :  { %608 = vrot.lane.b32.xlu1 %v607_v58, %s2864_s29  ;;  %473 = vrot.lane.b32.xlu0 %v472_v56, %s2865_s30 }
 0x52a   :  { %620 = vrot.lane.b32.xlu1 %v619_v59, %s2865_s30 }
 0x594   :  { %v462_v60 = vpop.permute.xlu0 %461 }
 0x595   :  { %464 = vst.msk [vmem:[#allocation2] sm:$0x3] %vm54_vm0, %v462_v60 }
 0x598   :  { %v609_v61 = vpop.permute.xlu1 %608  ;;  %v474_v62 = vpop.permute.xlu0 %473 }
 0x599   :  { %611 = vst.msk [vmem:[#allocation4] sm:$0x3] %vm54_vm0, %v609_v61  ;;  %476 = vst.msk [vmem:[#allocation3] sm:$0x3] %vm54_vm0, %v474_v62 }
 0x59c   :  { %v621_v63 = vpop.permute.xlu1 %620  ;;  %v660_v3 = vld [vmem:[#allocation2] sm:$0x3] }
 0x59d   :  { %623 = vst.msk [vmem:[#allocation5] sm:$0x3] %vm54_vm0, %v621_v63  ;;  %v663_v4 = vpack.c.bf16 %v660_v3, %v660_v3 }
 0x59f   :  { %2608 = vmatmul.mubr.msk.bf16.vlgmr.msra.gmra.mrb[8].mxu0 %vm74_vm2, %v663_v4 }
 0x5a0   :  { %v804_v5 = vld [vmem:[#allocation4] sm:$0x3]  ;;  %2618 = vmatpush3.bf16.msra.mxu0 %v2901_v1  ;;  %2619 = vmatprep.mubr.msk.bf16.mxu0 %vm2859_vm1, %v2858_v0  ;;  %v2449_v23 = vld.sshfl [vmem:[#allocation3] sm:$0x3 pattern:$0x76325410] }
 0x5a1   :  { %v807_v6 = vpack.c.bf16 %v804_v5, %v804_v5  ;;  %2629 = vmatprep.subr.bf16.mxu0 %v2858_v0 }
 0x5a3   :  { %2614 = vmatmul.mubr.msk.bf16.vlgmr.msra.gmra.mrb[8].mxu1 %vm74_vm2, %v807_v6 }
 0x5a4   :  { %2624 = vmatpush3.bf16.msra.mxu1 %v2915_v2  ;;  %2625 = vmatprep.mubr.msk.bf16.mxu1 %vm2859_vm1, %v2858_v0  ;;  %v2455_v24 = vld.sshfl [vmem:[#allocation5] sm:$0x3 pattern:$0x76325410] }
 0x5a5   :  { %2635 = vmatprep.subr.bf16.mxu1 %v2858_v0 }
 0x672   :  { %v701_v10 = vpop.f32.mrb[8].mxu0 }
 0x673   :  { %v707_v11 = vadd.f32 %v701_v10, %v662_v8  ;;  %v2609_v12 = vpop.f32.mrb[9].mxu0  ;;  %v2458_v8 = vld [vmem:[%s3616_s0 + $0x3] sm:$0x1]  ;;  %v2464_v10 = vld [vmem:[%s3617_s1 + $0x4] sm:$0x1] }
 0x674   :  { %v704_v14 = vpop.f32.mrb[10].mxu0  ;;  %v956_v9 = vunpack.c.l.bf16 %v2458_v8 }
 0x675   :  { %2760 = vtanh.f32 %v707_v11  ;;  %v2610_v15 = vpop.f32.mrb[11].mxu0  ;;  %v2448_v25 = vmul.f32 -1.442695, %v707_v11  ;;  %v1105_v14 = vunpack.c.l.bf16 %v2464_v10 }
 0x676   :  { %v845_v16 = vpop.f32.mrb[8].mxu1 }
 0x677   :  { %v851_v17 = vadd.f32 %v845_v16, %v806_v13  ;;  %v2615_v18 = vpop.f32.mrb[9].mxu1 }
 0x678   :  { %v848_v19 = vpop.f32.mrb[10].mxu1 }
 0x679   :  { %2762 = vtanh.f32 %v851_v17  ;;  %v2616_v20 = vpop.f32.mrb[11].mxu1  ;;  %v2454_v26 = vmul.f32 -1.442695, %v851_v17 }
 0x67a   :  { %2764 = vpow2.f32 %v2448_v25 }
 0x67b   :  { %2766 = vpow2.f32 %v2454_v26 }
 0x67f   :  { %v2761_v21 = vpop.eup %2760 }
 0x680   :  { %728 = vrot.lane.b32.xlu0 %v2761_v21, %s2861_s27 }
 0x683   :  { %v2763_v22 = vpop.eup %2762 }
 0x684   :  { %872 = vrot.lane.b32.xlu1 %v2763_v22, %s2861_s27  ;;  %723 = vrot.lane.b32.xlu0 %v2449_v23, %s2860_s22  ;;  %v2765_v27 = vpop.eup %2764 }
 0x685   :  { %v711_v28 = vadd.f32 1.0, %v2765_v27  ;;  %v2767_v29 = vpop.eup %2766 }
 0x686   :  { %v855_v30 = vadd.f32 1.0, %v2767_v29 }
 0x687   :  { %2768 = vrcp.f32 %v711_v28 }
 0x688   :  { %867 = vrot.lane.b32.xlu0 %v2455_v24, %s2860_s22  ;;  %2770 = vrcp.f32 %v855_v30 }
 0x691   :  { %v2769_v31 = vpop.eup %2768 }
 0x692   :  { %v2771_v34 = vpop.eup %2770 }
 0x6f2   :  { %v729_v32 = vpop.permute.xlu0 %728 }
 0x6f3   :  { %v731_v33 = vmul.f32 %v2769_v31, %v729_v32 }
 0x6f5   :  { %733 = vrot.lane.b32.xlu1 %v731_v33, %s2860_s22 }
 0x6f6   :  { %v873_v35 = vpop.permute.xlu1 %872  ;;  %v724_v37 = vpop.permute.xlu0 %723 }
 0x6f7   :  { %v875_v36 = vmul.f32 %v2771_v34, %v873_v35  ;;  %v726_v38 = vmul.f32 %v2769_v31, %v724_v37 }
 0x6f9   :  { %877 = vrot.lane.b32.xlu1 %v875_v36, %s2860_s22 }
 0x6fa   :  { %v868_v39 = vpop.permute.xlu0 %867 }
 0x6fb   :  { %v870_v42 = vmul.f32 %v2771_v34, %v868_v39 }
 0x767   :  { %v734_v40 = vpop.permute.xlu1 %733 }
 0x768   :  { %v736_v41 = vadd.f32 %v734_v40, %v726_v38 }
 0x76a   :  { %2772 = vtanh.f32 %v736_v41  ;;  %v762_v58 = vrot.slane %v736_v41, %v2952_v53 }
 0x76b   :  { %v878_v43 = vpop.permute.xlu1 %877 }
 0x76c   :  { %v880_v44 = vadd.f32 %v878_v43, %v870_v42 }
 0x76e   :  { %2774 = vtanh.f32 %v880_v44  ;;  %v906_v60 = vrot.slane %v880_v44, %v2952_v53 }
 0x774   :  { %v2773_v45 = vpop.eup %2772 }
 0x775   :  { %739 = vrot.lane.b32.xlu0 %v2773_v45, %s2862_s28 }
 0x778   :  { %v2775_v46 = vpop.eup %2774 }
 0x779   :  { %883 = vrot.lane.b32.xlu1 %v2775_v46, %s2862_s28 }
 0x7e7   :  { %v740_v47 = vpop.permute.xlu0 %739 }
 0x7e8   :  { %v3038_v48 = vmul.f32 %v2769_v31, %v740_v47 }
 0x7ea   :  { %v750_v50 = vrot.slane %v3038_v48, %v2952_v53 }
 0x7eb   :  { %v884_v52 = vpop.permute.xlu1 %883 }
 0x7ec   :  { %v3042_v56 = vmul.f32 %v2771_v34, %v884_v52  ;;  %751 = vrot.lane.b32.xlu0 %v750_v50, %s2864_s29 }
 0x7ee   :  { %v894_v59 = vrot.slane %v3042_v56, %v2952_v53 }
 0x7f0   :  { %895 = vrot.lane.b32.xlu1 %v894_v59, %s2864_s29  ;;  %763 = vrot.lane.b32.xlu0 %v762_v58, %s2865_s30 }
 0x7f4   :  { %907 = vrot.lane.b32.xlu1 %v906_v60, %s2865_s30 }
 0x85e   :  { %v752_v61 = vpop.permute.xlu0 %751 }
 0x85f   :  { %754 = vst.msk [vmem:[#allocation2] sm:$0x3] %vm54_vm0, %v752_v61 }
 0x862   :  { %v896_v62 = vpop.permute.xlu1 %895  ;;  %v764_v63 = vpop.permute.xlu0 %763 }
 0x863   :  { %898 = vst.msk [vmem:[#allocation4] sm:$0x3] %vm54_vm0, %v896_v62  ;;  %766 = vst.msk [vmem:[#allocation3] sm:$0x3] %vm54_vm0, %v764_v63 }
 0x866   :  { %v908_v3 = vpop.permute.xlu1 %907  ;;  %v954_v4 = vld [vmem:[#allocation2] sm:$0x3] }
 0x867   :  { %910 = vst.msk [vmem:[#allocation5] sm:$0x3] %vm54_vm0, %v908_v3  ;;  %v957_v5 = vpack.c.bf16 %v954_v4, %v954_v4 }
 0x869   :  { %2620 = vmatmul.mubr.msk.bf16.vlgmr.msra.gmra.mrb[12].mxu0 %vm74_vm2, %v957_v5 }
 0x86a   :  { %v1103_v6 = vld [vmem:[#allocation4] sm:$0x3]  ;;  %2630 = vmatpush3.bf16.msra.mxu0 %v2901_v1  ;;  %2631 = vmatprep.mubr.msk.bf16.mxu0 %vm2859_vm1, %v2858_v0  ;;  %v2461_v24 = vld.sshfl [vmem:[#allocation3] sm:$0x3 pattern:$0x76325410] }
 0x86b   :  { %v1106_v7 = vpack.c.bf16 %v1103_v6, %v1103_v6  ;;  %2641 = vmatprep.subr.bf16.mxu0 %v2858_v0 }
 0x86d   :  { %2626 = vmatmul.mubr.msk.bf16.vlgmr.msra.gmra.mrb[12].mxu1 %vm74_vm2, %v1106_v7 }
 0x86e   :  { %2636 = vmatpush3.bf16.msra.mxu1 %v2915_v2  ;;  %2637 = vmatprep.mubr.msk.bf16.mxu1 %vm2859_vm1, %v2858_v0  ;;  %v2467_v25 = vld.sshfl [vmem:[#allocation5] sm:$0x3 pattern:$0x76325410] }
 0x86f   :  { %2647 = vmatprep.subr.bf16.mxu1 %v2858_v0 }
 0x93c   :  { %v995_v11 = vpop.f32.mrb[12].mxu0 }
 0x93d   :  { %v1001_v12 = vadd.f32 %v995_v11, %v956_v9  ;;  %v2621_v13 = vpop.f32.mrb[13].mxu0  ;;  %v2470_v11 = vld [vmem:[%s3616_s0 + $0x4] sm:$0x1] }
 0x93e   :  { %v998_v15 = vpop.f32.mrb[14].mxu0  ;;  %v2476_v13 = vld [vmem:[%s3617_s1 + $0x3] sm:$0x1] }
 0x93f   :  { %2776 = vtanh.f32 %v1001_v12  ;;  %v2622_v16 = vpop.f32.mrb[15].mxu0  ;;  %v2460_v26 = vmul.f32 -1.442695, %v1001_v12  ;;  %v1248_v12 = vunpack.c.l.bf16 %v2470_v11 }
 0x940   :  { %v1144_v17 = vpop.f32.mrb[12].mxu1 }
 0x941   :  { %v1150_v18 = vadd.f32 %v1144_v17, %v1105_v14  ;;  %v2627_v19 = vpop.f32.mrb[13].mxu1  ;;  %v1389_v17 = vunpack.c.l.bf16 %v2476_v13 }
 0x942   :  { %v1147_v20 = vpop.f32.mrb[14].mxu1 }
 0x943   :  { %2778 = vtanh.f32 %v1150_v18  ;;  %v2628_v21 = vpop.f32.mrb[15].mxu1  ;;  %v2466_v27 = vmul.f32 -1.442695, %v1150_v18 }
 0x944   :  { %2780 = vpow2.f32 %v2460_v26 }
 0x945   :  { %2782 = vpow2.f32 %v2466_v27 }
 0x949   :  { %v2777_v22 = vpop.eup %2776 }
 0x94a   :  { %1022 = vrot.lane.b32.xlu0 %v2777_v22, %s2861_s27 }
 0x94d   :  { %v2779_v23 = vpop.eup %2778 }
 0x94e   :  { %1171 = vrot.lane.b32.xlu1 %v2779_v23, %s2861_s27  ;;  %1017 = vrot.lane.b32.xlu0 %v2461_v24, %s2860_s22  ;;  %v2781_v28 = vpop.eup %2780 }
 0x94f   :  { %v1005_v29 = vadd.f32 1.0, %v2781_v28  ;;  %v2783_v30 = vpop.eup %2782 }
 0x950   :  { %v1154_v31 = vadd.f32 1.0, %v2783_v30 }
 0x951   :  { %2784 = vrcp.f32 %v1005_v29 }
 0x952   :  { %1166 = vrot.lane.b32.xlu0 %v2467_v25, %s2860_s22  ;;  %2786 = vrcp.f32 %v1154_v31 }
 0x95b   :  { %v2785_v32 = vpop.eup %2784 }
 0x95c   :  { %v2787_v35 = vpop.eup %2786 }
 0x9bc   :  { %v1023_v33 = vpop.permute.xlu0 %1022 }
 0x9bd   :  { %v1025_v34 = vmul.f32 %v2785_v32, %v1023_v33 }
 0x9bf   :  { %1027 = vrot.lane.b32.xlu1 %v1025_v34, %s2860_s22 }
 0x9c0   :  { %v1172_v36 = vpop.permute.xlu1 %1171  ;;  %v1018_v38 = vpop.permute.xlu0 %1017 }
 0x9c1   :  { %v1174_v37 = vmul.f32 %v2787_v35, %v1172_v36  ;;  %v1020_v39 = vmul.f32 %v2785_v32, %v1018_v38 }
 0x9c3   :  { %1176 = vrot.lane.b32.xlu1 %v1174_v37, %s2860_s22 }
 0x9c4   :  { %v1167_v40 = vpop.permute.xlu0 %1166 }
 0x9c5   :  { %v1169_v43 = vmul.f32 %v2787_v35, %v1167_v40 }
 0xa31   :  { %v1028_v41 = vpop.permute.xlu1 %1027 }
 0xa32   :  { %v1030_v42 = vadd.f32 %v1028_v41, %v1020_v39 }
 0xa34   :  { %2788 = vtanh.f32 %v1030_v42  ;;  %v1056_v61 = vrot.slane %v1030_v42, %v2952_v53 }
 0xa35   :  { %v1177_v44 = vpop.permute.xlu1 %1176 }
 0xa36   :  { %v1179_v45 = vadd.f32 %v1177_v44, %v1169_v43 }
 0xa38   :  { %2790 = vtanh.f32 %v1179_v45  ;;  %v1205_v63 = vrot.slane %v1179_v45, %v2952_v53 }
 0xa3e   :  { %v2789_v46 = vpop.eup %2788 }
 0xa3f   :  { %1033 = vrot.lane.b32.xlu0 %v2789_v46, %s2862_s28 }
 0xa42   :  { %v2791_v47 = vpop.eup %2790 }
 0xa43   :  { %1182 = vrot.lane.b32.xlu1 %v2791_v47, %s2862_s28 }
 0xab1   :  { %v1034_v50 = vpop.permute.xlu0 %1033 }
 0xab2   :  { %v3080_v52 = vmul.f32 %v2785_v32, %v1034_v50 }
 0xab4   :  { %v1044_v58 = vrot.slane %v3080_v52, %v2952_v53 }
 0xab5   :  { %v1183_v59 = vpop.permute.xlu1 %1182 }
 0xab6   :  { %v3084_v60 = vmul.f32 %v2787_v35, %v1183_v59  ;;  %1045 = vrot.lane.b32.xlu0 %v1044_v58, %s2864_s29 }
 0xab8   :  { %v1193_v62 = vrot.slane %v3084_v60, %v2952_v53 }
 0xaba   :  { %1194 = vrot.lane.b32.xlu1 %v1193_v62, %s2864_s29  ;;  %1057 = vrot.lane.b32.xlu0 %v1056_v61, %s2865_s30 }
 0xabe   :  { %1206 = vrot.lane.b32.xlu1 %v1205_v63, %s2865_s30 }
 0xb28   :  { %v1046_v3 = vpop.permute.xlu0 %1045 }
 0xb29   :  { %1048 = vst.msk [vmem:[#allocation2] sm:$0x3] %vm54_vm0, %v1046_v3 }
 0xb2c   :  { %v1195_v4 = vpop.permute.xlu1 %1194  ;;  %v1058_v5 = vpop.permute.xlu0 %1057 }
 0xb2d   :  { %1197 = vst.msk [vmem:[#allocation4] sm:$0x3] %vm54_vm0, %v1195_v4  ;;  %1060 = vst.msk [vmem:[#allocation3] sm:$0x3] %vm54_vm0, %v1058_v5 }
 0xb30   :  { %v1207_v6 = vpop.permute.xlu1 %1206  ;;  %v1246_v7 = vld [vmem:[#allocation2] sm:$0x3] }
 0xb31   :  { %1209 = vst.msk [vmem:[#allocation5] sm:$0x3] %vm54_vm0, %v1207_v6  ;;  %v1249_v8 = vpack.c.bf16 %v1246_v7, %v1246_v7 }
 0xb33   :  { %2632 = vmatmul.mubr.msk.bf16.vlgmr.msra.gmra.mrb[16].mxu0 %vm74_vm2, %v1249_v8 }
 0xb34   :  { %v1387_v9 = vld [vmem:[#allocation4] sm:$0x3]  ;;  %2642 = vmatpush3.bf16.msra.mxu0 %v2901_v1  ;;  %2643 = vmatprep.mubr.msk.bf16.mxu0 %vm2859_vm1, %v2858_v0  ;;  %v2473_v27 = vld.sshfl [vmem:[#allocation3] sm:$0x3 pattern:$0x76325410] }
 0xb35   :  { %v1390_v10 = vpack.c.bf16 %v1387_v9, %v1387_v9  ;;  %2653 = vmatprep.subr.bf16.mxu0 %v2858_v0 }
 0xb37   :  { %2638 = vmatmul.mubr.msk.bf16.vlgmr.msra.gmra.mrb[16].mxu1 %vm74_vm2, %v1390_v10 }
 0xb38   :  { %2648 = vmatpush3.bf16.msra.mxu1 %v2915_v2  ;;  %2649 = vmatprep.mubr.msk.bf16.mxu1 %vm2859_vm1, %v2858_v0  ;;  %v2479_v28 = vld.sshfl [vmem:[#allocation5] sm:$0x3 pattern:$0x76325410] }
 0xb39   :  { %2659 = vmatprep.subr.bf16.mxu1 %v2858_v0 }
 0xc06   :  { %v1287_v14 = vpop.f32.mrb[16].mxu0 }
 0xc07   :  { %v1293_v15 = vadd.f32 %v1287_v14, %v1248_v12  ;;  %v2633_v16 = vpop.f32.mrb[17].mxu0 }
 0xc08   :  { %v1290_v18 = vpop.f32.mrb[18].mxu0  ;;  %v2482_v16 = vld [vmem:[%s3616_s0 + $0x5] sm:$0x1] }
 0xc09   :  { %2792 = vtanh.f32 %v1293_v15  ;;  %v2634_v19 = vpop.f32.mrb[19].mxu0  ;;  %v2472_v29 = vmul.f32 -1.442695, %v1293_v15 }
 0xc0a   :  { %v1428_v20 = vpop.f32.mrb[16].mxu1 }
 0xc0b   :  { %v1434_v21 = vadd.f32 %v1428_v20, %v1389_v17  ;;  %v2639_v22 = vpop.f32.mrb[17].mxu1  ;;  %v2488_v17 = vld [vmem:[%s3617_s1 + $0x2] sm:$0x1] }
 0xc0c   :  { %v1431_v23 = vpop.f32.mrb[18].mxu1 }
 0xc0d   :  { %2794 = vtanh.f32 %v1434_v21  ;;  %v2640_v24 = vpop.f32.mrb[19].mxu1  ;;  %v2478_v30 = vmul.f32 -1.442695, %v1434_v21  ;;  %v1683_v21 = vunpack.c.l.bf16 %v2488_v17 }
 0xc0e   :  { %2796 = vpow2.f32 %v2472_v29 }
 0xc0f   :  { %2798 = vpow2.f32 %v2478_v30 }
 0xc13   :  { %v2793_v25 = vpop.eup %2792 }
 0xc14   :  { %1314 = vrot.lane.b32.xlu0 %v2793_v25, %s2861_s27 }
 0xc17   :  { %v2795_v26 = vpop.eup %2794 }
 0xc18   :  { %1455 = vrot.lane.b32.xlu1 %v2795_v26, %s2861_s27  ;;  %1309 = vrot.lane.b32.xlu0 %v2473_v27, %s2860_s22  ;;  %v2797_v31 = vpop.eup %2796 }
 0xc19   :  { %v1297_v32 = vadd.f32 1.0, %v2797_v31  ;;  %v2799_v33 = vpop.eup %2798 }
 0xc1a   :  { %v1438_v34 = vadd.f32 1.0, %v2799_v33 }
 0xc1b   :  { %2800 = vrcp.f32 %v1297_v32 }
 0xc1c   :  { %1450 = vrot.lane.b32.xlu0 %v2479_v28, %s2860_s22  ;;  %2802 = vrcp.f32 %v1438_v34 }
 0xc25   :  { %v2801_v35 = vpop.eup %2800 }
 0xc26   :  { %v2803_v38 = vpop.eup %2802 }
 0xc86   :  { %v1315_v36 = vpop.permute.xlu0 %1314 }
 0xc87   :  { %v1317_v37 = vmul.f32 %v2801_v35, %v1315_v36 }
 0xc89   :  { %1319 = vrot.lane.b32.xlu1 %v1317_v37, %s2860_s22 }
 0xc8a   :  { %v1456_v39 = vpop.permute.xlu1 %1455  ;;  %v1310_v41 = vpop.permute.xlu0 %1309 }
 0xc8b   :  { %v1458_v40 = vmul.f32 %v2803_v38, %v1456_v39  ;;  %v1312_v42 = vmul.f32 %v2801_v35, %v1310_v41 }
 0xc8d   :  { %1460 = vrot.lane.b32.xlu1 %v1458_v40, %s2860_s22 }
 0xc8e   :  { %v1451_v43 = vpop.permute.xlu0 %1450 }
 0xc8f   :  { %v1453_v46 = vmul.f32 %v2803_v38, %v1451_v43 }
 0xcfb   :  { %v1320_v44 = vpop.permute.xlu1 %1319 }
 0xcfc   :  { %v1322_v45 = vadd.f32 %v1320_v44, %v1312_v42 }
 0xcfe   :  { %2804 = vtanh.f32 %v1322_v45  ;;  %v1348_v5 = vrot.slane %v1322_v45, %v2952_v53 }
 0xcff   :  { %v1461_v47 = vpop.permute.xlu1 %1460 }
 0xd00   :  { %v1463_v50 = vadd.f32 %v1461_v47, %v1453_v46 }
 0xd02   :  { %2806 = vtanh.f32 %v1463_v50  ;;  %v1489_v7 = vrot.slane %v1463_v50, %v2952_v53 }
 0xd08   :  { %v2805_v58 = vpop.eup %2804 }
 0xd09   :  { %1325 = vrot.lane.b32.xlu0 %v2805_v58, %s2862_s28 }
 0xd0c   :  { %v2807_v59 = vpop.eup %2806 }
 0xd0d   :  { %1466 = vrot.lane.b32.xlu1 %v2807_v59, %s2862_s28 }
 0xd7b   :  { %v1326_v61 = vpop.permute.xlu0 %1325 }
 0xd7c   :  { %v3122_v62 = vmul.f32 %v2801_v35, %v1326_v61 }
 0xd7e   :  { %v1336_v63 = vrot.slane %v3122_v62, %v2952_v53 }
 0xd7f   :  { %v1467_v3 = vpop.permute.xlu1 %1466 }
 0xd80   :  { %v3126_v4 = vmul.f32 %v2803_v38, %v1467_v3  ;;  %1337 = vrot.lane.b32.xlu0 %v1336_v63, %s2864_s29 }
 0xd82   :  { %v1477_v6 = vrot.slane %v3126_v4, %v2952_v53 }
 0xd84   :  { %1478 = vrot.lane.b32.xlu1 %v1477_v6, %s2864_s29  ;;  %1349 = vrot.lane.b32.xlu0 %v1348_v5, %s2865_s30 }
 0xd88   :  { %1490 = vrot.lane.b32.xlu1 %v1489_v7, %s2865_s30 }
 0xdf2   :  { %v1338_v8 = vpop.permute.xlu0 %1337 }
 0xdf3   :  { %1340 = vst.msk [vmem:[#allocation2] sm:$0x3] %vm54_vm0, %v1338_v8 }
 0xdf6   :  { %v1479_v9 = vpop.permute.xlu1 %1478  ;;  %v1350_v10 = vpop.permute.xlu0 %1349 }
 0xdf7   :  { %1481 = vst.msk [vmem:[#allocation4] sm:$0x3] %vm54_vm0, %v1479_v9  ;;  %1352 = vst.msk [vmem:[#allocation3] sm:$0x3] %vm54_vm0, %v1350_v10 }
 0xdfa   :  { %v1491_v11 = vpop.permute.xlu1 %1490  ;;  %v1534_v12 = vld [vmem:[#allocation2] sm:$0x3] }
 0xdfb   :  { %1493 = vst.msk [vmem:[#allocation5] sm:$0x3] %vm54_vm0, %v1491_v11  ;;  %v1537_v13 = vpack.c.bf16 %v1534_v12, %v1534_v12 }
 0xdfd   :  { %2644 = vmatmul.mubr.msk.bf16.vlgmr.msra.gmra.mrb[20].mxu0 %vm74_vm2, %v1537_v13 }
 0xdfe   :  { %v1681_v14 = vld [vmem:[#allocation4] sm:$0x3]  ;;  %2654 = vmatpush3.bf16.msra.mxu0 %v2901_v1  ;;  %2655 = vmatprep.mubr.msk.bf16.mxu0 %vm2859_vm1, %v2858_v0  ;;  %v1536_v1 = vunpack.c.l.bf16 %v2482_v16  ;;  %v2485_v30 = vld.sshfl [vmem:[#allocation3] sm:$0x3 pattern:$0x76325410] }
 0xdff   :  { %v1684_v15 = vpack.c.bf16 %v1681_v14, %v1681_v14  ;;  %2665 = vmatprep.subr.bf16.mxu0 %v2858_v0 }
 0xe01   :  { %2650 = vmatmul.mubr.msk.bf16.vlgmr.msra.gmra.mrb[20].mxu1 %vm74_vm2, %v1684_v15 }
 0xe02   :  { %2660 = vmatpush3.bf16.msra.mxu1 %v2915_v2  ;;  %2661 = vmatprep.mubr.msk.bf16.mxu1 %vm2859_vm1, %v2858_v0  ;;  %v2491_v31 = vld.sshfl [vmem:[#allocation5] sm:$0x3 pattern:$0x76325410] }
 0xe03   :  { %2671 = vmatprep.subr.bf16.mxu1 %v2858_v0 }
 0xed0   :  { %v1575_v18 = vpop.f32.mrb[20].mxu0 }
 0xed1   :  { %v1581_v19 = vadd.f32 %v1575_v18, %v1536_v1  ;;  %v2645_v20 = vpop.f32.mrb[21].mxu0 }
 0xed2   :  { %v1578_v22 = vpop.f32.mrb[22].mxu0 }
 0xed3   :  { %2808 = vtanh.f32 %v1581_v19  ;;  %v2646_v2 = vpop.f32.mrb[23].mxu0  ;;  %v2484_v32 = vmul.f32 -1.442695, %v1581_v19  ;;  %v2856_v19 = vld [vmem:[%s3614_s2] sm:$0xff]  }
 0xed4   :  { %v1722_v23 = vpop.f32.mrb[20].mxu1  ;;  %v2494_v22 = vld [vmem:[%s3616_s0 + $0x6] sm:$0x1] }
 0xed5   :  { %v1728_v24 = vadd.f32 %v1722_v23, %v1683_v21  ;;  %v2651_v25 = vpop.f32.mrb[21].mxu1  ;;  %v2857_v21 = vld [vmem:[%s3615_s3] sm:$0xff]   ;;  %v1824_v2 = vunpack.c.l.bf16 %v2494_v22 }
 0xed6   :  { %v1725_v26 = vpop.f32.mrb[22].mxu1  ;;  %v2500_v23 = vld [vmem:[%s3617_s1 + $0x1] sm:$0x1] }
 0xed7   :  { %2810 = vtanh.f32 %v1728_v24  ;;  %v2652_v27 = vpop.f32.mrb[23].mxu1  ;;  %v2490_v33 = vmul.f32 -1.442695, %v1728_v24 }
 0xed8   :  { %2812 = vpow2.f32 %v2484_v32  ;;  %v1965_v27 = vunpack.c.l.bf16 %v2500_v23 }
 0xed9   :  { %2814 = vpow2.f32 %v2490_v33 }
 0xedd   :  { %v2809_v28 = vpop.eup %2808 }
 0xede   :  { %1602 = vrot.lane.b32.xlu0 %v2809_v28, %s2861_s27 }
 0xee1   :  { %v2811_v29 = vpop.eup %2810 }
 0xee2   :  { %1749 = vrot.lane.b32.xlu1 %v2811_v29, %s2861_s27  ;;  %1597 = vrot.lane.b32.xlu0 %v2485_v30, %s2860_s22  ;;  %v2813_v34 = vpop.eup %2812 }
 0xee3   :  { %v1585_v35 = vadd.f32 1.0, %v2813_v34  ;;  %v2815_v36 = vpop.eup %2814 }
 0xee4   :  { %v1732_v37 = vadd.f32 1.0, %v2815_v36 }
 0xee5   :  { %2816 = vrcp.f32 %v1585_v35 }
 0xee6   :  { %1744 = vrot.lane.b32.xlu0 %v2491_v31, %s2860_s22  ;;  %2818 = vrcp.f32 %v1732_v37 }
 0xeef   :  { %v2817_v38 = vpop.eup %2816 }
 0xef0   :  { %v2819_v41 = vpop.eup %2818 }
 0xf50   :  { %v1603_v39 = vpop.permute.xlu0 %1602 }
 0xf51   :  { %v1605_v40 = vmul.f32 %v2817_v38, %v1603_v39 }
 0xf53   :  { %1607 = vrot.lane.b32.xlu1 %v1605_v40, %s2860_s22 }
 0xf54   :  { %v1750_v42 = vpop.permute.xlu1 %1749  ;;  %v1598_v44 = vpop.permute.xlu0 %1597 }
 0xf55   :  { %v1752_v43 = vmul.f32 %v2819_v41, %v1750_v42  ;;  %v1600_v45 = vmul.f32 %v2817_v38, %v1598_v44 }
 0xf57   :  { %1754 = vrot.lane.b32.xlu1 %v1752_v43, %s2860_s22 }
 0xf58   :  { %v1745_v46 = vpop.permute.xlu0 %1744 }
 0xf59   :  { %v1747_v58 = vmul.f32 %v2819_v41, %v1745_v46 }
 0xfc5   :  { %v1608_v47 = vpop.permute.xlu1 %1607 }
 0xfc6   :  { %v1610_v50 = vadd.f32 %v1608_v47, %v1600_v45 }
 0xfc8   :  { %2820 = vtanh.f32 %v1610_v50  ;;  %v1636_v10 = vrot.slane %v1610_v50, %v2952_v53 }
 0xfc9   :  { %v1755_v59 = vpop.permute.xlu1 %1754 }
 0xfca   :  { %v1757_v61 = vadd.f32 %v1755_v59, %v1747_v58 }
 0xfcc   :  { %2822 = vtanh.f32 %v1757_v61  ;;  %v1783_v12 = vrot.slane %v1757_v61, %v2952_v53 }
 0xfd2   :  { %v2821_v63 = vpop.eup %2820 }
 0xfd3   :  { %1613 = vrot.lane.b32.xlu0 %v2821_v63, %s2862_s28 }
 0xfd6   :  { %v2823_v3 = vpop.eup %2822 }
 0xfd7   :  { %1760 = vrot.lane.b32.xlu1 %v2823_v3, %s2862_s28 }
0x1045   :  { %v1614_v5 = vpop.permute.xlu0 %1613 }
0x1046   :  { %v3164_v6 = vmul.f32 %v2817_v38, %v1614_v5 }
0x1048   :  { %v1624_v7 = vrot.slane %v3164_v6, %v2952_v53 }
0x1049   :  { %v1761_v8 = vpop.permute.xlu1 %1760 }
0x104a   :  { %v3168_v9 = vmul.f32 %v2819_v41, %v1761_v8  ;;  %1625 = vrot.lane.b32.xlu0 %v1624_v7, %s2864_s29 }
0x104c   :  { %v1771_v11 = vrot.slane %v3168_v9, %v2952_v53 }
0x104e   :  { %1772 = vrot.lane.b32.xlu1 %v1771_v11, %s2864_s29  ;;  %1637 = vrot.lane.b32.xlu0 %v1636_v10, %s2865_s30 }
0x1052   :  { %1784 = vrot.lane.b32.xlu1 %v1783_v12, %s2865_s30 }
0x10bc   :  { %v1626_v13 = vpop.permute.xlu0 %1625 }
0x10bd   :  { %1628 = vst.msk [vmem:[#allocation2] sm:$0x3] %vm54_vm0, %v1626_v13 }
0x10c0   :  { %v1773_v14 = vpop.permute.xlu1 %1772  ;;  %v1638_v15 = vpop.permute.xlu0 %1637 }
0x10c1   :  { %1775 = vst.msk [vmem:[#allocation4] sm:$0x3] %vm54_vm0, %v1773_v14  ;;  %1640 = vst.msk [vmem:[#allocation3] sm:$0x3] %vm54_vm0, %v1638_v15 }
0x10c4   :  { %v1785_v16 = vpop.permute.xlu1 %1784  ;;  %v1822_v1 = vld [vmem:[#allocation2] sm:$0x3] }
0x10c5   :  { %1787 = vst.msk [vmem:[#allocation5] sm:$0x3] %vm54_vm0, %v1785_v16  ;;  %v1825_v17 = vpack.c.bf16 %v1822_v1, %v1822_v1 }
0x10c7   :  { %2656 = vmatmul.mubr.msk.bf16.vlgmr.msra.gmra.mrb[24].mxu0 %vm74_vm2, %v1825_v17 }
0x10c8   :  { %v1963_v18 = vld [vmem:[#allocation4] sm:$0x3]  ;;  %2666 = vmatpush3.bf16.msra.mxu0 %v2856_v19  ;;  %2667 = vmatprep.mubr.msk.bf16.mxu0 %vm2859_vm1, %v2858_v0  ;;  %v2497_v36 = vld.sshfl [vmem:[#allocation3] sm:$0x3 pattern:$0x76325410] }
0x10c9   :  { %v1966_v20 = vpack.c.bf16 %v1963_v18, %v1963_v18 }
0x10cb   :  { %2662 = vmatmul.mubr.msk.bf16.vlgmr.msra.gmra.mrb[24].mxu1 %vm74_vm2, %v1966_v20 }
0x10cc   :  { %2672 = vmatpush3.bf16.msra.mxu1 %v2857_v21  ;;  %2673 = vmatprep.mubr.msk.bf16.mxu1 %vm2859_vm1, %v2858_v0  ;;  %v2503_v37 = vld.sshfl [vmem:[#allocation5] sm:$0x3 pattern:$0x76325410]  ;;  %vm3394_vm1 = vmand %vm943_vm12, %vm944_vm14 }
0x119a   :  { %v1863_v24 = vpop.f32.mrb[24].mxu0 }
0x119b   :  { %v1869_v25 = vadd.f32 %v1863_v24, %v1824_v2  ;;  %v2657_v26 = vpop.f32.mrb[25].mxu0 }
0x119c   :  { %v1866_v28 = vpop.f32.mrb[26].mxu0 }
0x119d   :  { %2824 = vtanh.f32 %v1869_v25  ;;  %v2658_v29 = vpop.f32.mrb[27].mxu0  ;;  %v2496_v38 = vmul.f32 -1.442695, %v1869_v25 }
0x119e   :  { %v2004_v30 = vpop.f32.mrb[24].mxu1  ;;  %v2253_v29 = vld [vmem:[%s3617_s1] sm:$0x1] }
0x119f   :  { %v2010_v31 = vadd.f32 %v2004_v30, %v1965_v27  ;;  %v2663_v32 = vpop.f32.mrb[25].mxu1  ;;  %v2506_v27 = vld [vmem:[%s3616_s0 + $0x7] sm:$0x1] }
0x11a0   :  { %v2007_v0 = vpop.f32.mrb[26].mxu1  ;;  %v2110_v28 = vunpack.c.l.bf16 %v2506_v27 }
0x11a1   :  { %2826 = vtanh.f32 %v2010_v31  ;;  %v2664_v33 = vpop.f32.mrb[27].mxu1  ;;  %v2502_v39 = vmul.f32 -1.442695, %v2010_v31  ;;  %v2256_v0 = vunpack.c.l.bf16 %v2253_v29 }
0x11a2   :  { %2828 = vpow2.f32 %v2496_v38 }
0x11a3   :  { %2830 = vpow2.f32 %v2502_v39 }
0x11a7   :  { %v2825_v34 = vpop.eup %2824 }
0x11a8   :  { %1890 = vrot.lane.b32.xlu0 %v2825_v34, %s2861_s27 }
0x11ab   :  { %v2827_v35 = vpop.eup %2826 }
0x11ac   :  { %2031 = vrot.lane.b32.xlu1 %v2827_v35, %s2861_s27  ;;  %1885 = vrot.lane.b32.xlu0 %v2497_v36, %s2860_s22  ;;  %v2829_v40 = vpop.eup %2828 }
0x11ad   :  { %v1873_v41 = vadd.f32 1.0, %v2829_v40  ;;  %v2831_v42 = vpop.eup %2830 }
0x11ae   :  { %v2014_v43 = vadd.f32 1.0, %v2831_v42 }
0x11af   :  { %2832 = vrcp.f32 %v1873_v41 }
0x11b0   :  { %2026 = vrot.lane.b32.xlu0 %v2503_v37, %s2860_s22  ;;  %2834 = vrcp.f32 %v2014_v43 }
0x11b9   :  { %v2833_v44 = vpop.eup %2832 }
0x11ba   :  { %v2835_v47 = vpop.eup %2834 }
0x121a   :  { %v1891_v45 = vpop.permute.xlu0 %1890 }
0x121b   :  { %v1893_v46 = vmul.f32 %v2833_v44, %v1891_v45 }
0x121d   :  { %1895 = vrot.lane.b32.xlu1 %v1893_v46, %s2860_s22 }
0x121e   :  { %v2032_v50 = vpop.permute.xlu1 %2031  ;;  %v1886_v59 = vpop.permute.xlu0 %1885 }
0x121f   :  { %v2034_v58 = vmul.f32 %v2835_v47, %v2032_v50  ;;  %v1888_v61 = vmul.f32 %v2833_v44, %v1886_v59 }
0x1221   :  { %2036 = vrot.lane.b32.xlu1 %v2034_v58, %s2860_s22 }
0x1222   :  { %v2027_v63 = vpop.permute.xlu0 %2026 }
0x1223   :  { %v2029_v7 = vmul.f32 %v2835_v47, %v2027_v63 }
0x128f   :  { %v1896_v3 = vpop.permute.xlu1 %1895 }
0x1290   :  { %v1898_v5 = vadd.f32 %v1896_v3, %v1888_v61 }
0x1292   :  { %2836 = vtanh.f32 %v1898_v5  ;;  %v1924_v17 = vrot.slane %v1898_v5, %v2952_v53 }
0x1293   :  { %v2037_v8 = vpop.permute.xlu1 %2036 }
0x1294   :  { %v2039_v10 = vadd.f32 %v2037_v8, %v2029_v7  ;;  %v2866_v8 = vmov 1966171168  }
0x1296   :  { %2838 = vtanh.f32 %v2039_v10  ;;  %v2065_v19 = vrot.slane %v2039_v10, %v2952_v53  ;;  %v180_v10 = vunpack.c.l.s4 %v2866_v8 }
0x129c   :  { %v2837_v11 = vpop.eup %2836 }
0x129d   :  { %1901 = vrot.lane.b32.xlu0 %v2837_v11, %s2862_s28  ;;  %v181_v11 = vunpack.c.0.s8 %v180_v10 }
0x12a0   :  { %v2839_v12 = vpop.eup %2838 }
0x12a1   :  { %2042 = vrot.lane.b32.xlu1 %v2839_v12, %s2862_s28 }
0x130f   :  { %v1902_v13 = vpop.permute.xlu0 %1901 }
0x1310   :  { %v3208_v14 = vmul.f32 %v2833_v44, %v1902_v13  ;;  %v3247_v13 = vsub.s32 %v181_v11, %v2949_v51 }
0x1312   :  { %v1912_v15 = vrot.slane %v3208_v14, %v2952_v53  ;;  %v1067_v8 = vrot.slane %v3080_v52, %v3247_v13  ;;  %v1647_v52 = vrot.slane %v3164_v6, %v3247_v13 }
0x1313   :  { %v2043_v16 = vpop.permute.xlu1 %2042 }
0x1314   :  { %v3212_v1 = vmul.f32 %v2835_v47, %v2043_v16  ;;  %1913 = vrot.lane.b32.xlu0 %v1912_v15, %s2864_s29  ;;  %v333_v16 = vrot.slane %v2958_v57, %v3247_v13  ;;  %v773_v57 = vrot.slane %v3038_v48, %v3247_v13 }
0x1316   :  { %v2053_v18 = vrot.slane %v3212_v1, %v2952_v53 }
0x1318   :  { %2054 = vrot.lane.b32.xlu1 %v2053_v18, %s2864_s29  ;;  %1925 = vrot.lane.b32.xlu0 %v1924_v17, %s2865_s30 }
0x131c   :  { %2066 = vrot.lane.b32.xlu1 %v2065_v19, %s2865_s30 }
0x1386   :  { %v1914_v20 = vpop.permute.xlu0 %1913 }
0x1387   :  { %1916 = vst.msk [vmem:[#allocation2] sm:$0x3] %vm54_vm0, %v1914_v20 }
0x138a   :  { %v2055_v21 = vpop.permute.xlu1 %2054  ;;  %v1926_v22 = vpop.permute.xlu0 %1925 }
0x138b   :  { %2057 = vst.msk [vmem:[#allocation4] sm:$0x3] %vm54_vm0, %v2055_v21  ;;  %1928 = vst.msk [vmem:[#allocation3] sm:$0x3] %vm54_vm0, %v1926_v22  ;;  %v334_v21 = vcombine.high %v333_v16, %v333_v16 }
0x138d   :  { %v2520_v51 = vpack.c.bf16 %v334_v21, %v334_v21 }
0x138e   :  { %v2067_v2 = vpop.permute.xlu1 %2066  ;;  %v2108_v23 = vld [vmem:[#allocation2] sm:$0x3] }
0x138f   :  { %2069 = vst.msk [vmem:[#allocation5] sm:$0x3] %vm54_vm0, %v2067_v2  ;;  %v2111_v24 = vpack.c.bf16 %v2108_v23, %v2108_v23  ;;  %v917_v23 = vrot.slane %v3042_v56, %v3247_v13 }
0x1391   :  { %2668 = vmatmul.mubr.msk.bf16.vlgmr.msra.gmra.mrb[28].mxu0 %vm74_vm2, %v2111_v24  ;;  %v2519_v24 = vpack.c.bf16 %v333_v16, %v333_v16  ;;  %v918_v27 = vcombine.high %v917_v23, %v917_v23  ;;  %v2527_v48 = vpack.c.bf16 %v917_v23, %v917_v23 }
0x1392   :  { %v2254_v25 = vld [vmem:[#allocation4] sm:$0x3]  ;;  %v2509_v42 = vld.sshfl [vmem:[#allocation3] sm:$0x3 pattern:$0x76325410] }
0x1393   :  { %v2257_v26 = vpack.c.bf16 %v2254_v25, %v2254_v25  ;;  %v1500_v25 = vrot.slane %v3126_v4, %v3247_v13 }
0x1395   :  { %2674 = vmatmul.mubr.msk.bf16.vlgmr.msra.gmra.mrb[28].mxu1 %vm74_vm2, %v2257_v26  ;;  %v185_v26 = vrot.slane %v2954_v54, %v3247_v13  ;;  %v1359_v54 = vrot.slane %v3122_v62, %v3247_v13  ;;  %vm1093_vm2 = vsmask.f32 7942 }
0x1396   :  { %v2514_v43 = vld.sshfl [vmem:[#allocation5] sm:$0x3 pattern:$0x76325410]  ;;  %vm3420_vm7 = vmand %vm793_vm8, %vm1093_vm2 }
0x1397   :  { %v2517_v56 = vpack.c.bf16 %v185_v26, %v185_v26  ;;  %v2533_v62 = vpack.c.bf16 %v1359_v54, %v1359_v54  ;;  %vm3443_vm8 = vmand %vm359_vm6, %vm650_vm4  ;;  %vm507_vm6 = vsmask.f32 7938 }
0x1398   :  { %vm508_vm9 = vmand %vm203_vm3, %vm507_vm6 }
0x1464   :  { %v2149_v30 = vpop.f32.mrb[28].mxu0 }
0x1465   :  { %v2155_v31 = vadd.f32 %v2149_v30, %v2110_v28  ;;  %v2669_v32 = vpop.f32.mrb[29].mxu0  ;;  %v350_v28 = vshll.u32 %v2520_v51, 16  ;;  %v346_v30 = vshll.u32 %v2519_v24, 16 }
0x1466   :  { %v2152_v33 = vpop.f32.mrb[30].mxu0  ;;  %v1501_v32 = vcombine.high %v1500_v25, %v1500_v25 }
0x1467   :  { %2840 = vtanh.f32 %v2155_v31  ;;  %v2670_v34 = vpop.f32.mrb[31].mxu0  ;;  %v2508_v44 = vmul.f32 -1.442695, %v2155_v31  ;;  %v774_v31 = vcombine.high %v773_v57, %v773_v57  ;;  %v352_v33 = vrot.slane %v350_v28, 5 }
0x1468   :  { %v2295_v35 = vpop.f32.mrb[28].mxu1  ;;  %v186_v34 = vcombine.high %v185_v26, %v185_v26  ;;  %v348_v4 = vrot.slane %v346_v30, 5 }
0x1469   :  { %v2301_v36 = vadd.f32 %v2295_v35, %v2256_v0  ;;  %v2675_v37 = vpop.f32.mrb[29].mxu1  ;;  %v2528_v0 = vpack.c.bf16 %v918_v27, %v918_v27 }
0x146a   :  { %v2298_v38 = vpop.f32.mrb[30].mxu1  ;;  %v2526_v37 = vpack.c.bf16 %v774_v31, %v774_v31 }
0x146b   :  { %2842 = vtanh.f32 %v2301_v36  ;;  %v2676_v39 = vpop.f32.mrb[31].mxu1  ;;  %v2513_v45 = vmul.f32 -1.442695, %v2301_v36  ;;  %v2536_v36 = vpack.c.bf16 %v1501_v32, %v1501_v32  ;;  %v2525_v38 = vpack.c.bf16 %v773_v57, %v773_v57 }
0x146c   :  { %2844 = vpow2.f32 %v2508_v44  ;;  %v934_v39 = vshll.u32 %v2528_v0, 16  ;;  %v930_v44 = vshll.u32 %v2527_v48, 16  ;;  %v2529_v0 = vpack.c.bf16 %v1067_v8, %v1067_v8 }
0x146d   :  { %2846 = vpow2.f32 %v2513_v45  ;;  %v1360_v45 = vcombine.high %v1359_v54, %v1359_v54 }
0x146f   :  { %v2534_v10 = vpack.c.bf16 %v1360_v45, %v1360_v45 }
0x1471   :  { %v2841_v40 = vpop.eup %2840  ;;  %v1372_v21 = vrot.slane %v2534_v10, 6 }
0x1472   :  { %2176 = vrot.lane.b32.xlu0 %v2841_v40, %s2861_s27  ;;  %v2686_v40 = vpack.i.bf16 %v352_v33, %v348_v4 }
0x1475   :  { %v2843_v41 = vpop.eup %2842 }
0x1476   :  { %2322 = vrot.lane.b32.xlu1 %v2843_v41, %s2861_s27  ;;  %2171 = vrot.lane.b32.xlu0 %v2509_v42, %s2860_s22  ;;  %v2845_v46 = vpop.eup %2844  ;;  %v2518_v41 = vpack.c.bf16 %v186_v34, %v186_v34  ;;  %v2535_v42 = vpack.c.bf16 %v1500_v25, %v1500_v25  ;;  %v1216_v34 = vrot.slane %v3084_v60, %v3247_v13 }
0x1477   :  { %v2159_v47 = vadd.f32 1.0, %v2845_v46  ;;  %v2847_v50 = vpop.eup %2846  ;;  %v1517_v46 = vshll.u32 %v2536_v36, 16  ;;  %v1080_v36 = vshll.u32 %v2529_v0, 16  ;;  %v799_v0 = vld [vmem:[%s3618_s4 + $0x4] sm:$0x2] }
0x1478   :  { %v2305_v58 = vadd.f32 1.0, %v2847_v50  ;;  %v785_v50 = vrot.slane %v2525_v38, 7 }
0x1479   :  { %2848 = vrcp.f32 %v2159_v47  ;;  %v786_v47 = vrot.slane %v2526_v37, 7  ;;  %v1519_v11 = vrot.slane %v1517_v46, 7  ;;  %v2537_v37 = vpack.c.bf16 %v1647_v52, %v1647_v52 }
0x147a   :  { %2317 = vrot.lane.b32.xlu0 %v2514_v43, %s2860_s22  ;;  %2850 = vrcp.f32 %v2305_v58  ;;  %v483_v43 = vrot.slane %v2996_v49, %v3247_v13  ;;  %v1935_v58 = vrot.slane %v3208_v14, %v3247_v13  ;;  %v932_v49 = vrot.slane %v930_v44, 6 }
0x147b   :  { %v1794_v44 = vrot.slane %v3168_v9, %v3247_v13  ;;  %v1082_v60 = vrot.slane %v1080_v36, 7  ;;  %v1660_v45 = vshll.u32 %v2537_v37, 16 }
0x147c   :  { %v2541_v51 = vpack.c.bf16 %v1935_v58, %v1935_v58  ;;  %v2521_v57 = vpack.c.bf16 %v483_v43, %v483_v43 }
0x147e   :  { %v496_v32 = vshll.u32 %v2521_v57, 16 }
0x1483   :  { %v3238_v59 = vpop.eup %2848 }
0x1484   :  { %v3242_v3 = vpop.eup %2850 }
0x14e4   :  { %v2177_v61 = vpop.permute.xlu0 %2176 }
0x14e5   :  { %v2179_v63 = vmul.f32 %v3238_v59, %v2177_v61  ;;  %v2076_v61 = vrot.slane %v3212_v1, %v3247_v13  ;;  %v630_v1 = vrot.slane %v3000_v55, %v3247_v13  ;;  %v1947_v55 = vrot.slane %v2541_v51, 5  ;;  %v209_v51 = vld [vmem:[%s3618_s4 + $0x4] sm:$0x1] }
0x14e7   :  { %2181 = vrot.lane.b32.xlu1 %v2179_v63, %s2860_s22  ;;  %v936_v63 = vrot.slane %v934_v39, 6  ;;  %v2077_v16 = vcombine.high %v2076_v61, %v2076_v61  ;;  %v2543_v25 = vpack.c.bf16 %v2076_v61, %v2076_v61  ;;  %v631_v27 = vcombine.high %v630_v1, %v630_v1 }
0x14e8   :  { %v2323_v5 = vpop.permute.xlu1 %2322  ;;  %v2172_v12 = vpop.permute.xlu0 %2171  ;;  %v2523_v6 = vpack.c.bf16 %v630_v1, %v630_v1  ;;  %v1662_v61 = vrot.slane %v1660_v45, 6 }
0x14e9   :  { %v2325_v7 = vmul.f32 %v3242_v3, %v2323_v5  ;;  %v2174_v15 = vmul.f32 %v3238_v59, %v2172_v12  ;;  %v1513_v5 = vshll.u32 %v2535_v42, 16  ;;  %v1371_v12 = vrot.slane %v2533_v62, 6 }
0x14ea   :  { %v2691_v14 = vpack.i.bf16 %v936_v63, %v932_v49  ;;  %v2544_v24 = vpack.c.bf16 %v2077_v16, %v2077_v16  ;;  %v2524_v33 = vpack.c.bf16 %v631_v27, %v631_v27  ;;  %v642_v38 = vrot.slane %v2523_v6, 5  ;;  %v206_v16 = vld [vmem:[%s3618_s4] sm:$0x1] }
0x14eb   :  { %2327 = vrot.lane.b32.xlu1 %v2325_v7, %s2860_s22  ;;  %v484_v7 = vcombine.high %v483_v43, %v483_v43  ;;  %v2531_v42 = vpack.c.bf16 %v1216_v34, %v1216_v34  ;;  %v1795_v62 = vcombine.high %v1794_v44, %v1794_v44 }
0x14ec   :  { %v2318_v17 = vpop.permute.xlu0 %2317  ;;  %v2092_v31 = vshll.u32 %v2544_v24, 16  ;;  %v643_v39 = vrot.slane %v2524_v33, 5 }
0x14ed   :  { %v2320_v20 = vmul.f32 %v3242_v3, %v2318_v17  ;;  %v1515_v17 = vrot.slane %v1513_v5, 7  ;;  %v2539_v5 = vpack.c.bf16 %v1794_v44, %v1794_v44 }
0x14ef   :  { %v1806_v49 = vrot.slane %v2539_v5, 7  ;;  %v1529_v5 = vld [vmem:[%s3619_s5 + $0x4] sm:$0x2] }
0x1559   :  { %v2182_v18 = vpop.permute.xlu1 %2181 }
0x155a   :  { %v3252_v19 = vadd.f32 %v2182_v18, %v2174_v15  ;;  %v1936_v15 = vcombine.high %v1935_v58, %v1935_v58  ;;  %v2522_v18 = vpack.c.bf16 %v484_v7, %v484_v7  ;;  %v2540_v7 = vpack.c.bf16 %v1795_v62, %v1795_v62 }
0x155c   :  { %2852 = vtanh.f32 %v3252_v19  ;;  %v2542_v23 = vpack.c.bf16 %v1936_v15, %v1936_v15  ;;  %v499_v26 = vshll.u32 %v2522_v18, 16  ;;  %v2210_v10 = vrot.slane %v3252_v19, %v2952_v53 }
0x155d   :  { %v2328_v22 = vpop.permute.xlu1 %2327 }
0x155e   :  { %v3256_v2 = vadd.f32 %v2328_v22, %v2320_v20  ;;  %v1068_v20 = vcombine.high %v1067_v8, %v1067_v8  ;;  %v2696_v22 = vpack.i.bf16 %v1519_v11, %v1515_v17  ;;  %v1948_v30 = vrot.slane %v2542_v23, 5 }
0x155f   :  { %v2706_v54 = vpack.i.bf16 %v499_v26, %v496_v32  ;;  %v1807_v8 = vrot.slane %v2540_v7, 7  ;;  %v796_v32 = vld [vmem:[%s3618_s4] sm:$0x2] }
0x1560   :  { %2854 = vtanh.f32 %v3256_v2  ;;  %v2530_v28 = vpack.c.bf16 %v1068_v20, %v1068_v20  ;;  %v2356_v62 = vrot.slane %v3256_v2, %v2952_v53  ;;  %v1526_v2 = vld [vmem:[%s3619_s5] sm:$0x2] }
0x1566   :  { %v2853_v29 = vpop.eup %2852 }
0x1567   :  { %2187 = vrot.lane.b32.xlu0 %v2853_v29, %s2862_s28  ;;  %v1648_v29 = vcombine.high %v1647_v52, %v1647_v52 }
0x1569   :  { %v2538_v48 = vpack.c.bf16 %v1648_v29, %v1648_v29 }
0x156a   :  { %v2855_v35 = vpop.eup %2854 }
0x156b   :  { %197 = vrot.lane.b32.xlu0 %v2517_v56, %s2864_s29  ;;  %2333 = vrot.lane.b32.xlu1 %v2855_v35, %s2862_s28  ;;  %v2089_v56 = vshll.u32 %v2543_v25, 16  ;;  %v1084_v35 = vshll.u32 %v2530_v28, 16  ;;  %v1664_v43 = vshll.u32 %v2538_v48, 16  ;;  %v365_v28 = vld [vmem:[%s3619_s5 + $0x4] sm:$0x8] }
0x156d   :  { %v2701_v4 = vpack.i.bf16 %v2092_v31, %v2089_v56 }
0x156f   :  { %2687 = vrot.lane.b32.xlu0 %v2686_v40, %s2864_s29  ;;  %199 = vrot.lane.b32.xlu1 %v2518_v41, %s2864_s29  ;;  %v1217_v40 = vcombine.high %v1216_v34, %v1216_v34  ;;  %v1086_v41 = vrot.slane %v1084_v35, 7 }
0x1571   :  { %v2532_v46 = vpack.c.bf16 %v1217_v40, %v1217_v40  ;;  %v2711_v58 = vpack.i.bf16 %v1086_v41, %v1082_v60 }
0x1573   :  { %789 = vrot.lane.b32.xlu0 %v786_v47, %s2864_s29  ;;  %787 = vrot.lane.b32.xlu1 %v785_v50, %s2864_s29  ;;  %v1228_v47 = vrot.slane %v2531_v42, 6  ;;  %v1666_v50 = vrot.slane %v1664_v43, 6  ;;  %v1229_v63 = vrot.slane %v2532_v46, 6  ;;  %v946_v42 = vld [vmem:[%s3619_s5] sm:$0x4] }
0x1574   :  { %v949_v43 = vld [vmem:[%s3619_s5 + $0x4] sm:$0x4] }
0x1575   :  { %v2716_v9 = vpack.i.bf16 %v1666_v50, %v1662_v61  ;;  %v1382_v50 = vld [vmem:[%s3618_s4 + $0x4] sm:$0x4] }
0x1577   :  { %1373 = vrot.lane.b32.xlu0 %v1371_v12, %s2864_s29  ;;  %2692 = vrot.lane.b32.xlu1 %v2691_v14, %s2864_s29 }
0x157b   :  { %2697 = vrot.lane.b32.xlu0 %v2696_v22, %s2864_s29  ;;  %1375 = vrot.lane.b32.xlu1 %v1372_v21, %s2864_s29 }
0x157f   :  { %1951 = vrot.lane.b32.xlu0 %v1948_v30, %s2864_s29  ;;  %1949 = vrot.lane.b32.xlu1 %v1947_v55, %s2864_s29 }
0x1583   :  { %2707 = vrot.lane.b32.xlu0 %v2706_v54, %s2864_s29  ;;  %2702 = vrot.lane.b32.xlu1 %v2701_v4, %s2864_s29 }
0x1587   :  { %646 = vrot.lane.b32.xlu0 %v643_v39, %s2864_s29  ;;  %644 = vrot.lane.b32.xlu1 %v642_v38, %s2864_s29  ;;  %v1379_v39 = vld [vmem:[%s3618_s4] sm:$0x4] }
0x158b   :  { %1230 = vrot.lane.b32.xlu0 %v1228_v47, %s2864_s29  ;;  %2712 = vrot.lane.b32.xlu1 %v2711_v58, %s2864_s29 }
0x158f   :  { %2717 = vrot.lane.b32.xlu0 %v2716_v9, %s2864_s29  ;;  %1232 = vrot.lane.b32.xlu1 %v1229_v63, %s2864_s29 }
0x1593   :  { %1810 = vrot.lane.b32.xlu0 %v1807_v8, %s2864_s29  ;;  %1808 = vrot.lane.b32.xlu1 %v1806_v49, %s2864_s29 }
0x1597   :  { %2211 = vrot.lane.b32.xlu1 %v2210_v10, %s2865_s30 }
0x15d9   :  { %v2188_v11 = vpop.permute.xlu0 %2187 }
0x15da   :  { %v2190_v12 = vmul.f32 %v3238_v59, %v2188_v11  ;;  %v1955_v11 = vld [vmem:[%s3618_s4] sm:$0x8] }
0x15dc   :  { %v2198_v14 = vrot.slane %v2190_v12, %v2952_v53  ;;  %v2221_v19 = vrot.slane %v2190_v12, %v3247_v13  ;;  %v1958_v12 = vld [vmem:[%s3618_s4 + $0x4] sm:$0x8] }
0x15dd   :  { %v2334_v17 = vpop.permute.xlu1 %2333  ;;  %v198_v18 = vpop.permute.xlu0 %197 }
0x15de   :  { %v2222_v1 = vcombine.high %v2221_v19, %v2221_v19  ;;  %v2545_v20 = vpack.c.bf16 %v2221_v19, %v2221_v19  ;;  %v2336_v21 = vmul.f32 %v3242_v3, %v2334_v17  ;;  %v207_v59 = vsel %vm3313_vm5, %v198_v18, %v206_v16  ;;  %2199 = vrot.lane.b32.xlu0 %v2198_v14, %s2864_s29 }
0x15df   :  { %208 = vst [vmem:[%s3618_s4] sm:$0x1] %v207_v59 }
0x15e0   :  { %v2546_v22 = vpack.c.bf16 %v2222_v1, %v2222_v1  ;;  %v2367_v52 = vrot.slane %v2336_v21, %v3247_v13  ;;  %v2234_v24 = vshll.u32 %v2545_v20, 16  ;;  %v362_v13 = vld [vmem:[%s3619_s5] sm:$0x8]  ;;  %v2344_v54 = vrot.slane %v2336_v21, %v2952_v53  ;;  %v2100_v20 = vld [vmem:[%s3619_s5] sm:$0x1] }
0x15e1   :  { %v200_v3 = vpop.permute.xlu1 %199  ;;  %v2688_v23 = vpop.permute.xlu0 %2687  ;;  %v2103_v21 = vld [vmem:[%s3619_s5 + $0x4] sm:$0x1] }
0x15e2   :  { %v2238_v57 = vshll.u32 %v2546_v22, 16  ;;  %v2368_v25 = vcombine.high %v2367_v52, %v2367_v52  ;;  %v2547_v26 = vpack.c.bf16 %v2367_v52, %v2367_v52  ;;  %v210_v29 = vsel %vm3313_vm5, %v200_v3, %v209_v51 }
0x15e3   :  { %v2690_v55 = vunpack.i.h.bf16 %v2688_v23  ;;  %v2689_v30 = vunpack.i.l.bf16 %v2688_v23  ;;  %211 = vst [vmem:[%s3618_s4 + $0x4] sm:$0x1] %v210_v29  ;;  %v2236_v4 = vrot.slane %v2234_v24, 5 }
0x15e4   :  { %v2240_v56 = vrot.slane %v2238_v57, 5  ;;  %v2548_v6 = vpack.c.bf16 %v2368_v25, %v2368_v25  ;;  %2379 = vrot.lane.b32.xlu0 %v2547_v26, %s2864_s29 }
0x15e5   :  { %v366_v33 = vsel %vm3334_vm10, %v2690_v55, %v365_v28  ;;  %v363_v34 = vsel %vm3334_vm10, %v2689_v30, %v362_v13  ;;  %v788_v35 = vpop.permute.xlu1 %787  ;;  %v790_v48 = vpop.permute.xlu0 %789 }
0x15e6   :  { %367 = vst [vmem:[%s3619_s5 + $0x4] sm:$0x8] %v366_v33  ;;  %364 = vst [vmem:[%s3619_s5] sm:$0x8] %v363_v34  ;;  %v797_v36 = vsel %vm3347_vm11, %v788_v35, %v796_v32  ;;  %v800_v37 = vsel %vm3347_vm11, %v790_v48, %v799_v0  ;;  %2381 = vrot.lane.b32.xlu1 %v2548_v6, %s2864_s29  ;;  %v2721_v40 = vpack.i.bf16 %v2240_v56, %v2236_v4  ;;  %v509_v24 = vld [vmem:[%s3618_s4] sm:$0x1] }
0x15e7   :  { %798 = vst [vmem:[%s3618_s4] sm:$0x2] %v797_v36  ;;  %801 = vst [vmem:[%s3618_s4 + $0x4] sm:$0x2] %v800_v37 }
0x15e8   :  { %2345 = vrot.lane.b32.xlu0 %v2344_v54, %s2864_s29 }
0x15e9   :  { %v2693_v44 = vpop.permute.xlu1 %2692  ;;  %v1374_v60 = vpop.permute.xlu0 %1373 }
0x15ea   :  { %v2695_v45 = vunpack.i.h.bf16 %v2693_v44  ;;  %v2694_v46 = vunpack.i.l.bf16 %v2693_v44  ;;  %v1380_v47 = vsel %vm3385_vm15, %v1374_v60, %v1379_v39  ;;  %2722 = vrot.lane.b32.xlu1 %v2721_v40, %s2864_s29  ;;  %v512_v57 = vld [vmem:[%s3618_s4 + $0x4] sm:$0x1] }
0x15eb   :  { %1381 = vst [vmem:[%s3618_s4] sm:$0x4] %v1380_v47 }
0x15ec   :  { %v950_v58 = vsel %vm3394_vm1, %v2695_v45, %v949_v43  ;;  %v947_v61 = vsel %vm3394_vm1, %v2694_v46, %v946_v42 }
0x15ed   :  { %951 = vst [vmem:[%s3619_s5 + $0x4] sm:$0x4] %v950_v58  ;;  %948 = vst [vmem:[%s3619_s5] sm:$0x4] %v947_v61  ;;  %v1376_v53 = vpop.permute.xlu1 %1375  ;;  %v2698_v7 = vpop.permute.xlu0 %2697  ;;  %v652_v55 = vld [vmem:[%s3619_s5] sm:$0x8] }
0x15ee   :  { %v1383_v9 = vsel %vm3385_vm15, %v1376_v53, %v1382_v50  ;;  %v2700_v49 = vunpack.i.h.bf16 %v2698_v7  ;;  %v2699_v8 = vunpack.i.l.bf16 %v2698_v7  ;;  %2357 = vrot.lane.b32.xlu1 %v2356_v62, %s2865_s30  ;;  %v655_v32 = vld [vmem:[%s3619_s5 + $0x4] sm:$0x8]  ;;  %v1095_v54 = vld [vmem:[%s3618_s4] sm:$0x2]  ;;  %v1098_v36 = vld [vmem:[%s3618_s4 + $0x4] sm:$0x2] }
0x15ef   :  { %1384 = vst [vmem:[%s3618_s4 + $0x4] sm:$0x4] %v1383_v9 }
0x15f0   :  { %v1530_v16 = vsel %vm3420_vm7, %v2700_v49, %v1529_v5  ;;  %v1527_v14 = vsel %vm3420_vm7, %v2699_v8, %v1526_v2 }
0x15f1   :  { %1531 = vst [vmem:[%s3619_s5 + $0x4] sm:$0x2] %v1530_v16  ;;  %1528 = vst [vmem:[%s3619_s5] sm:$0x2] %v1527_v14  ;;  %v1950_v19 = vpop.permute.xlu1 %1949  ;;  %v1952_v17 = vpop.permute.xlu0 %1951 }
0x15f2   :  { %v1956_v18 = vsel %vm3443_vm8, %v1950_v19, %v1955_v11  ;;  %v1959_v1 = vsel %vm3443_vm8, %v1952_v17, %v1958_v12  ;;  %v1673_v46 = vld [vmem:[%s3618_s4] sm:$0x4] }
0x15f3   :  { %1957 = vst [vmem:[%s3618_s4] sm:$0x8] %v1956_v18  ;;  %1960 = vst [vmem:[%s3618_s4 + $0x4] sm:$0x8] %v1959_v1 }
0x15f4   :  { %v1238_v33 = vld [vmem:[%s3619_s5] sm:$0x4]  ;;  %v1241_v42 = vld [vmem:[%s3619_s5 + $0x4] sm:$0x4] }
0x15f5   :  { %v2703_v59 = vpop.permute.xlu1 %2702  ;;  %v2708_v22 = vpop.permute.xlu0 %2707 }
0x15f6   :  { %v2705_v52 = vunpack.i.h.bf16 %v2703_v59  ;;  %v2704_v51 = vunpack.i.l.bf16 %v2703_v59  ;;  %v2710_v3 = vunpack.i.h.bf16 %v2708_v22  ;;  %v2709_v23 = vunpack.i.l.bf16 %v2708_v22  ;;  %v1676_v47 = vld [vmem:[%s3618_s4 + $0x4] sm:$0x4] }
0x15f8   :  { %v2104_v25 = vsel %vm508_vm9, %v2705_v52, %v2103_v21  ;;  %v2101_v26 = vsel %vm508_vm9, %v2704_v51, %v2100_v20  ;;  %v513_v13 = vsel %vm508_vm9, %v2710_v3, %v512_v57  ;;  %v510_v28 = vsel %vm508_vm9, %v2709_v23, %v509_v24  ;;  %v1814_v58 = vld [vmem:[%s3619_s5] sm:$0x2]  ;;  %v1817_v63 = vld [vmem:[%s3619_s5 + $0x4] sm:$0x2] }
0x15f9   :  { %2105 = vst [vmem:[%s3619_s5 + $0x4] sm:$0x1] %v2104_v25  ;;  %2102 = vst [vmem:[%s3619_s5] sm:$0x1] %v2101_v26  ;;  %v645_v29 = vpop.permute.xlu1 %644  ;;  %v647_v30 = vpop.permute.xlu0 %646 }
0x15fa   :  { %514 = vst [vmem:[%s3618_s4 + $0x4] sm:$0x1] %v513_v13  ;;  %511 = vst [vmem:[%s3618_s4] sm:$0x1] %v510_v28  ;;  %v653_v0 = vsel %vm3443_vm8, %v645_v29, %v652_v55  ;;  %v656_v56 = vsel %vm3443_vm8, %v647_v30, %v655_v32  ;;  %v2247_v19 = vld [vmem:[%s3618_s4] sm:$0x8] }
0x15fb   :  { %654 = vst [vmem:[%s3619_s5] sm:$0x8] %v653_v0  ;;  %657 = vst [vmem:[%s3619_s5 + $0x4] sm:$0x8] %v656_v56  ;;  %v2250_v17 = vld [vmem:[%s3618_s4 + $0x4] sm:$0x8] }
0x15fd   :  { %v2713_v6 = vpop.permute.xlu1 %2712  ;;  %v1231_v34 = vpop.permute.xlu0 %1230 }
0x15fe   :  { %v2715_v35 = vunpack.i.h.bf16 %v2713_v6  ;;  %v2714_v48 = vunpack.i.l.bf16 %v2713_v6  ;;  %v1239_v4 = vsel %vm3385_vm15, %v1231_v34, %v1238_v33 }
0x15ff   :  { %1240 = vst [vmem:[%s3619_s5] sm:$0x4] %v1239_v4 }
0x1600   :  { %v1096_v37 = vsel %vm3420_vm7, %v2714_v48, %v1095_v54  ;;  %v1099_v39 = vsel %vm3420_vm7, %v2715_v35, %v1098_v36  ;;  %v2385_v7 = vld [vmem:[%s3619_s5] sm:$0x1]  ;;  %v2388_v8 = vld [vmem:[%s3619_s5 + $0x4] sm:$0x1] }
0x1601   :  { %1097 = vst [vmem:[%s3618_s4] sm:$0x2] %v1096_v37  ;;  %1100 = vst [vmem:[%s3618_s4 + $0x4] sm:$0x2] %v1099_v39  ;;  %v1233_v40 = vpop.permute.xlu1 %1232  ;;  %v2718_v43 = vpop.permute.xlu0 %2717 }
0x1602   :  { %v1242_v44 = vsel %vm3385_vm15, %v1233_v40, %v1241_v42  ;;  %v2720_v60 = vunpack.i.h.bf16 %v2718_v43  ;;  %v2719_v45 = vunpack.i.l.bf16 %v2718_v43 }
0x1603   :  { %1243 = vst [vmem:[%s3619_s5 + $0x4] sm:$0x4] %v1242_v44 }
0x1604   :  { %v1677_v50 = vsel %vm3394_vm1, %v2720_v60, %v1676_v47  ;;  %v1674_v38 = vsel %vm3394_vm1, %v2719_v45, %v1673_v46 }
0x1605   :  { %1678 = vst [vmem:[%s3618_s4 + $0x4] sm:$0x4] %v1677_v50  ;;  %1675 = vst [vmem:[%s3618_s4] sm:$0x4] %v1674_v38  ;;  %v1809_v62 = vpop.permute.xlu1 %1808  ;;  %v1811_v61 = vpop.permute.xlu0 %1810 }
0x1606   :  { %v1815_v41 = vsel %vm3347_vm11, %v1809_v62, %v1814_v58  ;;  %v1818_v53 = vsel %vm3347_vm11, %v1811_v61, %v1817_v63 }
0x1607   :  { %1816 = vst [vmem:[%s3619_s5] sm:$0x2] %v1815_v41  ;;  %1819 = vst [vmem:[%s3619_s5 + $0x4] sm:$0x2] %v1818_v53 }
0x1609   :  { %v2212_v2 = vpop.permute.xlu1 %2211 }
0x160a   :  { %2214 = vst.msk [vmem:[#allocation3] sm:$0x3] %vm54_vm0, %v2212_v2 }
0x1650   :  { %v2200_v5 = vpop.permute.xlu0 %2199 }
0x1651   :  { %2202 = vst.msk [vmem:[#allocation2] sm:$0x3] %vm54_vm0, %v2200_v5 }
0x1656   :  { %v2380_v31 = vpop.permute.xlu0 %2379 }
0x1657   :  { %v2386_v9 = vsel %vm3313_vm5, %v2380_v31, %v2385_v7 }
0x1658   :  { %2387 = vst [vmem:[%s3619_s5] sm:$0x1] %v2386_v9  ;;  %v2382_v49 = vpop.permute.xlu1 %2381 }
0x1659   :  { %v2389_v10 = vsel %vm3313_vm5, %v2382_v49, %v2388_v8 }
0x165a   :  { %2390 = vst [vmem:[%s3619_s5 + $0x4] sm:$0x1] %v2389_v10  ;;  %v2346_v11 = vpop.permute.xlu0 %2345 }
0x165b   :  { %2348 = vst.msk [vmem:[#allocation4] sm:$0x3] %vm54_vm0, %v2346_v11 }
0x165c   :  { %v2723_v12 = vpop.permute.xlu1 %2722 }
0x165d   :  { %v2725_v16 = vunpack.i.h.bf16 %v2723_v12  ;;  %v2724_v14 = vunpack.i.l.bf16 %v2723_v12 }
0x165f   :  { %v2248_v15 = vsel %vm3334_vm10, %v2724_v14, %v2247_v19  ;;  %v2251_v18 = vsel %vm3334_vm10, %v2725_v16, %v2250_v17 }
0x1660   :  { %2249 = vst [vmem:[%s3618_s4] sm:$0x8] %v2248_v15  ;;  %2252 = vst [vmem:[%s3618_s4 + $0x4] sm:$0x8] %v2251_v18  ;;  %v2358_v1 = vpop.permute.xlu1 %2357 }
0x1661   :  { %2360 = vst.msk [vmem:[#allocation5] sm:$0x3] %vm54_vm0, %v2358_v1 }

// kernel: gcn_relation_forward.13
= control target key start
LH: loop header
LB: loop body
LE: loop exit
PB: predicated region body
PF: predicated region fallthrough
CT: control target
= control target key end

     0   :  { %s993_s15 = smov 0   ;;  %s1088_s0 = inlined_call_operand.vmem [shape: bf16[2,4,8,8], index: 0, kind: input, shape index: {}]   ;;  %s1089_s1 = inlined_call_operand.vmem [shape: bf16[2,4,8,8], index: 1, kind: input, shape index: {}]   ;;  %s1090_s2 = inlined_call_operand.vmem [shape: bf16[2,4,8,8], index: 2, kind: input, shape index: {}]   ;;  %s1091_s3 = inlined_call_operand.vmem [shape: bf16[2,8,32], index: 3, kind: output, shape index: {0}]   ;;  %s1092_s4 = inlined_call_operand.vmem [shape: f32[2,8,8], index: 4, kind: output, shape index: {1}]  }
   0x1 LB: > { %s830_s16 = sadd.s32 4294967295, %s961_s15   ;;  %p834_p0 = scmp.ge.s32.totalorder %s961_s15, 1  ;;  %s961_s15 = sphi %s993_s15, %s15_s15  }
   0x2   : > { %p185_p1 = scmp.lt.s32.totalorder %s961_s15, 3 }
   0x4   : > { %p186_p2 = pnand %p834_p0, %p185_p1 }
   0x5   : > { %p224_p3 = scmp.lt.s32.totalorder (!%p186_p2), %s830_s16, 1  ;;  %v963_v0 = vmov (!%p186_p2), 0.0   ;;  %vm964_vm0 = vmmov (!%p186_p2), 0   ;;  %vm264_vm1 = vcmask (!%p186_p2), 1043456   ;;  %vm260_vm2 = vcmask (!%p186_p2), 64512   ;;  %s965_s9 = smov (!%p186_p2), 8  }
   0x6   : > { %189 = sbr.rel (%p186_p2) target bundleno = 893 (0x37d), region = 32  ;;  %878 = vmatprep.subr.bf16.mxu0 (!%p186_p2), %v963_v0  ;;  %884 = vmatprep.subr.bf16.mxu1 (!%p186_p2), %v963_v0  ;;  %vm545_vm3 = vcmask (!%p186_p2), 60416   ;;  %s966_s10 = smov (!%p186_p2), 16   ;;  %vm600_vm4 = vcmask (!%p186_p2), 126016   ;;  %vm655_vm5 = vcmask (!%p186_p2), 191616   ;;  %vm710_vm6 = vcmask (!%p186_p2), 257216  }
   0x7   : > { %880 = vmatprep.mubr.msk.bf16.mxu0 (!%p186_p2), %vm964_vm0, %v963_v0  ;;  %886 = vmatprep.mubr.msk.bf16.mxu1 (!%p186_p2), %vm964_vm0, %v963_v0  ;;  %s967_s11 = smov (!%p186_p2), 24  }
   0xd   : > { %s1094_s16 = smov (!%p224_p3, %s830_s16), 1 }
   0xe   : > { %s1010_s17 = sshll.u32 %s1094_s16, 4  ;;  %s842_s27 = sshll.u32 %s1094_s16, 3 }
   0xf   : > { %s233_s20 = scalar_lea.vmem %s1089_s1, %s1010_s17  ;;  %s228_s23 = scalar_lea.vmem %s1088_s0, %s1010_s17 }
  0x10   : > { %v252_v1 = vld [vmem:[%s233_s20] sm:$0xf]  ;;  %v253_v2 = vld [vmem:[%s233_s20 + $0x4] sm:$0xf]  ;;  %v254_v3 = vld [vmem:[%s233_s20 + $0x8] sm:$0xf]  ;;  %s238_s26 = scalar_lea.vmem %s1090_s2, %s1010_s17  ;;  %s246_s30 = scalar_lea.vmem %s1092_s4, %s842_s27 }
  0x11   : > { %v266_v4 = vsel %vm264_vm1, %v252_v1, 0  ;;  %v312_v5 = vsel %vm264_vm1, %v253_v2, 0  ;;  %v248_v6 = vld [vmem:[%s228_s23] sm:$0xf]  ;;  %v249_v7 = vld [vmem:[%s228_s23 + $0x4] sm:$0xf] }
  0x12   : > { %879 = vmatpush3.bf16.msra.mxu0 %v266_v4  ;;  %885 = vmatpush3.bf16.msra.mxu1 %v312_v5  ;;  %v255_v8 = vld [vmem:[%s233_s20 + $0xc] sm:$0xf]  ;;  %v358_v9 = vsel %vm264_vm1, %v254_v3, 0  ;;  %v250_v11 = vld [vmem:[%s228_s23 + $0x8] sm:$0xf]  ;;  %s841_s5 = sshll.u32 %s1094_s16, 2 }
  0x13   : > { %890 = vmatprep.subr.bf16.mxu0 %v963_v0  ;;  %896 = vmatprep.subr.bf16.mxu1 %v963_v0  ;;  %v404_v10 = vsel %vm264_vm1, %v255_v8, 0  ;;  %v251_v12 = vld [vmem:[%s228_s23 + $0xc] sm:$0xf]  ;;  %v256_v57 = vld [vmem:[%s238_s26] sm:$0xf]  ;;  %s1079_s8 = scalar_lea.vmem %s1091_s3, %s841_s5 }
  0x14   : > { %v502_v58 = vsel %vm264_vm1, %v256_v57, 0  ;;  %v257_v59 = vld [vmem:[%s238_s26 + $0x4] sm:$0xf]  ;;  %v258_v2 = vld [vmem:[%s238_s26 + $0x8] sm:$0xf] }
  0x15   : > { %881 = vmatmul.mubr.msk.bf16.vlgmr.msra.gmra.mrb[0].mxu0 %vm260_vm2, %v248_v6  ;;  %887 = vmatmul.mubr.msk.bf16.vlgmr.msra.gmra.mrb[0].mxu1 %vm260_vm2, %v249_v7  ;;  %v551_v60 = vsel %vm264_vm1, %v257_v59, 0  ;;  %v606_v6 = vsel %vm264_vm1, %v258_v2, 0  ;;  %v259_v8 = vld [vmem:[%s238_s26 + $0xc] sm:$0xf] }
  0x16   : > { %891 = vmatpush3.bf16.msra.mxu0 %v358_v9  ;;  %897 = vmatpush3.bf16.msra.mxu1 %v404_v10 }
  0x17   : > { %892 = vmatprep.mubr.msk.bf16.mxu0 %vm964_vm0, %v963_v0  ;;  %898 = vmatprep.mubr.msk.bf16.mxu1 %vm964_vm0, %v963_v0 }
  0x18   : > { %902 = vmatprep.subr.bf16.mxu0 %v963_v0  ;;  %908 = vmatprep.subr.bf16.mxu1 %v963_v0 }
  0x1d   : > { %893 = vmatmul.mubr.msk.bf16.vlgmr.msra.gmra.mrb[4].mxu0 %vm260_vm2, %v250_v11  ;;  %899 = vmatmul.mubr.msk.bf16.vlgmr.msra.gmra.mrb[4].mxu1 %vm260_vm2, %v251_v12  ;;  %v661_v11 = vsel %vm264_vm1, %v259_v8, 0 }
  0x1e   : > { %904 = vmatprep.mubr.msk.bf16.mxu0 %vm964_vm0, %v963_v0  ;;  %910 = vmatprep.mubr.msk.bf16.mxu1 %vm964_vm0, %v963_v0 }
  0x1f   : > { %903 = vmatpush3.bf16.msra.mxu0 %v502_v58  ;;  %909 = vmatpush3.bf16.msra.mxu1 %v551_v60 }
  0x20   : > { %914 = vmatprep.subr.bf16.mxu0 %v963_v0  ;;  %920 = vmatprep.subr.bf16.mxu1 %v963_v0 }
  0xe8   : > { %v302_v13 = vpop.f32.mrb[0].mxu0  ;;  %v348_v14 = vpop.f32.mrb[0].mxu1 }
  0xe9   : > { %v446_v15 = vmul.f32 0.35355338, %v302_v13  ;;  %v882_v16 = vpop.f32.mrb[1].mxu0  ;;  %v447_v17 = vmul.f32 0.35355338, %v348_v14  ;;  %v888_v18 = vpop.f32.mrb[1].mxu1 }
  0xea   : > { %v305_v19 = vpop.f32.mrb[2].mxu0  ;;  %v351_v20 = vpop.f32.mrb[2].mxu1 }
  0xeb   : > { %v883_v21 = vpop.f32.mrb[3].mxu0  ;;  %v450_v22 = vsel %vm260_vm2, %v446_v15, -inf  ;;  %v889_v23 = vpop.f32.mrb[3].mxu1  ;;  %v453_v24 = vsel %vm260_vm2, %v447_v17, -inf }
  0xec   : > { %451 = vmax.xlane.f32.xlu0 %v450_v22 }
  0xf0   : > { %454 = vmax.xlane.f32.xlu0 %v453_v24  ;;  %v394_v25 = vpop.f32.mrb[4].mxu0  ;;  %v440_v26 = vpop.f32.mrb[4].mxu1 }
  0xf1   : > { %v448_v27 = vmul.f32 0.35355338, %v394_v25  ;;  %v894_v28 = vpop.f32.mrb[5].mxu0  ;;  %v449_v29 = vmul.f32 0.35355338, %v440_v26  ;;  %v900_v30 = vpop.f32.mrb[5].mxu1 }
  0xf2   : > { %v397_v31 = vpop.f32.mrb[6].mxu0  ;;  %v443_v32 = vpop.f32.mrb[6].mxu1 }
  0xf3   : > { %v895_v33 = vpop.f32.mrb[7].mxu0  ;;  %v456_v34 = vsel %vm260_vm2, %v448_v27, -inf  ;;  %v901_v35 = vpop.f32.mrb[7].mxu1  ;;  %v459_v36 = vsel %vm260_vm2, %v449_v29, -inf }
  0xf4   : > { %457 = vmax.xlane.f32.xlu1 %v456_v34 }
  0xf8   : > { %460 = vmax.xlane.f32.xlu1 %v459_v36 }
 0x179   : > { %v452_v37 = vpop.xlane.xlu0 %451 }
 0x17a   : > { %v462_v38 = vsub.f32 %v446_v15, %v452_v37 }
 0x17c   : > { %v466_v39 = vmul.f32 1.442695, %v462_v38 }
 0x17d   : > { %v455_v40 = vpop.xlane.xlu0 %454 }
 0x17e   : > { %939 = vpow2.f32 %v466_v39  ;;  %v463_v41 = vsub.f32 %v447_v17, %v455_v40 }
 0x180   : > { %v468_v42 = vmul.f32 1.442695, %v463_v41 }
 0x181   : > { %v458_v43 = vpop.xlane.xlu1 %457 }
 0x182   : > { %941 = vpow2.f32 %v468_v42  ;;  %v464_v44 = vsub.f32 %v448_v27, %v458_v43 }
 0x184   : > { %v470_v45 = vmul.f32 1.442695, %v464_v44 }
 0x185   : > { %v461_v46 = vpop.xlane.xlu1 %460 }
 0x186   : > { %943 = vpow2.f32 %v470_v45  ;;  %v465_v47 = vsub.f32 %v449_v29, %v461_v46 }
 0x188   : > { %v940_v48 = vpop.eup %939  ;;  %v472_v49 = vmul.f32 1.442695, %v465_v47 }
 0x189   : > { %v474_v50 = vsel %vm260_vm2, %v940_v48, 0.0 }
 0x18a   : > { %945 = vpow2.f32 %v472_v49  ;;  %475 = vadd.xlane.f32.xlu0 %v474_v50 }
 0x18c   : > { %v942_v51 = vpop.eup %941 }
 0x18d   : > { %v477_v52 = vsel %vm260_vm2, %v942_v51, 0.0 }
 0x18e   : > { %478 = vadd.xlane.f32.xlu1 %v477_v52 }
 0x190   : > { %v944_v53 = vpop.eup %943 }
 0x191   : > { %v480_v54 = vsel %vm260_vm2, %v944_v53, 0.0 }
 0x192   : > { %481 = vadd.xlane.f32.xlu0 %v480_v54 }
 0x194   : > { %v946_v55 = vpop.eup %945 }
 0x195   : > { %v483_v56 = vsel %vm260_vm2, %v946_v55, 0.0 }
 0x196   : > { %484 = vadd.xlane.f32.xlu1 %v483_v56 }
 0x217   : > { %v476_v61 = vpop.xlane.xlu0 %475 }
 0x218   : > { %947 = vrcp.f32 %v476_v61 }
 0x21b   : > { %v479_v62 = vpop.xlane.xlu1 %478 }
 0x21c   : > { %949 = vrcp.f32 %v479_v62 }
 0x21f   : > { %v482_v63 = vpop.xlane.xlu0 %481 }
 0x220   : > { %951 = vrcp.f32 %v482_v63 }
 0x222   : > { %v948_v1 = vpop.eup %947 }
 0x223   : > { %v487_v3 = vmul.f32 %v948_v1, %v940_v48  ;;  %v485_v4 = vpop.xlane.xlu1 %484 }
 0x224   : > { %953 = vrcp.f32 %v485_v4 }
 0x225   : > { %v494_v5 = vpack.c.bf16 %v487_v3, %v487_v3  ;;  %v712_v15 = vsel %vm260_vm2, %v487_v3, 0.0 }
 0x226   : > { %v950_v7 = vpop.eup %949 }
 0x227   : > { %v489_v9 = vmul.f32 %v950_v7, %v942_v51  ;;  %905 = vmatmul.mubr.msk.bf16.vlgmr.msra.gmra.mrb[8].mxu0 %vm260_vm2, %v494_v5 }
 0x228   : > { %915 = vmatpush3.bf16.msra.mxu0 %v606_v6  ;;  %916 = vmatprep.mubr.msk.bf16.mxu0 %vm964_vm0, %v963_v0 }
 0x229   : > { %v495_v10 = vpack.c.bf16 %v489_v9, %v489_v9  ;;  %v713_v13 = vsel %vm260_vm2, %v489_v9, 0.0 }
 0x22a   : > { %v952_v12 = vpop.eup %951  ;;  %v714_v19 = vadd.f32 %v713_v13, %v712_v15 }
 0x22b   : > { %v491_v14 = vmul.f32 %v952_v12, %v944_v53  ;;  %911 = vmatmul.mubr.msk.bf16.vlgmr.msra.gmra.mrb[8].mxu1 %vm260_vm2, %v495_v10 }
 0x22c   : > { %921 = vmatpush3.bf16.msra.mxu1 %v661_v11  ;;  %922 = vmatprep.mubr.msk.bf16.mxu1 %vm964_vm0, %v963_v0 }
 0x22d   : > { %v715_v16 = vsel %vm260_vm2, %v491_v14, 0.0  ;;  %v496_v17 = vpack.c.bf16 %v491_v14, %v491_v14 }
 0x22e   : > { %v954_v18 = vpop.eup %953  ;;  %v716_v21 = vadd.f32 %v715_v16, %v714_v19 }
 0x22f   : > { %v493_v20 = vmul.f32 %v954_v18, %v946_v55  ;;  %917 = vmatmul.mubr.msk.bf16.vlgmr.msra.gmra.mrb[12].mxu0 %vm260_vm2, %v496_v17 }
 0x231   : > { %v717_v22 = vsel %vm260_vm2, %v493_v20, 0.0  ;;  %v497_v23 = vpack.c.bf16 %v493_v20, %v493_v20 }
 0x232   : > { %v718_v24 = vadd.f32 %v717_v22, %v716_v21 }
 0x233   : > { %923 = vmatmul.mubr.msk.bf16.vlgmr.msra.gmra.mrb[12].mxu1 %vm260_vm2, %v497_v23 }
 0x234   : > { %v720_v0 = vmul.f32 0.25, %v718_v24 }
 0x236   : > { %721 = vst.msk [vmem:[%s246_s30] sm:$0xff] %vm260_vm2, %v720_v0 }
 0x2fa   : > { %v538_v25 = vpop.f32.mrb[8].mxu0 }
 0x2fb   : > { %v544_v26 = vpack.c.bf16 %v538_v25, %v538_v25  ;;  %v906_v27 = vpop.f32.mrb[9].mxu0 }
 0x2fc   : > { %v541_v28 = vpop.f32.mrb[10].mxu0 }
 0x2fd   : > { %546 = vst.msk [vmem:[%s1079_s8] sm:$0xf] %vm545_vm3, %v544_v26  ;;  %v907_v29 = vpop.f32.mrb[11].mxu0 }
 0x2fe   : > { %v587_v30 = vpop.f32.mrb[8].mxu1 }
 0x2ff   : > { %v859_v31 = vpack.c.bf16 %v587_v30, %v587_v30  ;;  %v912_v32 = vpop.f32.mrb[9].mxu1 }
 0x300   : > { %v590_v33 = vpop.f32.mrb[10].mxu1 }
 0x301   : > { %597 = vrot.lane.b32.xlu0 %v859_v31, %s965_s9  ;;  %v913_v34 = vpop.f32.mrb[11].mxu1 }
 0x302   : > { %v642_v35 = vpop.f32.mrb[12].mxu0 }
 0x303   : > { %v860_v36 = vpack.c.bf16 %v642_v35, %v642_v35  ;;  %v918_v37 = vpop.f32.mrb[13].mxu0 }
 0x304   : > { %v645_v38 = vpop.f32.mrb[14].mxu0 }
 0x305   : > { %652 = vrot.lane.b32.xlu1 %v860_v36, %s966_s10  ;;  %v919_v39 = vpop.f32.mrb[15].mxu0 }
 0x306   : > { %v697_v40 = vpop.f32.mrb[12].mxu1 }
 0x307   : > { %v861_v41 = vpack.c.bf16 %v697_v40, %v697_v40  ;;  %v924_v42 = vpop.f32.mrb[13].mxu1 }
 0x308   : > { %v700_v43 = vpop.f32.mrb[14].mxu1 }
 0x309   : > { %v925_v44 = vpop.f32.mrb[15].mxu1  ;;  %707 = vrot.lane.b32.xlu1 %v861_v41, %s967_s11 }
 0x373   : > { %v598_v45 = vpop.permute.xlu0 %597 }
 0x374   : > { %601 = vst.msk [vmem:[%s1079_s8] sm:$0xf] %vm600_vm4, %v598_v45 }
 0x377   : > { %v653_v46 = vpop.permute.xlu1 %652 }
 0x378   : > { %656 = vst.msk [vmem:[%s1079_s8] sm:$0xf] %vm655_vm5, %v653_v46 }
 0x37b   : > { %v708_v47 = vpop.permute.xlu1 %707 }
 0x37c   : > { %711 = vst.msk [vmem:[%s1079_s8] sm:$0xf] %vm710_vm6, %v708_v47 }
 0x37d PF: > { %s15_s15 = sadd.s32 1, %s961_s15  }
 0x37e   : > { %p12_p4 = scmp.ge.s32.totalorder %s15_s15, 4  }
 0x380   :  { %14 = sbr.rel (!%p12_p4) target bundleno = 1 (0x1), region = 80 }

</bundles_post_ra>
